<compile_context>
chip_gen: v6e
topology: v6e:2x2x1
jax: 0.10.0
libtpu: 0.0.40
codegen_flags: <defaults>
</compile_context>

<pallas_src>
import functools

import jax
import jax.numpy as jnp
from jax import lax
from jax.experimental import pallas as pl
from jax.experimental.pallas import tpu as pltpu


# ----------------------------------------------------------------------------- config
C_IN = 3           # RGB input
STEM_C = 24        # logical stem channels (EfficientNetV2-S stem)
EXPAND_C = 96      # logical MBConv expand channels
SE_RED = 8         # logical QuadrantSE reduction dim
HEAD_C = 128       # head conv channels
NUM_LOGITS = 1000  # real forward still emits 1000 logits (out_features quirk)

CP = 128           # lane-padded channel width for every activation tensor
KPAD = 128         # lane-padded im2col patch depth (3*3*3 = 27 -> 128)
NCLS_PAD = 1024    # lane-padded classifier width (sliced back to 1000)

_VMEM_LIMIT = 32 * 1024 * 1024


# ----------------------------------------------------------------------------- in-kernel activation helpers (f32 math)
def _silu(x):
    # x * sigmoid(x); exact single-EUP form: sigmoid(x) = 0.5*tanh(0.5x)+0.5.
    return x * (0.5 * jnp.tanh(0.5 * x) + 0.5)


def _hardswish(x):
    return x * jnp.clip(x + 3.0, 0.0, 6.0) * (1.0 / 6.0)


def _hardsigmoid(x):
    return jnp.clip(x + 3.0, 0.0, 6.0) * (1.0 / 6.0)


def _whole_spec(arr):
    """Whole-array block with a constant index map (weights stay resident)."""
    zeros = (0,) * arr.ndim
    return pl.BlockSpec(arr.shape, lambda i: zeros)


# ----------------------------------------------------------------------------- kernel 1: fused stem conv + MBConv(QuadrantSE), one image per grid step
def _stem_mbconv_kernel(patch_ref, stem_w_ref, stem_b_ref,
                        exp_w_ref, exp_b_ref, dw_w_ref, dw_b_ref,
                        se_w1_ref, se_b1_ref, se_w2_ref, se_b2_ref,
                        proj_w_ref, proj_b_ref, o_ref, *, h, w):
    hw = h * w
    h2, w2 = h // 2, w // 2

    # ---- stem 3x3/s2 conv as ONE im2col matmul + SiLU -----------------------
    x2 = jnp.dot(patch_ref[0], stem_w_ref[...],
                 preferred_element_type=jnp.float32)          # (hw, CP)
    x2 = _silu(x2 + stem_b_ref[0])                            # MBConv input, f32

    # ---- expand 1x1 + SiLU ---------------------------------------------------
    hid = jnp.dot(x2.astype(jnp.bfloat16), exp_w_ref[...],
                  preferred_element_type=jnp.float32)
    hid = _silu(hid + exp_b_ref[0])                           # (hw, CP) f32

    # ---- depthwise 3x3 + SiLU: haloless, sublane rolls (XLU) + edge masks ----
    f = lax.broadcasted_iota(jnp.int32, (hw, 1), 0)                      # flat idx
    col = lax.broadcasted_iota(jnp.int32, (h, w, 1), 1).reshape(hw, 1)   # width idx
    has_l = col > 0            # a (i, j-1) neighbour exists
    has_r = col < (w - 1)      # a (i, j+1) neighbour exists
    has_u = f >= w             # a (i-1, j) neighbour exists
    has_d = f < (hw - w)       # a (i+1, j) neighbour exists

    wdw = dw_w_ref[...].astype(jnp.float32)                   # (9, 1, CP) taps
    hid_l = jnp.where(has_l, pltpu.roll(hid, 1, axis=0), 0.0)        # value at j-1
    hid_r = jnp.where(has_r, pltpu.roll(hid, hw - 1, axis=0), 0.0)   # value at j+1
    # combine width taps first, then shift whole rows (so only 4 rolls total)
    g0 = hid_l * wdw[0] + hid * wdw[1] + hid_r * wdw[2]       # kernel row 0
    g1 = hid_l * wdw[3] + hid * wdw[4] + hid_r * wdw[5]       # kernel row 1
    g2 = hid_l * wdw[6] + hid * wdw[7] + hid_r * wdw[8]       # kernel row 2
    acc = (g1 + dw_b_ref[0]
           + jnp.where(has_u, pltpu.roll(g0, w, axis=0), 0.0)         # row i-1
           + jnp.where(has_d, pltpu.roll(g2, hw - w, axis=0), 0.0))   # row i+1
    hid = _silu(acc)                                          # (hw, CP) f32

    # ---- QuadrantSqueezeExcitation (exact AdaptiveAvg/MaxPool((2,2)) stats) --
    hid3 = hid.reshape(h, w, CP)
    quads = (hid3[:h2, :w2, :], hid3[:h2, w2:, :],
             hid3[h2:, :w2, :], hid3[h2:, w2:, :])            # tl, tr, bl, br
    stats = jnp.concatenate(
        [jnp.mean(q, axis=(0, 1)).reshape(1, CP) for q in quads]
        + [jnp.max(q, axis=(0, 1)).reshape(1, CP) for q in quads],
        axis=0)                                               # (8, CP)
    z = jnp.dot(stats.astype(jnp.bfloat16), se_w1_ref[...],
                preferred_element_type=jnp.float32) + se_b1_ref[0]
    z = _hardswish(z)
    z = jnp.dot(z.astype(jnp.bfloat16), se_w2_ref[...],
                preferred_element_type=jnp.float32) + se_b2_ref[0]
    # fc(avg) + fc(max), then Hardsigmoid -> 4 per-quadrant scale vectors
    s = _hardsigmoid(z[0:4] + z[4:8])                         # (4, CP)

    # one full-tile multiply instead of four masked sub-window stores
    top = f < (h2 * w)
    left = col < w2
    scale = jnp.where(top,
                      jnp.where(left, s[0:1], s[1:2]),
                      jnp.where(left, s[2:3], s[3:4]))        # (hw, CP) via bcast
    hid = hid * scale

    # ---- project 1x1 (linear) + residual to stem output, lane-dense store ----
    out = jnp.dot(hid.astype(jnp.bfloat16), proj_w_ref[...],
                  preferred_element_type=jnp.float32) + proj_b_ref[0]
    out = out + x2
    o_ref[0] = out.astype(o_ref.dtype)


def stem_mbconv_block(patches, p, h, w):
    n, hw, _ = patches.shape
    wnames = ("stem_w", "stem_b", "exp_w", "exp_b", "dw_w", "dw_b",
              "se_w1", "se_b1", "se_w2", "se_b2", "proj_w", "proj_b")
    return pl.pallas_call(
        functools.partial(_stem_mbconv_kernel, h=h, w=w),
        out_shape=jax.ShapeDtypeStruct((n, hw, CP), jnp.bfloat16),
        grid=(n,),
        in_specs=[pl.BlockSpec((1, hw, KPAD), lambda i: (i, 0, 0))]
                 + [_whole_spec(p[k]) for k in wnames],
        out_specs=pl.BlockSpec((1, hw, CP), lambda i: (i, 0, 0)),
        compiler_params=pltpu.CompilerParams(
            dimension_semantics=("parallel",),
            vmem_limit_bytes=_VMEM_LIMIT),
    )(patches, *[p[k] for k in wnames])


# ----------------------------------------------------------------------------- kernel 2: head conv + SiLU + global-avg-pool + classifier (gridded)
def _head_pool_classifier_kernel(x_ref, hw_ref, hb_ref, cw_ref, cb_ref, o_ref):
    y = jnp.dot(x_ref[0], hw_ref[...], preferred_element_type=jnp.float32)
    y = _silu(y + hb_ref[0])                                  # (hw, HEAD_C) f32
    pooled = jnp.mean(y, axis=0, keepdims=True)               # (1, HEAD_C)
    logits = jnp.dot(pooled.astype(jnp.bfloat16), cw_ref[...],
                     preferred_element_type=jnp.float32) + cb_ref[0]
    o_ref[0] = logits                                         # (1, NCLS_PAD) f32


def head_pool_classifier(feat, head_w, head_b, cls_w, cls_b):
    n, hw, _ = feat.shape
    return pl.pallas_call(
        _head_pool_classifier_kernel,
        out_shape=jax.ShapeDtypeStruct((n, 1, NCLS_PAD), jnp.float32),
        grid=(n,),
        in_specs=[pl.BlockSpec((1, hw, CP), lambda i: (i, 0, 0)),
                  _whole_spec(head_w), _whole_spec(head_b),
                  _whole_spec(cls_w), _whole_spec(cls_b)],
        out_specs=pl.BlockSpec((1, 1, NCLS_PAD), lambda i: (i, 0, 0)),
        compiler_params=pltpu.CompilerParams(
            dimension_semantics=("parallel",),
            vmem_limit_bytes=_VMEM_LIMIT),
    )(feat, head_w, head_b, cls_w, cls_b)


# ----------------------------------------------------------------------------- params (logical sizes, zero-padded to lane-dense widths)
def _pad_to(a, shape):
    return jnp.pad(a, [(0, t - s) for s, t in zip(a.shape, shape)])


def init_params(key):
    ks = jax.random.split(key, 8)
    s = 0.1
    f32, bf16 = jnp.float32, jnp.bfloat16

    # stem 3x3/s2 conv (BN folded) as an im2col weight: (27, STEM_C) -> (128, 128)
    stem_w = jax.random.normal(ks[0], (3, 3, C_IN, STEM_C), f32) * s
    stem_w = _pad_to(stem_w.reshape(9 * C_IN, STEM_C), (KPAD, CP))

    # depthwise 3x3 stored as 9 leading-dim taps (9, 1, C) for cheap indexing
    dw_w = jax.random.normal(ks[2], (3, 3, EXPAND_C), f32) * s
    dw_w = _pad_to(dw_w.reshape(9, 1, EXPAND_C), (9, 1, CP))

    return {
        "stem_w": stem_w.astype(bf16),
        "stem_b": jnp.zeros((1, CP), f32),
        # MBConv expand 1x1: STEM_C -> EXPAND_C
        "exp_w": _pad_to(jax.random.normal(ks[1], (STEM_C, EXPAND_C), f32) * s,
                         (CP, CP)).astype(bf16),
        "exp_b": jnp.zeros((1, CP), f32),
        # depthwise 3x3
        "dw_w": dw_w.astype(bf16),
        "dw_b": jnp.zeros((1, CP), f32),
        # QuadrantSqueezeExcitation(EXPAND_C, SE_RED)
        "se_w1": _pad_to(jax.random.normal(ks[3], (EXPAND_C, SE_RED), f32) * s,
                         (CP, CP)).astype(bf16),
        "se_b1": jnp.zeros((1, CP), f32),
        "se_w2": _pad_to(jax.random.normal(ks[4], (SE_RED, EXPAND_C), f32) * s,
                         (CP, CP)).astype(bf16),
        "se_b2": jnp.zeros((1, CP), f32),
        # MBConv project 1x1: EXPAND_C -> STEM_C (linear)
        "proj_w": _pad_to(jax.random.normal(ks[5], (EXPAND_C, STEM_C), f32) * s,
                          (CP, CP)).astype(bf16),
        "proj_b": jnp.zeros((1, CP), f32),
        # head 1x1 conv: STEM_C -> HEAD_C
        "head_w": _pad_to(jax.random.normal(ks[6], (STEM_C, HEAD_C), f32) * s,
                          (CP, HEAD_C)).astype(bf16),
        "head_b": jnp.zeros((1, HEAD_C), f32),
        # classifier Linear: HEAD_C -> 1000 (padded to 1024, sliced back)
        "cls_w": _pad_to(jax.random.normal(ks[7], (HEAD_C, NUM_LOGITS), f32) * s,
                         (HEAD_C, NCLS_PAD)).astype(bf16),
        "cls_b": jnp.zeros((1, NCLS_PAD), f32),
    }


# ----------------------------------------------------------------------------- forward
def efficientnetv2_small_quadrant_forward(params, x_nchw):
    n, c, h, w = x_nchw.shape
    assert c == C_IN
    assert h % 2 == 0 and w % 2 == 0, "stride-2 stem / quadrant SE need even H, W"
    ho, wo = h // 2, w // 2
    assert ho % 2 == 0 and wo % 2 == 0
    assert wo % 8 == 0 and (ho * wo) % 8 == 0, "keep quadrant split sublane-aligned"

    # NCHW -> NHWC, zero-pad by 1, build the stride-2 3x3 im2col patches once in
    # the wrapper (single lane-dense DMA per image; one matmul in the kernel).
    x = jnp.transpose(x_nchw.astype(jnp.float32), (0, 2, 3, 1))
    xp = jnp.pad(x, ((0, 0), (1, 1), (1, 1), (0, 0)))
    taps = [xp[:, a:a + 2 * ho:2, b:b + 2 * wo:2, :]
            for a in range(3) for b in range(3)]
    patches = jnp.concatenate(taps, axis=-1)                    # (n, ho, wo, 27)
    patches = jnp.pad(patches, ((0, 0), (0, 0), (0, 0), (0, KPAD - 9 * C_IN)))
    patches = patches.reshape(n, ho * wo, KPAD).astype(jnp.bfloat16)

    # fused stem + MBConv(QuadrantSE); output stays flattened (n, ho*wo, CP) bf16
    feat = stem_mbconv_block(patches, params, ho, wo)

    logits = head_pool_classifier(feat, params["head_w"], params["head_b"],
                                  params["cls_w"], params["cls_b"])
    return logits[:, 0, :NUM_LOGITS]


# ----------------------------------------------------------------------------- main
if __name__ == "__main__":
    key = jax.random.PRNGKey(0)
    pkey, xkey = jax.random.split(key)
    params = init_params(pkey)

    # small NCHW image batch, as the PyTorch module expects
    x = jax.random.normal(xkey, (2, 3, 32, 32), dtype=jnp.float32)

    fwd = jax.jit(efficientnetv2_small_quadrant_forward)
    logits = jax.block_until_ready(fwd(params, x))

    assert logits.shape == (2, NUM_LOGITS), logits.shape
    assert bool(jnp.all(jnp.isfinite(logits)))
    print("KERNEL_OK")
</pallas_src>

<mosaic_0001>
module attributes {stable_mosaic.version = 11 : i64} {
  func.func @_head_pool_classifier_kernel(%arg0: i32, %arg1: memref<1x256x128xbf16, #tpu.memory_space<vmem>>, %arg2: memref<128x128xbf16, #tpu.memory_space<vmem>>, %arg3: memref<1x128xf32, #tpu.memory_space<vmem>>, %arg4: memref<128x1024xbf16, #tpu.memory_space<vmem>>, %arg5: memref<1x1024xf32, #tpu.memory_space<vmem>>, %arg6: memref<1x1x1024xf32, #tpu.memory_space<vmem>>) attributes {dimension_semantics = [#tpu.dimension_semantics<parallel>], iteration_bounds = array<i64: 2>, scalar_prefetch = 0 : i64, scratch_operands = 0 : i64, tpu.core_type = #tpu.core_type<tc>, window_params = [{transform_indices = @transform_0, window_bounds = array<i64: 1, 256, 128>}, {pipeline_mode = #tpu.pipeline_mode<synchronous>, transform_indices = @transform_1, window_bounds = array<i64: 128, 128>}, {pipeline_mode = #tpu.pipeline_mode<synchronous>, transform_indices = @transform_2, window_bounds = array<i64: 1, 128>}, {pipeline_mode = #tpu.pipeline_mode<synchronous>, transform_indices = @transform_3, window_bounds = array<i64: 128, 1024>}, {pipeline_mode = #tpu.pipeline_mode<synchronous>, transform_indices = @transform_4, window_bounds = array<i64: 1, 1024>}, {transform_indices = @transform_5, window_bounds = array<i64: 1, 1, 1024>}]} {
    %c0 = arith.constant 0 : index
    %c0_0 = arith.constant 0 : index
    %c0_1 = arith.constant 0 : index
    %0 = vector.load %arg1[%c0, %c0_0, %c0_1] : memref<1x256x128xbf16, #tpu.memory_space<vmem>>, vector<1x256x128xbf16>
    %1 = vector.shape_cast %0 : vector<1x256x128xbf16> to vector<256x128xbf16>
    %c0_2 = arith.constant 0 : index
    %c0_3 = arith.constant 0 : index
    %2 = vector.load %arg2[%c0_2, %c0_3] : memref<128x128xbf16, #tpu.memory_space<vmem>>, vector<128x128xbf16>
    %cst = arith.constant dense<0.000000e+00> : vector<256x128xf32>
    %3 = tpu.matmul %1, %2, %cst {dimension_numbers = #tpu.dot_dimension_numbers<[1], [0], [0], [1], [0, 0, 1, 1], [], []>} : vector<256x128xbf16>, vector<128x128xbf16>, vector<256x128xf32> -> vector<256x128xf32>
    %c0_4 = arith.constant 0 : index
    %c0_5 = arith.constant 0 : index
    %4 = vector.load %arg3[%c0_4, %c0_5] : memref<1x128xf32, #tpu.memory_space<vmem>>, vector<1x128xf32>
    %5 = vector.shape_cast %4 : vector<1x128xf32> to vector<128xf32>
    %6 = vector.shape_cast %5 : vector<128xf32> to vector<1x128xf32>
    %7 = vector.broadcast %6 : vector<1x128xf32> to vector<256x128xf32>
    %8 = arith.addf %3, %7 : vector<256x128xf32>
    %cst_6 = arith.constant 5.000000e-01 : f32
    %9 = vector.broadcast %cst_6 : f32 to vector<256x128xf32>
    %10 = arith.mulf %9, %8 : vector<256x128xf32>
    %11 = math.tanh %10 : vector<256x128xf32>
    %cst_7 = arith.constant 5.000000e-01 : f32
    %12 = vector.broadcast %cst_7 : f32 to vector<256x128xf32>
    %13 = arith.mulf %12, %11 : vector<256x128xf32>
    %cst_8 = arith.constant 5.000000e-01 : f32
    %14 = vector.broadcast %cst_8 : f32 to vector<256x128xf32>
    %15 = arith.addf %13, %14 : vector<256x128xf32>
    %16 = arith.mulf %8, %15 : vector<256x128xf32>
    %cst_9 = arith.constant dense<0.000000e+00> : vector<128xf32>
    %17 = vector.multi_reduction <add>, %16, %cst_9 [0] : vector<256x128xf32> to vector<128xf32>
    %18 = vector.shape_cast %17 : vector<128xf32> to vector<1x128xf32>
    %cst_10 = arith.constant 2.560000e+02 : f32
    %19 = vector.broadcast %cst_10 : f32 to vector<1x128xf32>
    %20 = arith.divf %18, %19 : vector<1x128xf32>
    %21 = arith.truncf %20 : vector<1x128xf32> to vector<1x128xbf16>
    %c0_11 = arith.constant 0 : index
    %c0_12 = arith.constant 0 : index
    %22 = vector.load %arg4[%c0_11, %c0_12] : memref<128x1024xbf16, #tpu.memory_space<vmem>>, vector<128x1024xbf16>
    %cst_13 = arith.constant dense<0.000000e+00> : vector<1x1024xf32>
    %23 = tpu.matmul %21, %22, %cst_13 {dimension_numbers = #tpu.dot_dimension_numbers<[1], [0], [0], [1], [0, 0, 1, 1], [], []>} : vector<1x128xbf16>, vector<128x1024xbf16>, vector<1x1024xf32> -> vector<1x1024xf32>
    %c0_14 = arith.constant 0 : index
    %c0_15 = arith.constant 0 : index
    %24 = vector.load %arg5[%c0_14, %c0_15] : memref<1x1024xf32, #tpu.memory_space<vmem>>, vector<1x1024xf32>
    %25 = vector.shape_cast %24 : vector<1x1024xf32> to vector<1024xf32>
    %26 = vector.shape_cast %25 : vector<1024xf32> to vector<1x1024xf32>
    %27 = arith.addf %23, %26 : vector<1x1024xf32>
    %c0_16 = arith.constant 0 : index
    %c0_17 = arith.constant 0 : index
    %c0_18 = arith.constant 0 : index
    %28 = vector.load %arg6[%c0_16, %c0_17, %c0_18] : memref<1x1x1024xf32, #tpu.memory_space<vmem>>, vector<1x1x1024xf32>
    %29 = vector.shape_cast %28 : vector<1x1x1024xf32> to vector<1x1024xf32>
    %30 = vector.shape_cast %27 : vector<1x1024xf32> to vector<1x1x1024xf32>
    tpu.vector_store %arg6[%c0_16, %c0_17, %c0_18], %30 {strides = array<i32>} : memref<1x1x1024xf32, #tpu.memory_space<vmem>>, vector<1x1x1024xf32>,
    return
  }
  func.func @transform_0(%arg0: i32) -> (i32, i32, i32) {
    %c0_i32 = arith.constant 0 : i32
    %c0_i32_0 = arith.constant 0 : i32
    %c0_i32_1 = arith.constant 0 : i32
    return %arg0, %c0_i32, %c0_i32_0 : i32, i32, i32
  }
  func.func @transform_1(%arg0: i32) -> (i32, i32) {
    %c0_i32 = arith.constant 0 : i32
    %c0_i32_0 = arith.constant 0 : i32
    %c0_i32_1 = arith.constant 0 : i32
    return %c0_i32, %c0_i32_0 : i32, i32
  }
  func.func @transform_2(%arg0: i32) -> (i32, i32) {
    %c0_i32 = arith.constant 0 : i32
    %c0_i32_0 = arith.constant 0 : i32
    %c0_i32_1 = arith.constant 0 : i32
    return %c0_i32, %c0_i32_0 : i32, i32
  }
  func.func @transform_3(%arg0: i32) -> (i32, i32) {
    %c0_i32 = arith.constant 0 : i32
    %c0_i32_0 = arith.constant 0 : i32
    %c0_i32_1 = arith.constant 0 : i32
    return %c0_i32, %c0_i32_0 : i32, i32
  }
  func.func @transform_4(%arg0: i32) -> (i32, i32) {
    %c0_i32 = arith.constant 0 : i32
    %c0_i32_0 = arith.constant 0 : i32
    %c0_i32_1 = arith.constant 0 : i32
    return %c0_i32, %c0_i32_0 : i32, i32
  }
  func.func @transform_5(%arg0: i32) -> (i32, i32, i32) {
    %c0_i32 = arith.constant 0 : i32
    %c0_i32_0 = arith.constant 0 : i32
    %c0_i32_1 = arith.constant 0 : i32
    return %arg0, %c0_i32, %c0_i32_0 : i32, i32, i32
  }
}

module attributes {stable_mosaic.version = 11 : i64} {
  func.func @_stem_mbconv_kernel(%arg0: i32, %arg1: memref<1x256x128xbf16, #tpu.memory_space<vmem>>, %arg2: memref<128x128xbf16, #tpu.memory_space<vmem>>, %arg3: memref<1x128xf32, #tpu.memory_space<vmem>>, %arg4: memref<128x128xbf16, #tpu.memory_space<vmem>>, %arg5: memref<1x128xf32, #tpu.memory_space<vmem>>, %arg6: memref<9x1x128xbf16, #tpu.memory_space<vmem>>, %arg7: memref<1x128xf32, #tpu.memory_space<vmem>>, %arg8: memref<128x128xbf16, #tpu.memory_space<vmem>>, %arg9: memref<1x128xf32, #tpu.memory_space<vmem>>, %arg10: memref<128x128xbf16, #tpu.memory_space<vmem>>, %arg11: memref<1x128xf32, #tpu.memory_space<vmem>>, %arg12: memref<128x128xbf16, #tpu.memory_space<vmem>>, %arg13: memref<1x128xf32, #tpu.memory_space<vmem>>, %arg14: memref<1x256x128xbf16, #tpu.memory_space<vmem>>) attributes {dimension_semantics = [#tpu.dimension_semantics<parallel>], iteration_bounds = array<i64: 2>, scalar_prefetch = 0 : i64, scratch_operands = 0 : i64, tpu.core_type = #tpu.core_type<tc>, window_params = [{transform_indices = @transform_0, window_bounds = array<i64: 1, 256, 128>}, {pipeline_mode = #tpu.pipeline_mode<synchronous>, transform_indices = @transform_1, window_bounds = array<i64: 128, 128>}, {pipeline_mode = #tpu.pipeline_mode<synchronous>, transform_indices = @transform_2, window_bounds = array<i64: 1, 128>}, {pipeline_mode = #tpu.pipeline_mode<synchronous>, transform_indices = @transform_3, window_bounds = array<i64: 128, 128>}, {pipeline_mode = #tpu.pipeline_mode<synchronous>, transform_indices = @transform_4, window_bounds = array<i64: 1, 128>}, {pipeline_mode = #tpu.pipeline_mode<synchronous>, transform_indices = @transform_5, window_bounds = array<i64: 9, 1, 128>}, {pipeline_mode = #tpu.pipeline_mode<synchronous>, transform_indices = @transform_6, window_bounds = array<i64: 1, 128>}, {pipeline_mode = #tpu.pipeline_mode<synchronous>, transform_indices = @transform_7, window_bounds = array<i64: 128, 128>}, {pipeline_mode = #tpu.pipeline_mode<synchronous>, transform_indices = @transform_8, window_bounds = array<i64: 1, 128>}, {pipeline_mode = #tpu.pipeline_mode<synchronous>, transform_indices = @transform_9, window_bounds = array<i64: 128, 128>}, {pipeline_mode = #tpu.pipeline_mode<synchronous>, transform_indices = @transform_10, window_bounds = array<i64: 1, 128>}, {pipeline_mode = #tpu.pipeline_mode<synchronous>, transform_indices = @transform_11, window_bounds = array<i64: 128, 128>}, {pipeline_mode = #tpu.pipeline_mode<synchronous>, transform_indices = @transform_12, window_bounds = array<i64: 1, 128>}, {transform_indices = @transform_13, window_bounds = array<i64: 1, 256, 128>}]} {
    %c0 = arith.constant 0 : index
    %c0_0 = arith.constant 0 : index
    %c0_1 = arith.constant 0 : index
    %0 = vector.load %arg1[%c0, %c0_0, %c0_1] : memref<1x256x128xbf16, #tpu.memory_space<vmem>>, vector<1x256x128xbf16>
    %1 = vector.shape_cast %0 : vector<1x256x128xbf16> to vector<256x128xbf16>
    %c0_2 = arith.constant 0 : index
    %c0_3 = arith.constant 0 : index
    %2 = vector.load %arg2[%c0_2, %c0_3] : memref<128x128xbf16, #tpu.memory_space<vmem>>, vector<128x128xbf16>
    %cst = arith.constant dense<0.000000e+00> : vector<256x128xf32>
    %3 = tpu.matmul %1, %2, %cst {dimension_numbers = #tpu.dot_dimension_numbers<[1], [0], [0], [1], [0, 0, 1, 1], [], []>} : vector<256x128xbf16>, vector<128x128xbf16>, vector<256x128xf32> -> vector<256x128xf32>
    %c0_4 = arith.constant 0 : index
    %c0_5 = arith.constant 0 : index
    %4 = vector.load %arg3[%c0_4, %c0_5] : memref<1x128xf32, #tpu.memory_space<vmem>>, vector<1x128xf32>
    %5 = vector.shape_cast %4 : vector<1x128xf32> to vector<128xf32>
    %6 = vector.shape_cast %5 : vector<128xf32> to vector<1x128xf32>
    %7 = vector.broadcast %6 : vector<1x128xf32> to vector<256x128xf32>
    %8 = arith.addf %3, %7 : vector<256x128xf32>
    %cst_6 = arith.constant 5.000000e-01 : f32
    %9 = vector.broadcast %cst_6 : f32 to vector<256x128xf32>
    %10 = arith.mulf %9, %8 : vector<256x128xf32>
    %11 = math.tanh %10 : vector<256x128xf32>
    %cst_7 = arith.constant 5.000000e-01 : f32
    %12 = vector.broadcast %cst_7 : f32 to vector<256x128xf32>
    %13 = arith.mulf %12, %11 : vector<256x128xf32>
    %cst_8 = arith.constant 5.000000e-01 : f32
    %14 = vector.broadcast %cst_8 : f32 to vector<256x128xf32>
    %15 = arith.addf %13, %14 : vector<256x128xf32>
    %16 = arith.mulf %8, %15 : vector<256x128xf32>
    %17 = arith.truncf %16 : vector<256x128xf32> to vector<256x128xbf16>
    %c0_9 = arith.constant 0 : index
    %c0_10 = arith.constant 0 : index
    %18 = vector.load %arg4[%c0_9, %c0_10] : memref<128x128xbf16, #tpu.memory_space<vmem>>, vector<128x128xbf16>
    %cst_11 = arith.constant dense<0.000000e+00> : vector<256x128xf32>
    %19 = tpu.matmul %17, %18, %cst_11 {dimension_numbers = #tpu.dot_dimension_numbers<[1], [0], [0], [1], [0, 0, 1, 1], [], []>} : vector<256x128xbf16>, vector<128x128xbf16>, vector<256x128xf32> -> vector<256x128xf32>
    %c0_12 = arith.constant 0 : index
    %c0_13 = arith.constant 0 : index
    %20 = vector.load %arg5[%c0_12, %c0_13] : memref<1x128xf32, #tpu.memory_space<vmem>>, vector<1x128xf32>
    %21 = vector.shape_cast %20 : vector<1x128xf32> to vector<128xf32>
    %22 = vector.shape_cast %21 : vector<128xf32> to vector<1x128xf32>
    %23 = vector.broadcast %22 : vector<1x128xf32> to vector<256x128xf32>
    %24 = arith.addf %19, %23 : vector<256x128xf32>
    %cst_14 = arith.constant 5.000000e-01 : f32
    %25 = vector.broadcast %cst_14 : f32 to vector<256x128xf32>
    %26 = arith.mulf %25, %24 : vector<256x128xf32>
    %27 = math.tanh %26 : vector<256x128xf32>
    %cst_15 = arith.constant 5.000000e-01 : f32
    %28 = vector.broadcast %cst_15 : f32 to vector<256x128xf32>
    %29 = arith.mulf %28, %27 : vector<256x128xf32>
    %cst_16 = arith.constant 5.000000e-01 : f32
    %30 = vector.broadcast %cst_16 : f32 to vector<256x128xf32>
    %31 = arith.addf %29, %30 : vector<256x128xf32>
    %32 = arith.mulf %24, %31 : vector<256x128xf32>
    %33 = tpu.iota {dimensions = array<i32: 0>} : vector<256x1xi32>
    %34 = tpu.iota {dimensions = array<i32: 1>} : vector<16x16x1xi32>
    %35 = vector.shape_cast %34 : vector<16x16x1xi32> to vector<256x1xi32>
    %c0_i32 = arith.constant 0 : i32
    %36 = vector.broadcast %c0_i32 : i32 to vector<256x1xi32>
    %37 = arith.cmpi sgt, %35, %36 : vector<256x1xi32>
    %c15_i32 = arith.constant 15 : i32
    %38 = vector.broadcast %c15_i32 : i32 to vector<256x1xi32>
    %39 = arith.cmpi slt, %35, %38 : vector<256x1xi32>
    %c16_i32 = arith.constant 16 : i32
    %40 = vector.broadcast %c16_i32 : i32 to vector<256x1xi32>
    %41 = arith.cmpi sge, %33, %40 : vector<256x1xi32>
    %c240_i32 = arith.constant 240 : i32
    %42 = vector.broadcast %c240_i32 : i32 to vector<256x1xi32>
    %43 = arith.cmpi slt, %33, %42 : vector<256x1xi32>
    %c0_17 = arith.constant 0 : index
    %c0_18 = arith.constant 0 : index
    %c0_19 = arith.constant 0 : index
    %44 = vector.load %arg6[%c0_17, %c0_18, %c0_19] : memref<9x1x128xbf16, #tpu.memory_space<vmem>>, vector<9x1x128xbf16>
    %45 = arith.extf %44 : vector<9x1x128xbf16> to vector<9x1x128xf32>
    %c1_i32 = arith.constant 1 : i32
    %46 = tpu.dynamic_rotate %32 by %c1_i32 dim 0 : vector<256x128xf32>, i32 -> vector<256x128xf32>
    %cst_20 = arith.constant 0.000000e+00 : f32
    %47 = vector.shape_cast %37 : vector<256x1xi1> to vector<256x1xi1>
    %48 = vector.broadcast %47 : vector<256x1xi1> to vector<256x128xi1>
    %49 = vector.broadcast %cst_20 : f32 to vector<256x128xf32>
    %50 = arith.select %48, %46, %49 : vector<256x128xi1>, vector<256x128xf32>
    %c255_i32 = arith.constant 255 : i32
    %51 = tpu.dynamic_rotate %32 by %c255_i32 dim 0 : vector<256x128xf32>, i32 -> vector<256x128xf32>
    %cst_21 = arith.constant 0.000000e+00 : f32
    %52 = vector.shape_cast %39 : vector<256x1xi1> to vector<256x1xi1>
    %53 = vector.broadcast %52 : vector<256x1xi1> to vector<256x128xi1>
    %54 = vector.broadcast %cst_21 : f32 to vector<256x128xf32>
    %55 = arith.select %53, %51, %54 : vector<256x128xi1>, vector<256x128xf32>
    %56 = vector.extract_strided_slice %45 {offsets = [0, 0, 0], sizes = [1, 1, 128], strides = [1, 1, 1]} : vector<9x1x128xf32> to vector<1x1x128xf32>
    %57 = vector.shape_cast %56 : vector<1x1x128xf32> to vector<1x128xf32>
    %58 = vector.broadcast %57 : vector<1x128xf32> to vector<256x128xf32>
    %59 = arith.mulf %50, %58 : vector<256x128xf32>
    %60 = vector.extract_strided_slice %45 {offsets = [1, 0, 0], sizes = [1, 1, 128], strides = [1, 1, 1]} : vector<9x1x128xf32> to vector<1x1x128xf32>
    %61 = vector.shape_cast %60 : vector<1x1x128xf32> to vector<1x128xf32>
    %62 = vector.broadcast %61 : vector<1x128xf32> to vector<256x128xf32>
    %63 = arith.mulf %32, %62 : vector<256x128xf32>
    %64 = arith.addf %59, %63 : vector<256x128xf32>
    %65 = vector.extract_strided_slice %45 {offsets = [2, 0, 0], sizes = [1, 1, 128], strides = [1, 1, 1]} : vector<9x1x128xf32> to vector<1x1x128xf32>
    %66 = vector.shape_cast %65 : vector<1x1x128xf32> to vector<1x128xf32>
    %67 = vector.broadcast %66 : vector<1x128xf32> to vector<256x128xf32>
    %68 = arith.mulf %55, %67 : vector<256x128xf32>
    %69 = arith.addf %64, %68 : vector<256x128xf32>
    %70 = vector.extract_strided_slice %45 {offsets = [3, 0, 0], sizes = [1, 1, 128], strides = [1, 1, 1]} : vector<9x1x128xf32> to vector<1x1x128xf32>
    %71 = vector.shape_cast %70 : vector<1x1x128xf32> to vector<1x128xf32>
    %72 = vector.broadcast %71 : vector<1x128xf32> to vector<256x128xf32>
    %73 = arith.mulf %50, %72 : vector<256x128xf32>
    %74 = vector.extract_strided_slice %45 {offsets = [4, 0, 0], sizes = [1, 1, 128], strides = [1, 1, 1]} : vector<9x1x128xf32> to vector<1x1x128xf32>
    %75 = vector.shape_cast %74 : vector<1x1x128xf32> to vector<1x128xf32>
    %76 = vector.broadcast %75 : vector<1x128xf32> to vector<256x128xf32>
    %77 = arith.mulf %32, %76 : vector<256x128xf32>
    %78 = arith.addf %73, %77 : vector<256x128xf32>
    %79 = vector.extract_strided_slice %45 {offsets = [5, 0, 0], sizes = [1, 1, 128], strides = [1, 1, 1]} : vector<9x1x128xf32> to vector<1x1x128xf32>
    %80 = vector.shape_cast %79 : vector<1x1x128xf32> to vector<1x128xf32>
    %81 = vector.broadcast %80 : vector<1x128xf32> to vector<256x128xf32>
    %82 = arith.mulf %55, %81 : vector<256x128xf32>
    %83 = arith.addf %78, %82 : vector<256x128xf32>
    %84 = vector.extract_strided_slice %45 {offsets = [6, 0, 0], sizes = [1, 1, 128], strides = [1, 1, 1]} : vector<9x1x128xf32> to vector<1x1x128xf32>
    %85 = vector.shape_cast %84 : vector<1x1x128xf32> to vector<1x128xf32>
    %86 = vector.broadcast %85 : vector<1x128xf32> to vector<256x128xf32>
    %87 = arith.mulf %50, %86 : vector<256x128xf32>
    %88 = vector.extract_strided_slice %45 {offsets = [7, 0, 0], sizes = [1, 1, 128], strides = [1, 1, 1]} : vector<9x1x128xf32> to vector<1x1x128xf32>
    %89 = vector.shape_cast %88 : vector<1x1x128xf32> to vector<1x128xf32>
    %90 = vector.broadcast %89 : vector<1x128xf32> to vector<256x128xf32>
    %91 = arith.mulf %32, %90 : vector<256x128xf32>
    %92 = arith.addf %87, %91 : vector<256x128xf32>
    %93 = vector.extract_strided_slice %45 {offsets = [8, 0, 0], sizes = [1, 1, 128], strides = [1, 1, 1]} : vector<9x1x128xf32> to vector<1x1x128xf32>
    %94 = vector.shape_cast %93 : vector<1x1x128xf32> to vector<1x128xf32>
    %95 = vector.broadcast %94 : vector<1x128xf32> to vector<256x128xf32>
    %96 = arith.mulf %55, %95 : vector<256x128xf32>
    %97 = arith.addf %92, %96 : vector<256x128xf32>
    %c0_22 = arith.constant 0 : index
    %c0_23 = arith.constant 0 : index
    %98 = vector.load %arg7[%c0_22, %c0_23] : memref<1x128xf32, #tpu.memory_space<vmem>>, vector<1x128xf32>
    %99 = vector.shape_cast %98 : vector<1x128xf32> to vector<128xf32>
    %100 = vector.shape_cast %99 : vector<128xf32> to vector<1x128xf32>
    %101 = vector.broadcast %100 : vector<1x128xf32> to vector<256x128xf32>
    %102 = arith.addf %83, %101 : vector<256x128xf32>
    %c16_i32_24 = arith.constant 16 : i32
    %103 = tpu.dynamic_rotate %69 by %c16_i32_24 dim 0 : vector<256x128xf32>, i32 -> vector<256x128xf32>
    %cst_25 = arith.constant 0.000000e+00 : f32
    %104 = vector.shape_cast %41 : vector<256x1xi1> to vector<256x1xi1>
    %105 = vector.broadcast %104 : vector<256x1xi1> to vector<256x128xi1>
    %106 = vector.broadcast %cst_25 : f32 to vector<256x128xf32>
    %107 = arith.select %105, %103, %106 : vector<256x128xi1>, vector<256x128xf32>
    %108 = arith.addf %102, %107 : vector<256x128xf32>
    %c240_i32_26 = arith.constant 240 : i32
    %109 = tpu.dynamic_rotate %97 by %c240_i32_26 dim 0 : vector<256x128xf32>, i32 -> vector<256x128xf32>
    %cst_27 = arith.constant 0.000000e+00 : f32
    %110 = vector.shape_cast %43 : vector<256x1xi1> to vector<256x1xi1>
    %111 = vector.broadcast %110 : vector<256x1xi1> to vector<256x128xi1>
    %112 = vector.broadcast %cst_27 : f32 to vector<256x128xf32>
    %113 = arith.select %111, %109, %112 : vector<256x128xi1>, vector<256x128xf32>
    %114 = arith.addf %108, %113 : vector<256x128xf32>
    %cst_28 = arith.constant 5.000000e-01 : f32
    %115 = vector.broadcast %cst_28 : f32 to vector<256x128xf32>
    %116 = arith.mulf %115, %114 : vector<256x128xf32>
    %117 = math.tanh %116 : vector<256x128xf32>
    %cst_29 = arith.constant 5.000000e-01 : f32
    %118 = vector.broadcast %cst_29 : f32 to vector<256x128xf32>
    %119 = arith.mulf %118, %117 : vector<256x128xf32>
    %cst_30 = arith.constant 5.000000e-01 : f32
    %120 = vector.broadcast %cst_30 : f32 to vector<256x128xf32>
    %121 = arith.addf %119, %120 : vector<256x128xf32>
    %122 = arith.mulf %114, %121 : vector<256x128xf32>
    %123 = vector.shape_cast %122 : vector<256x128xf32> to vector<16x16x128xf32>
    %124 = vector.extract_strided_slice %123 {offsets = [0, 0, 0], sizes = [8, 8, 128], strides = [1, 1, 1]} : vector<16x16x128xf32> to vector<8x8x128xf32>
    %125 = vector.extract_strided_slice %123 {offsets = [0, 8, 0], sizes = [8, 8, 128], strides = [1, 1, 1]} : vector<16x16x128xf32> to vector<8x8x128xf32>
    %126 = vector.extract_strided_slice %123 {offsets = [8, 0, 0], sizes = [8, 8, 128], strides = [1, 1, 1]} : vector<16x16x128xf32> to vector<8x8x128xf32>
    %127 = vector.extract_strided_slice %123 {offsets = [8, 8, 0], sizes = [8, 8, 128], strides = [1, 1, 1]} : vector<16x16x128xf32> to vector<8x8x128xf32>
    %cst_31 = arith.constant dense<0.000000e+00> : vector<128xf32>
    %128 = vector.multi_reduction <add>, %124, %cst_31 [0, 1] : vector<8x8x128xf32> to vector<128xf32>
    %cst_32 = arith.constant 6.400000e+01 : f32
    %129 = vector.broadcast %cst_32 : f32 to vector<128xf32>
    %130 = arith.divf %128, %129 : vector<128xf32>
    %131 = vector.shape_cast %130 : vector<128xf32> to vector<1x128xf32>
    %cst_33 = arith.constant dense<0.000000e+00> : vector<128xf32>
    %132 = vector.multi_reduction <add>, %125, %cst_33 [0, 1] : vector<8x8x128xf32> to vector<128xf32>
    %cst_34 = arith.constant 6.400000e+01 : f32
    %133 = vector.broadcast %cst_34 : f32 to vector<128xf32>
    %134 = arith.divf %132, %133 : vector<128xf32>
    %135 = vector.shape_cast %134 : vector<128xf32> to vector<1x128xf32>
    %cst_35 = arith.constant dense<0.000000e+00> : vector<128xf32>
    %136 = vector.multi_reduction <add>, %126, %cst_35 [0, 1] : vector<8x8x128xf32> to vector<128xf32>
    %cst_36 = arith.constant 6.400000e+01 : f32
    %137 = vector.broadcast %cst_36 : f32 to vector<128xf32>
    %138 = arith.divf %136, %137 : vector<128xf32>
    %139 = vector.shape_cast %138 : vector<128xf32> to vector<1x128xf32>
    %cst_37 = arith.constant dense<0.000000e+00> : vector<128xf32>
    %140 = vector.multi_reduction <add>, %127, %cst_37 [0, 1] : vector<8x8x128xf32> to vector<128xf32>
    %cst_38 = arith.constant 6.400000e+01 : f32
    %141 = vector.broadcast %cst_38 : f32 to vector<128xf32>
    %142 = arith.divf %140, %141 : vector<128xf32>
    %143 = vector.shape_cast %142 : vector<128xf32> to vector<1x128xf32>
    %cst_39 = arith.constant dense<0xFF800000> : vector<128xf32>
    %144 = vector.multi_reduction <maximumf>, %124, %cst_39 [0, 1] : vector<8x8x128xf32> to vector<128xf32>
    %145 = vector.shape_cast %144 : vector<128xf32> to vector<1x128xf32>
    %cst_40 = arith.constant dense<0xFF800000> : vector<128xf32>
    %146 = vector.multi_reduction <maximumf>, %125, %cst_40 [0, 1] : vector<8x8x128xf32> to vector<128xf32>
    %147 = vector.shape_cast %146 : vector<128xf32> to vector<1x128xf32>
    %cst_41 = arith.constant dense<0xFF800000> : vector<128xf32>
    %148 = vector.multi_reduction <maximumf>, %126, %cst_41 [0, 1] : vector<8x8x128xf32> to vector<128xf32>
    %149 = vector.shape_cast %148 : vector<128xf32> to vector<1x128xf32>
    %cst_42 = arith.constant dense<0xFF800000> : vector<128xf32>
    %150 = vector.multi_reduction <maximumf>, %127, %cst_42 [0, 1] : vector<8x8x128xf32> to vector<128xf32>
    %151 = vector.shape_cast %150 : vector<128xf32> to vector<1x128xf32>
    %152 = tpu.concatenate %131, %135, %139, %143, %145, %147, %149, %151 in 0 : vector<1x128xf32>, vector<1x128xf32>, vector<1x128xf32>, vector<1x128xf32>, vector<1x128xf32>, vector<1x128xf32>, vector<1x128xf32>, vector<1x128xf32> -> vector<8x128xf32>
    %153 = arith.truncf %152 : vector<8x128xf32> to vector<8x128xbf16>
    %c0_43 = arith.constant 0 : index
    %c0_44 = arith.constant 0 : index
    %154 = vector.load %arg8[%c0_43, %c0_44] : memref<128x128xbf16, #tpu.memory_space<vmem>>, vector<128x128xbf16>
    %cst_45 = arith.constant dense<0.000000e+00> : vector<8x128xf32>
    %155 = tpu.matmul %153, %154, %cst_45 {dimension_numbers = #tpu.dot_dimension_numbers<[1], [0], [0], [1], [0, 0, 1, 1], [], []>} : vector<8x128xbf16>, vector<128x128xbf16>, vector<8x128xf32> -> vector<8x128xf32>
    %c0_46 = arith.constant 0 : index
    %c0_47 = arith.constant 0 : index
    %156 = vector.load %arg9[%c0_46, %c0_47] : memref<1x128xf32, #tpu.memory_space<vmem>>, vector<1x128xf32>
    %157 = vector.shape_cast %156 : vector<1x128xf32> to vector<128xf32>
    %158 = vector.shape_cast %157 : vector<128xf32> to vector<1x128xf32>
    %159 = vector.broadcast %158 : vector<1x128xf32> to vector<8x128xf32>
    %160 = arith.addf %155, %159 : vector<8x128xf32>
    %cst_48 = arith.constant 3.000000e+00 : f32
    %161 = vector.broadcast %cst_48 : f32 to vector<8x128xf32>
    %162 = arith.addf %160, %161 : vector<8x128xf32>
    %cst_49 = arith.constant 0.000000e+00 : f32
    %cst_50 = arith.constant 6.000000e+00 : f32
    %163 = vector.broadcast %cst_49 : f32 to vector<8x128xf32>
    %164 = arith.maximumf %163, %162 : vector<8x128xf32>
    %165 = vector.broadcast %cst_50 : f32 to vector<8x128xf32>
    %166 = arith.minimumf %165, %164 : vector<8x128xf32>
    %167 = arith.mulf %160, %166 : vector<8x128xf32>
    %cst_51 = arith.constant 0.166666672 : f32
    %168 = vector.broadcast %cst_51 : f32 to vector<8x128xf32>
    %169 = arith.mulf %167, %168 : vector<8x128xf32>
    %170 = arith.truncf %169 : vector<8x128xf32> to vector<8x128xbf16>
    %c0_52 = arith.constant 0 : index
    %c0_53 = arith.constant 0 : index
    %171 = vector.load %arg10[%c0_52, %c0_53] : memref<128x128xbf16, #tpu.memory_space<vmem>>, vector<128x128xbf16>
    %cst_54 = arith.constant dense<0.000000e+00> : vector<8x128xf32>
    %172 = tpu.matmul %170, %171, %cst_54 {dimension_numbers = #tpu.dot_dimension_numbers<[1], [0], [0], [1], [0, 0, 1, 1], [], []>} : vector<8x128xbf16>, vector<128x128xbf16>, vector<8x128xf32> -> vector<8x128xf32>
    %c0_55 = arith.constant 0 : index
    %c0_56 = arith.constant 0 : index
    %173 = vector.load %arg11[%c0_55, %c0_56] : memref<1x128xf32, #tpu.memory_space<vmem>>, vector<1x128xf32>
    %174 = vector.shape_cast %173 : vector<1x128xf32> to vector<128xf32>
    %175 = vector.shape_cast %174 : vector<128xf32> to vector<1x128xf32>
    %176 = vector.broadcast %175 : vector<1x128xf32> to vector<8x128xf32>
    %177 = arith.addf %172, %176 : vector<8x128xf32>
    %178 = vector.extract_strided_slice %177 {offsets = [0, 0], sizes = [4, 128], strides = [1, 1]} : vector<8x128xf32> to vector<4x128xf32>
    %179 = vector.extract_strided_slice %177 {offsets = [4, 0], sizes = [4, 128], strides = [1, 1]} : vector<8x128xf32> to vector<4x128xf32>
    %180 = arith.addf %178, %179 : vector<4x128xf32>
    %cst_57 = arith.constant 3.000000e+00 : f32
    %181 = vector.broadcast %cst_57 : f32 to vector<4x128xf32>
    %182 = arith.addf %180, %181 : vector<4x128xf32>
    %cst_58 = arith.constant 0.000000e+00 : f32
    %cst_59 = arith.constant 6.000000e+00 : f32
    %183 = vector.broadcast %cst_58 : f32 to vector<4x128xf32>
    %184 = arith.maximumf %183, %182 : vector<4x128xf32>
    %185 = vector.broadcast %cst_59 : f32 to vector<4x128xf32>
    %186 = arith.minimumf %185, %184 : vector<4x128xf32>
    %cst_60 = arith.constant 0.166666672 : f32
    %187 = vector.broadcast %cst_60 : f32 to vector<4x128xf32>
    %188 = arith.mulf %186, %187 : vector<4x128xf32>
    %c128_i32 = arith.constant 128 : i32
    %189 = vector.broadcast %c128_i32 : i32 to vector<256x1xi32>
    %190 = arith.cmpi slt, %33, %189 : vector<256x1xi32>
    %c8_i32 = arith.constant 8 : i32
    %191 = vector.broadcast %c8_i32 : i32 to vector<256x1xi32>
    %192 = arith.cmpi slt, %35, %191 : vector<256x1xi32>
    %193 = vector.extract_strided_slice %188 {offsets = [0, 0], sizes = [1, 128], strides = [1, 1]} : vector<4x128xf32> to vector<1x128xf32>
    %194 = vector.extract_strided_slice %188 {offsets = [1, 0], sizes = [1, 128], strides = [1, 1]} : vector<4x128xf32> to vector<1x128xf32>
    %195 = vector.shape_cast %192 : vector<256x1xi1> to vector<256x1xi1>
    %196 = vector.broadcast %195 : vector<256x1xi1> to vector<256x128xi1>
    %197 = vector.shape_cast %193 : vector<1x128xf32> to vector<1x128xf32>
    %198 = vector.broadcast %197 : vector<1x128xf32> to vector<256x128xf32>
    %199 = vector.shape_cast %194 : vector<1x128xf32> to vector<1x128xf32>
    %200 = vector.broadcast %199 : vector<1x128xf32> to vector<256x128xf32>
    %201 = arith.select %196, %198, %200 : vector<256x128xi1>, vector<256x128xf32>
    %202 = vector.extract_strided_slice %188 {offsets = [2, 0], sizes = [1, 128], strides = [1, 1]} : vector<4x128xf32> to vector<1x128xf32>
    %203 = vector.extract_strided_slice %188 {offsets = [3, 0], sizes = [1, 128], strides = [1, 1]} : vector<4x128xf32> to vector<1x128xf32>
    %204 = vector.shape_cast %192 : vector<256x1xi1> to vector<256x1xi1>
    %205 = vector.broadcast %204 : vector<256x1xi1> to vector<256x128xi1>
    %206 = vector.shape_cast %202 : vector<1x128xf32> to vector<1x128xf32>
    %207 = vector.broadcast %206 : vector<1x128xf32> to vector<256x128xf32>
    %208 = vector.shape_cast %203 : vector<1x128xf32> to vector<1x128xf32>
    %209 = vector.broadcast %208 : vector<1x128xf32> to vector<256x128xf32>
    %210 = arith.select %205, %207, %209 : vector<256x128xi1>, vector<256x128xf32>
    %211 = vector.shape_cast %190 : vector<256x1xi1> to vector<256x1xi1>
    %212 = vector.broadcast %211 : vector<256x1xi1> to vector<256x128xi1>
    %213 = arith.select %212, %201, %210 : vector<256x128xi1>, vector<256x128xf32>
    %214 = arith.mulf %122, %213 : vector<256x128xf32>
    %215 = arith.truncf %214 : vector<256x128xf32> to vector<256x128xbf16>
    %c0_61 = arith.constant 0 : index
    %c0_62 = arith.constant 0 : index
    %216 = vector.load %arg12[%c0_61, %c0_62] : memref<128x128xbf16, #tpu.memory_space<vmem>>, vector<128x128xbf16>
    %cst_63 = arith.constant dense<0.000000e+00> : vector<256x128xf32>
    %217 = tpu.matmul %215, %216, %cst_63 {dimension_numbers = #tpu.dot_dimension_numbers<[1], [0], [0], [1], [0, 0, 1, 1], [], []>} : vector<256x128xbf16>, vector<128x128xbf16>, vector<256x128xf32> -> vector<256x128xf32>
    %c0_64 = arith.constant 0 : index
    %c0_65 = arith.constant 0 : index
    %218 = vector.load %arg13[%c0_64, %c0_65] : memref<1x128xf32, #tpu.memory_space<vmem>>, vector<1x128xf32>
    %219 = vector.shape_cast %218 : vector<1x128xf32> to vector<128xf32>
    %220 = vector.shape_cast %219 : vector<128xf32> to vector<1x128xf32>
    %221 = vector.broadcast %220 : vector<1x128xf32> to vector<256x128xf32>
    %222 = arith.addf %217, %221 : vector<256x128xf32>
    %223 = arith.addf %222, %16 : vector<256x128xf32>
    %224 = arith.truncf %223 : vector<256x128xf32> to vector<256x128xbf16>
    %c0_66 = arith.constant 0 : index
    %c0_67 = arith.constant 0 : index
    %c0_68 = arith.constant 0 : index
    %225 = vector.load %arg14[%c0_66, %c0_67, %c0_68] : memref<1x256x128xbf16, #tpu.memory_space<vmem>>, vector<1x256x128xbf16>
    %226 = vector.shape_cast %225 : vector<1x256x128xbf16> to vector<256x128xbf16>
    %227 = vector.shape_cast %224 : vector<256x128xbf16> to vector<1x256x128xbf16>
    tpu.vector_store %arg14[%c0_66, %c0_67, %c0_68], %227 {strides = array<i32>} : memref<1x256x128xbf16, #tpu.memory_space<vmem>>, vector<1x256x128xbf16>,
    return
  }
  func.func @transform_0(%arg0: i32) -> (i32, i32, i32) {
    %c0_i32 = arith.constant 0 : i32
    %c0_i32_0 = arith.constant 0 : i32
    %c0_i32_1 = arith.constant 0 : i32
    return %arg0, %c0_i32, %c0_i32_0 : i32, i32, i32
  }
  func.func @transform_1(%arg0: i32) -> (i32, i32) {
    %c0_i32 = arith.constant 0 : i32
    %c0_i32_0 = arith.constant 0 : i32
    %c0_i32_1 = arith.constant 0 : i32
    return %c0_i32, %c0_i32_0 : i32, i32
  }
  func.func @transform_2(%arg0: i32) -> (i32, i32) {
    %c0_i32 = arith.constant 0 : i32
    %c0_i32_0 = arith.constant 0 : i32
    %c0_i32_1 = arith.constant 0 : i32
    return %c0_i32, %c0_i32_0 : i32, i32
  }
  func.func @transform_3(%arg0: i32) -> (i32, i32) {
    %c0_i32 = arith.constant 0 : i32
    %c0_i32_0 = arith.constant 0 : i32
    %c0_i32_1 = arith.constant 0 : i32
    return %c0_i32, %c0_i32_0 : i32, i32
  }
  func.func @transform_4(%arg0: i32) -> (i32, i32) {
    %c0_i32 = arith.constant 0 : i32
    %c0_i32_0 = arith.constant 0 : i32
    %c0_i32_1 = arith.constant 0 : i32
    return %c0_i32, %c0_i32_0 : i32, i32
  }
  func.func @transform_5(%arg0: i32) -> (i32, i32, i32) {
    %c0_i32 = arith.constant 0 : i32
    %c0_i32_0 = arith.constant 0 : i32
    %c0_i32_1 = arith.constant 0 : i32
    %c0_i32_2 = arith.constant 0 : i32
    return %c0_i32, %c0_i32_0, %c0_i32_1 : i32, i32, i32
  }
  func.func @transform_6(%arg0: i32) -> (i32, i32) {
    %c0_i32 = arith.constant 0 : i32
    %c0_i32_0 = arith.constant 0 : i32
    %c0_i32_1 = arith.constant 0 : i32
    return %c0_i32, %c0_i32_0 : i32, i32
  }
  func.func @transform_7(%arg0: i32) -> (i32, i32) {
    %c0_i32 = arith.constant 0 : i32
    %c0_i32_0 = arith.constant 0 : i32
    %c0_i32_1 = arith.constant 0 : i32
    return %c0_i32, %c0_i32_0 : i32, i32
  }
  func.func @transform_8(%arg0: i32) -> (i32, i32) {
    %c0_i32 = arith.constant 0 : i32
    %c0_i32_0 = arith.constant 0 : i32
    %c0_i32_1 = arith.constant 0 : i32
    return %c0_i32, %c0_i32_0 : i32, i32
  }
  func.func @transform_9(%arg0: i32) -> (i32, i32) {
    %c0_i32 = arith.constant 0 : i32
    %c0_i32_0 = arith.constant 0 : i32
    %c0_i32_1 = arith.constant 0 : i32
    return %c0_i32, %c0_i32_0 : i32, i32
  }
  func.func @transform_10(%arg0: i32) -> (i32, i32) {
    %c0_i32 = arith.constant 0 : i32
    %c0_i32_0 = arith.constant 0 : i32
    %c0_i32_1 = arith.constant 0 : i32
    return %c0_i32, %c0_i32_0 : i32, i32
  }
  func.func @transform_11(%arg0: i32) -> (i32, i32) {
    %c0_i32 = arith.constant 0 : i32
    %c0_i32_0 = arith.constant 0 : i32
    %c0_i32_1 = arith.constant 0 : i32
    return %c0_i32, %c0_i32_0 : i32, i32
  }
  func.func @transform_12(%arg0: i32) -> (i32, i32) {
    %c0_i32 = arith.constant 0 : i32
    %c0_i32_0 = arith.constant 0 : i32
    %c0_i32_1 = arith.constant 0 : i32
    return %c0_i32, %c0_i32_0 : i32, i32
  }
  func.func @transform_13(%arg0: i32) -> (i32, i32, i32) {
    %c0_i32 = arith.constant 0 : i32
    %c0_i32_0 = arith.constant 0 : i32
    %c0_i32_1 = arith.constant 0 : i32
    return %arg0, %c0_i32, %c0_i32_0 : i32, i32, i32
  }
}

</mosaic_0001>

<bundles_post_ra>
// kernel: efficientnetv2_small_quadrant_forward.3
= control target key start
LH: loop header
LB: loop body
LE: loop exit
PB: predicated region body
PF: predicated region fallthrough
CT: control target
= control target key end

     0   :  { %s1796_s18 = smov 0   ;;  %s2232_s0 = inlined_call_operand.vmem [shape: bf16[2,256,128], index: 0, kind: input, shape index: {}]   ;;  %s2233_s1 = inlined_call_operand.vmem [shape: bf16[128,128], index: 1, kind: input, shape index: {}]   ;;  %s2234_s2 = inlined_call_operand.vmem [shape: f32[1,128], index: 2, kind: input, shape index: {}]   ;;  %s2235_s3 = inlined_call_operand.vmem [shape: bf16[128,1024], index: 3, kind: input, shape index: {}]   ;;  %s2236_s4 = inlined_call_operand.vmem [shape: f32[1,1024], index: 4, kind: input, shape index: {}]   ;;  %s2237_s5 = inlined_call_operand.vmem [shape: f32[2,1,1024], index: 5, kind: output, shape index: {}]  }
   0x1 LB: > { %s1486_s19 = sadd.s32 4294967295, %s1762_s18   ;;  %p1490_p0 = scmp.ge.s32.totalorder %s1762_s18, 1  ;;  %s1762_s18 = sphi %s1796_s18, %s15_s18  }
   0x2   : > { %p187_p1 = scmp.lt.s32.totalorder %s1762_s18, 3 }
   0x4   : > { %p188_p2 = pnand %p1490_p0, %p187_p1 }
   0x5   : > { %p214_p3 = scmp.lt.s32.totalorder (!%p188_p2), %s1486_s19, 1 }
   0x6   : > { %191 = sbr.rel (%p188_p2) target bundleno = 618 (0x26a), region = 40 }
   0xb   : > { %v1668_v0 = vld [vmem:[%s2233_s1 + $0x38] sm:$0xff]   ;;  %v1669_v1 = vld [vmem:[%s2233_s1 + $0x30] sm:$0xff]   ;;  %s2239_s19 = smov (!%p214_p3, %s1486_s19), 1  ;;  %v1670_v2 = vld [vmem:[%s2233_s1 + $0x28] sm:$0xff]  }
   0xc   : > { %1610 = vmatprep.subr.bf16.mxu0 %v1668_v0  ;;  %s1585_s26 = sshll.u32 %s2239_s19, 7  ;;  %v1671_v3 = vld [vmem:[%s2233_s1 + $0x20] sm:$0xff]   ;;  %v1672_v5 = vld [vmem:[%s2233_s1 + $0x18] sm:$0xff]   ;;  %v1673_v6 = vld [vmem:[%s2233_s1 + $0x10] sm:$0xff]   ;;  %s1493_s9 = sshll.u32 %s2239_s19, 3 }
   0xd   : > { %1611 = vmatpush3.bf16.msra.mxu0 %v1668_v0  ;;  %s1819_s29 = scalar_lea.vmem %s2232_s0, %s1585_s26  ;;  %v1674_v7 = vld [vmem:[%s2233_s1 + $0x8] sm:$0xff]   ;;  %v1675_v8 = vld [vmem:[%s2233_s1] sm:$0xff]   ;;  %v842_v27 = vld [vmem:[%s2235_s3 + $0x1d0] sm:$0xff]  ;;  %s222_s12 = scalar_lea.vmem %s2237_s5, %s1493_s9 }
   0xe   : > { %1612 = vmatprep.subr.bf16.mxu0 %v1669_v1  ;;  %v1676_v4 = vld [vmem:[%s1819_s29] sm:$0xff]   ;;  %v1677_v9 = vld [vmem:[%s1819_s29 + $0x8] sm:$0xff]   ;;  %v1678_v10 = vld [vmem:[%s1819_s29 + $0x10] sm:$0xff]  }
   0xf   : > { %1626 = vmatprep.mubr.bf16.mxu0 %v1676_v4  ;;  %v1679_v11 = vld [vmem:[%s1819_s29 + $0x18] sm:$0xff]   ;;  %v1680_v12 = vld [vmem:[%s1819_s29 + $0x20] sm:$0xff]   ;;  %v1681_v13 = vld [vmem:[%s1819_s29 + $0x28] sm:$0xff]  }
  0x10   : > { %v1682_v14 = vld [vmem:[%s1819_s29 + $0x30] sm:$0xff]   ;;  %v1683_v15 = vld [vmem:[%s1819_s29 + $0x38] sm:$0xff]   ;;  %v1684_v16 = vld [vmem:[%s1819_s29 + $0x40] sm:$0xff]  }
  0x11   : > { %1613 = vmatpush3.bf16.msra.mxu0 %v1669_v1  ;;  %v1685_v17 = vld [vmem:[%s1819_s29 + $0x48] sm:$0xff]   ;;  %v1686_v18 = vld [vmem:[%s1819_s29 + $0x50] sm:$0xff]   ;;  %v1687_v19 = vld [vmem:[%s1819_s29 + $0x58] sm:$0xff]  }
  0x12   : > { %1614 = vmatprep.subr.bf16.mxu0 %v1670_v2  ;;  %v1688_v20 = vld [vmem:[%s1819_s29 + $0x60] sm:$0xff]   ;;  %v1689_v21 = vld [vmem:[%s1819_s29 + $0x68] sm:$0xff]   ;;  %v1690_v22 = vld [vmem:[%s1819_s29 + $0x70] sm:$0xff]  }
  0x13   : > { %v1691_v23 = vld [vmem:[%s1819_s29 + $0x78] sm:$0xff]   ;;  %v840_v24 = vld [vmem:[%s2235_s3 + $0x1c0] sm:$0xff]  ;;  %v846_v28 = vld [vmem:[%s2235_s3 + $0x1f0] sm:$0xff] }
  0x14   : > { %v844_v25 = vld [vmem:[%s2235_s3 + $0x1e0] sm:$0xff]  ;;  %v1580_v30 = vcombine.high %v842_v27, %v846_v28  ;;  %v1579_v31 = vcombine.low %v842_v27, %v846_v28  ;;  %v834_v35 = vld [vmem:[%s2235_s3 + $0x190] sm:$0xff] }
  0x15   : > { %1615 = vmatpush3.bf16.msra.mxu0 %v1670_v2  ;;  %v1576_v26 = vcombine.high %v840_v24, %v844_v25  ;;  %v1575_v29 = vcombine.low %v840_v24, %v844_v25  ;;  %v832_v32 = vld [vmem:[%s2235_s3 + $0x180] sm:$0xff]  ;;  %v838_v36 = vld [vmem:[%s2235_s3 + $0x1b0] sm:$0xff] }
  0x16   : > { %1616 = vmatprep.subr.bf16.mxu0 %v1671_v3  ;;  %v836_v33 = vld [vmem:[%s2235_s3 + $0x1a0] sm:$0xff]  ;;  %v1572_v38 = vcombine.high %v834_v35, %v838_v36  ;;  %v1571_v39 = vcombine.low %v834_v35, %v838_v36  ;;  %v826_v43 = vld [vmem:[%s2235_s3 + $0x150] sm:$0xff] }
  0x17   : > { %1210 = vmatprep.subr.bf16.mxu1 %v1576_v26  ;;  %v1568_v34 = vcombine.high %v832_v32, %v836_v33  ;;  %v1567_v37 = vcombine.low %v832_v32, %v836_v33  ;;  %v824_v40 = vld [vmem:[%s2235_s3 + $0x140] sm:$0xff]  ;;  %v830_v44 = vld [vmem:[%s2235_s3 + $0x170] sm:$0xff] }
  0x18   : > { %1211 = vmatpush1.bf16.msra.mxu1 %v1575_v29  ;;  %v828_v41 = vld [vmem:[%s2235_s3 + $0x160] sm:$0xff]  ;;  %v1564_v46 = vcombine.high %v826_v43, %v830_v44  ;;  %v1563_v47 = vcombine.low %v826_v43, %v830_v44  ;;  %v818_v51 = vld [vmem:[%s2235_s3 + $0x110] sm:$0xff] }
  0x19   : > { %1617 = vmatpush3.bf16.msra.mxu0 %v1671_v3  ;;  %1212 = vmatprep.subr.bf16.mxu1 %v1568_v34  ;;  %v1560_v42 = vcombine.high %v824_v40, %v828_v41  ;;  %v1559_v45 = vcombine.low %v824_v40, %v828_v41  ;;  %v816_v48 = vld [vmem:[%s2235_s3 + $0x100] sm:$0xff]  ;;  %v822_v52 = vld [vmem:[%s2235_s3 + $0x130] sm:$0xff] }
  0x1a   : > { %1618 = vmatprep.subr.bf16.mxu0 %v1672_v5  ;;  %v820_v49 = vld [vmem:[%s2235_s3 + $0x120] sm:$0xff]  ;;  %v1556_v54 = vcombine.high %v818_v51, %v822_v52  ;;  %v1555_v55 = vcombine.low %v818_v51, %v822_v52  ;;  %v810_v59 = vld [vmem:[%s2235_s3 + $0xd0] sm:$0xff] }
  0x1b   : > { %v1552_v50 = vcombine.high %v816_v48, %v820_v49  ;;  %v1551_v53 = vcombine.low %v816_v48, %v820_v49  ;;  %v808_v56 = vld [vmem:[%s2235_s3 + $0xc0] sm:$0xff]  ;;  %v814_v60 = vld [vmem:[%s2235_s3 + $0xf0] sm:$0xff] }
  0x1c   : > { %1213 = vmatpush1.bf16.msra.mxu1 %v1567_v37  ;;  %v812_v57 = vld [vmem:[%s2235_s3 + $0xe0] sm:$0xff]  ;;  %v1548_v62 = vcombine.high %v810_v59, %v814_v60  ;;  %v1547_v63 = vcombine.low %v810_v59, %v814_v60  ;;  %v802_v3 = vld [vmem:[%s2235_s3 + $0x90] sm:$0xff] }
  0x1d   : > { %1619 = vmatpush3.bf16.msra.mxu0 %v1672_v5  ;;  %1214 = vmatprep.subr.bf16.mxu1 %v1560_v42  ;;  %v1544_v58 = vcombine.high %v808_v56, %v812_v57  ;;  %v1543_v61 = vcombine.low %v808_v56, %v812_v57  ;;  %v800_v0 = vld [vmem:[%s2235_s3 + $0x80] sm:$0xff]  ;;  %v806_v4 = vld [vmem:[%s2235_s3 + $0xb0] sm:$0xff] }
  0x1e   : > { %1620 = vmatprep.subr.bf16.mxu0 %v1673_v6  ;;  %v804_v1 = vld [vmem:[%s2235_s3 + $0xa0] sm:$0xff] }
  0x1f   : > { %v1536_v2 = vcombine.high %v800_v0, %v804_v1  ;;  %v1535_v5 = vcombine.low %v800_v0, %v804_v1  ;;  %v1967_v29 = vld [vmem:[%s2234_s2] ss:$0 sm:$0xff] }
  0x20   : > { %1215 = vmatpush1.bf16.msra.mxu1 %v1559_v45 }
  0x21   : > { %1621 = vmatpush3.bf16.msra.mxu0 %v1673_v6  ;;  %1216 = vmatprep.subr.bf16.mxu1 %v1552_v50  ;;  %v1539_v6 = vcombine.low %v802_v3, %v806_v4 }
  0x22   : > { %1622 = vmatprep.subr.bf16.mxu0 %v1674_v7 }
  0x24   : > { %1217 = vmatpush1.bf16.msra.mxu1 %v1551_v53 }
  0x25   : > { %1623 = vmatpush3.bf16.msra.mxu0 %v1674_v7  ;;  %1218 = vmatprep.subr.bf16.mxu1 %v1544_v58  ;;  %v1540_v7 = vcombine.high %v802_v3, %v806_v4 }
  0x26   : > { %1624 = vmatprep.subr.bf16.mxu0 %v1675_v8 }
  0x28   : > { %1219 = vmatpush1.bf16.msra.mxu1 %v1543_v61 }
  0x29   : > { %1625 = vmatpush3.bf16.msra.mxu0 %v1675_v8  ;;  %v792_v8 = vld [vmem:[%s2235_s3 + $0x40] sm:$0xff]  ;;  %1220 = vmatprep.subr.bf16.mxu1 %v1536_v2 }
  0x2a   : > { %1292 = vmatprep.subr.bf16.mxu0 %v1580_v30 }
  0x2c   : > { %1627 = vmatmul.mubr.bf16.vlgmr.msra.gmra.mxu0 %v1677_v9  ;;  %v796_v9 = vld [vmem:[%s2235_s3 + $0x60] sm:$0xff]  ;;  %1221 = vmatpush1.bf16.msra.mxu1 %v1535_v5 }
  0x2d   : > { %1630 = vmatprep.mubr.bf16.mxu0 %v1678_v10  ;;  %1293 = vmatpush1.bf16.msra.mxu0 %v1579_v31  ;;  %v794_v10 = vld [vmem:[%s2235_s3 + $0x50] sm:$0xff] }
  0x2e   : > { %1294 = vmatprep.subr.bf16.mxu0 %v1572_v38 }
  0x31   : > { %1295 = vmatpush1.bf16.msra.mxu0 %v1571_v39 }
  0x32   : > { %1296 = vmatprep.subr.bf16.mxu0 %v1564_v46 }
  0x34   : > { %1631 = vmatmul.mubr.bf16.gmra.mxu0 %v1679_v11  ;;  %v1528_v11 = vcombine.high %v792_v8, %v796_v9 }
  0x35   : > { %1634 = vmatprep.mubr.bf16.mxu0 %v1680_v12  ;;  %1297 = vmatpush1.bf16.msra.mxu0 %v1563_v47  ;;  %v798_v12 = vld [vmem:[%s2235_s3 + $0x70] sm:$0xff] }
  0x36   : > { %1298 = vmatprep.subr.bf16.mxu0 %v1556_v54  ;;  %1222 = vmatprep.subr.bf16.mxu1 %v1528_v11 }
  0x39   : > { %1299 = vmatpush1.bf16.msra.mxu0 %v1555_v55 }
  0x3a   : > { %1300 = vmatprep.subr.bf16.mxu0 %v1548_v62 }
  0x3c   : > { %1635 = vmatmul.mubr.bf16.gmra.mxu0 %v1681_v13  ;;  %v784_v13 = vld [vmem:[%s2235_s3] sm:$0xff] }
  0x3d   : > { %1638 = vmatprep.mubr.bf16.mxu0 %v1682_v14  ;;  %1301 = vmatpush1.bf16.msra.mxu0 %v1547_v63  ;;  %v788_v14 = vld [vmem:[%s2235_s3 + $0x20] sm:$0xff] }
  0x3e   : > { %1302 = vmatprep.subr.bf16.mxu0 %v1540_v7  ;;  %v1519_v26 = vcombine.low %v784_v13, %v788_v14 }
  0x41   : > { %1303 = vmatpush1.bf16.msra.mxu0 %v1539_v6 }
  0x44   : > { %1639 = vmatmul.mubr.bf16.gmra.mxu0 %v1683_v15  ;;  %v1764_v15 = vmov 0  }
  0x45   : > { %1642 = vmatprep.mubr.bf16.mxu0 %v1684_v16  ;;  %1242 = vmatprep.mubr.bf16.mxu1 %v1764_v15  ;;  %v1527_v16 = vcombine.low %v792_v8, %v796_v9 }
  0x47   : > { %1223 = vmatpush1.bf16.msra.mxu1 %v1527_v16 }
  0x4c   : > { %1643 = vmatmul.mubr.bf16.gmra.mxu0 %v1685_v17  ;;  %v1532_v17 = vcombine.high %v794_v10, %v798_v12 }
  0x4d   : > { %1646 = vmatprep.mubr.bf16.mxu0 %v1686_v18  ;;  %v786_v18 = vld [vmem:[%s2235_s3 + $0x10] sm:$0xff] }
  0x4e   : > { %1304 = vmatprep.subr.bf16.mxu0 %v1532_v17 }
  0x54   : > { %1647 = vmatmul.mubr.bf16.gmra.mxu0 %v1687_v19  ;;  %v790_v19 = vld [vmem:[%s2235_s3 + $0x30] sm:$0xff] }
  0x55   : > { %1650 = vmatprep.mubr.bf16.mxu0 %v1688_v20  ;;  %v1952_v20 = vld [vmem:[%s2235_s3 + $0x1c8] sm:$0xff]  ;;  %v1524_v24 = vcombine.high %v786_v18, %v790_v19  ;;  %v1523_v27 = vcombine.low %v786_v18, %v790_v19 }
  0x5c   : > { %1651 = vmatmul.mubr.bf16.gmra.mxu0 %v1689_v21  ;;  %v1531_v21 = vcombine.low %v794_v10, %v798_v12 }
  0x5d   : > { %1654 = vmatprep.mubr.bf16.mxu0 %v1690_v22  ;;  %v1520_v22 = vcombine.high %v784_v13, %v788_v14 }
  0x5e   : > { %1305 = vmatpush1.bf16.msra.mxu0 %v1531_v21 }
  0x5f   : > { %1224 = vmatprep.subr.bf16.mxu1 %v1520_v22  ;;  %1306 = vmatprep.subr.bf16.mxu0 %v1524_v24 }
  0x60   : > { %1225 = vmatpush1.bf16.msra.mxu1 %v1519_v26 }
  0x62   : > { %1307 = vmatpush1.bf16.msra.mxu0 %v1523_v27 }
  0x64   : > { %1655 = vmatmul.mubr.bf16.gmra.mxu0 %v1691_v23  ;;  %v1957_v23 = vld [vmem:[%s2235_s3 + $0x1e8] sm:$0xff] }
  0x65   : > { %v1577_v25 = vcombine.low %v1952_v20, %v1957_v23  ;;  %1324 = vmatprep.mubr.bf16.mxu0 %v1764_v15  ;;  %v1578_v28 = vcombine.high %v1952_v20, %v1957_v23  ;;  %v809_v20 = vld [vmem:[%s2235_s3 + $0xc8] sm:$0xff] }
  0x66   : > { %v813_v23 = vld [vmem:[%s2235_s3 + $0xe8] sm:$0xff] }
  0x67   : > { %1251 = vmatprep.subr.bf16.mxu1 %v1578_v28 }
  0xec   : > { %v1628_v30 = vpop.f32.mrf.mxu0 }
  0xed   : > { %v1970_v31 = vadd.f32 %v1628_v30, %v1967_v29 }
  0xee   : > { %v457_v32 = vpop.f32.mrf.mxu0 }
  0xef   : > { %v586_v33 = vmul.f32 0.5, %v1970_v31  ;;  %v1974_v34 = vadd.f32 %v1967_v29, %v457_v32 }
  0xf0   : > { %v1629_v35 = vpop.f32.mrf.mxu0 }
  0xf1   : > { %v584_v36 = vmul.f32 0.5, %v1974_v34  ;;  %v1978_v37 = vadd.f32 %v1629_v35, %v1967_v29  ;;  %1692 = vtanh.f32 %v586_v33 }
  0xf2   : > { %v460_v38 = vpop.f32.mrf.mxu0 }
  0xf3   : > { %1694 = vtanh.f32 %v584_v36  ;;  %v587_v39 = vmul.f32 0.5, %v1978_v37  ;;  %v461_v40 = vadd.f32 %v1967_v29, %v460_v38 }
  0xf4   : > { %v1632_v41 = vpop.f32.mrf.mxu0 }
  0xf5   : > { %1696 = vtanh.f32 %v587_v39  ;;  %v585_v42 = vmul.f32 0.5, %v461_v40  ;;  %v1983_v43 = vadd.f32 %v1632_v41, %v1967_v29 }
  0xf6   : > { %v473_v44 = vpop.f32.mrf.mxu0 }
  0xf7   : > { %1698 = vtanh.f32 %v585_v42  ;;  %v590_v45 = vmul.f32 0.5, %v1983_v43  ;;  %v1987_v46 = vadd.f32 %v1967_v29, %v473_v44 }
  0xf8   : > { %v1633_v47 = vpop.f32.mrf.mxu0 }
  0xf9   : > { %v588_v48 = vmul.f32 0.5, %v1987_v46  ;;  %v1991_v49 = vadd.f32 %v1633_v47, %v1967_v29  ;;  %1700 = vtanh.f32 %v590_v45 }
  0xfa   : > { %v476_v50 = vpop.f32.mrf.mxu0 }
  0xfb   : > { %1702 = vtanh.f32 %v588_v48  ;;  %v591_v51 = vmul.f32 0.5, %v1991_v49  ;;  %v1995_v52 = vadd.f32 %v1967_v29, %v476_v50 }
  0xfc   : > { %v1636_v53 = vpop.f32.mrf.mxu0 }
  0xfd   : > { %1704 = vtanh.f32 %v591_v51  ;;  %v589_v54 = vmul.f32 0.5, %v1995_v52  ;;  %v1999_v55 = vadd.f32 %v1636_v53, %v1967_v29 }
  0xfe   : > { %v489_v56 = vpop.f32.mrf.mxu0  ;;  %v1693_v57 = vpop.eup %1692 }
  0xff   : > { %1706 = vtanh.f32 %v589_v54  ;;  %v2002_v58 = vadd.f32 %v1967_v29, %v489_v56  ;;  %v594_v60 = vmul.f32 0.5, %v1999_v55  ;;  %v650_v3 = vmul.f32 0.5, %v1693_v57 }
 0x100   : > { %v1695_v59 = vpop.eup %1694  ;;  %v1637_v61 = vpop.f32.mrf.mxu0 }
 0x101   : > { %v648_v62 = vmul.f32 0.5, %v1695_v59  ;;  %v592_v63 = vmul.f32 0.5, %v2002_v58  ;;  %v2007_v1 = vadd.f32 %v1637_v61, %v1967_v29  ;;  %v682_v16 = vadd.f32 0.5, %v650_v3 }
 0x102   : > { %v1697_v0 = vpop.eup %1696  ;;  %v492_v2 = vpop.f32.mrf.mxu0 }
 0x103   : > { %1708 = vtanh.f32 %v592_v63  ;;  %v595_v5 = vmul.f32 0.5, %v2007_v1  ;;  %v2011_v6 = vadd.f32 %v1967_v29, %v492_v2  ;;  %v680_v8 = vadd.f32 0.5, %v648_v62 }
 0x104   : > { %v1699_v4 = vpop.eup %1698  ;;  %1710 = vtanh.f32 %v594_v60  ;;  %v1640_v7 = vpop.f32.mrf.mxu0  ;;  %v651_v9 = vmul.f32 0.5, %v1697_v0  ;;  %v714_v38 = vmul.f32 %v682_v16, %v1970_v31 }
 0x105   : > { %v649_v10 = vmul.f32 0.5, %v1699_v4  ;;  %v2014_v11 = vadd.f32 %v1640_v7, %v1967_v29  ;;  %1712 = vtanh.f32 %v595_v5  ;;  %v593_v12 = vmul.f32 0.5, %v2011_v6 }
 0x106   : > { %v505_v13 = vpop.f32.mrf.mxu0  ;;  %v1701_v14 = vpop.eup %1700  ;;  %v712_v24 = vmul.f32 %v680_v8, %v1974_v34  ;;  %v683_v26 = vadd.f32 0.5, %v651_v9 }
 0x107   : > { %v681_v17 = vadd.f32 0.5, %v649_v10  ;;  %v598_v18 = vmul.f32 0.5, %v2014_v11  ;;  %1714 = vtanh.f32 %v593_v12  ;;  %v2019_v21 = vadd.f32 %v1967_v29, %v505_v13 }
 0x108   : > { %v1703_v19 = vpop.eup %1702  ;;  %v1641_v22 = vpop.f32.mrf.mxu0  ;;  %v654_v32 = vmul.f32 0.5, %v1701_v14  ;;  %v715_v47 = vmul.f32 %v683_v26, %v1978_v37 }
 0x109   : > { %v713_v27 = vmul.f32 %v681_v17, %v461_v40  ;;  %v652_v28 = vmul.f32 0.5, %v1703_v19  ;;  %v596_v33 = vmul.f32 0.5, %v2019_v21  ;;  %v2024_v35 = vadd.f32 %v1641_v22, %v1967_v29 }
 0x10a   : > { %v1705_v30 = vpop.eup %1704  ;;  %v508_v36 = vpop.f32.mrf.mxu0  ;;  %1716 = vtanh.f32 %v598_v18  ;;  %v686_v51 = vadd.f32 0.5, %v654_v32 }
 0x10b   : > { %v744_v39 = vadd.f32 %v713_v27, %v712_v24  ;;  %v684_v41 = vadd.f32 0.5, %v652_v28  ;;  %v655_v44 = vmul.f32 0.5, %v1705_v30  ;;  %1718 = vtanh.f32 %v596_v33 }
 0x10c   : > { %v1707_v42 = vpop.eup %1706  ;;  %v599_v34 = vmul.f32 0.5, %v2024_v35  ;;  %v2029_v40 = vadd.f32 %v1967_v29, %v508_v36  ;;  %v1644_v45 = vpop.f32.mrf.mxu0  ;;  %v718_v5 = vmul.f32 %v686_v51, %v1983_v43 }
 0x10d   : > { %v745_v48 = vadd.f32 %v744_v39, %v714_v38  ;;  %v653_v50 = vmul.f32 0.5, %v1707_v42  ;;  %v2034_v53 = vadd.f32 %v1644_v45, %v1967_v29  ;;  %v716_v56 = vmul.f32 %v684_v41, %v1987_v46 }
 0x10e   : > { %1720 = vtanh.f32 %v599_v34  ;;  %v597_v31 = vmul.f32 0.5, %v2029_v40  ;;  %v521_v54 = vpop.f32.mrf.mxu0  ;;  %v687_v61 = vadd.f32 0.5, %v655_v44 }
 0x10f   : > { %v746_v57 = vadd.f32 %v745_v48, %v715_v47  ;;  %v685_v59 = vadd.f32 0.5, %v653_v50  ;;  %v602_v62 = vmul.f32 0.5, %v2034_v53  ;;  %v2039_v37 = vadd.f32 %v1967_v29, %v521_v54 }
 0x110   : > { %v1709_v60 = vpop.eup %1708  ;;  %1722 = vtanh.f32 %v597_v31  ;;  %v1645_v63 = vpop.f32.mrf.mxu0  ;;  %v719_v14 = vmul.f32 %v687_v61, %v1991_v49 }
 0x111   : > { %v1711_v0 = vpop.eup %1710  ;;  %v747_v2 = vadd.f32 %v746_v57, %v716_v56  ;;  %v717_v3 = vmul.f32 %v685_v59, %v1995_v52  ;;  %v656_v4 = vmul.f32 0.5, %v1709_v60  ;;  %v600_v46 = vmul.f32 0.5, %v2039_v37 }
 0x112   : > { %v2045_v7 = vadd.f32 %v1645_v63, %v1967_v29  ;;  %v524_v8 = vpop.f32.mrf.mxu0  ;;  %v1713_v9 = vpop.eup %1712  ;;  %1724 = vtanh.f32 %v602_v62  ;;  %v658_v16 = vmul.f32 0.5, %v1711_v0 }
 0x113   : > { %v748_v10 = vadd.f32 %v747_v2, %v717_v3  ;;  %v688_v12 = vadd.f32 0.5, %v656_v4  ;;  %v2048_v13 = vadd.f32 %v1967_v29, %v524_v8  ;;  %1726 = vtanh.f32 %v600_v46 }
 0x114   : > { %v603_v52 = vmul.f32 0.5, %v2045_v7  ;;  %v1648_v43 = vpop.f32.mrf.mxu0  ;;  %v1715_v17 = vpop.eup %1714  ;;  %v659_v19 = vmul.f32 0.5, %v1713_v9  ;;  %v690_v33 = vadd.f32 0.5, %v658_v16 }
 0x115   : > { %v749_v18 = vadd.f32 %v748_v10, %v718_v5  ;;  %v601_v22 = vmul.f32 0.5, %v2048_v13  ;;  %v2054_v24 = vadd.f32 %v1648_v43, %v1967_v29  ;;  %v657_v26 = vmul.f32 0.5, %v1715_v17 }
 0x116   : > { %1728 = vtanh.f32 %v603_v52  ;;  %v537_v27 = vpop.f32.mrf.mxu0  ;;  %v720_v28 = vmul.f32 %v688_v12, %v2002_v58  ;;  %v691_v44 = vadd.f32 0.5, %v659_v19  ;;  %v722_v56 = vmul.f32 %v690_v33, %v1999_v55 }
 0x117   : > { %v750_v30 = vadd.f32 %v749_v18, %v719_v14  ;;  %1730 = vtanh.f32 %v601_v22  ;;  %v606_v49 = vmul.f32 0.5, %v2054_v24  ;;  %v1717_v32 = vpop.eup %1716  ;;  %v689_v36 = vadd.f32 0.5, %v657_v26 }
 0x118   : > { %v2059_v38 = vadd.f32 %v1967_v29, %v537_v27  ;;  %v1649_v39 = vpop.f32.mrf.mxu0  ;;  %v1719_v41 = vpop.eup %1718  ;;  %v662_v51 = vmul.f32 0.5, %v1717_v32 }
 0x119   : > { %v751_v42 = vadd.f32 %v750_v30, %v720_v28  ;;  %v2062_v34 = vadd.f32 %v1649_v39, %v1967_v29  ;;  %v721_v45 = vmul.f32 %v689_v36, %v2011_v6  ;;  %v660_v58 = vmul.f32 0.5, %v1719_v41 }
 0x11a   : > { %v604_v47 = vmul.f32 0.5, %v2059_v38  ;;  %v540_v48 = vpop.f32.mrf.mxu0  ;;  %1732 = vtanh.f32 %v606_v49  ;;  %v723_v6 = vmul.f32 %v691_v44, %v2007_v1  ;;  %v694_v5 = vadd.f32 0.5, %v662_v51 }
 0x11b   : > { %v1721_v50 = vpop.eup %1720  ;;  %v607_v31 = vmul.f32 0.5, %v2062_v34  ;;  %v2068_v54 = vadd.f32 %v1967_v29, %v540_v48  ;;  %v752_v57 = vadd.f32 %v751_v42, %v721_v45  ;;  %v692_v59 = vadd.f32 0.5, %v660_v58 }
 0x11c   : > { %1734 = vtanh.f32 %v604_v47  ;;  %v1652_v60 = vpop.f32.mrf.mxu0  ;;  %v663_v2 = vmul.f32 0.5, %v1721_v50  ;;  %v726_v49 = vmul.f32 %v694_v5, %v2014_v11 }
 0x11d   : > { %v1723_v61 = vpop.eup %1722  ;;  %v605_v62 = vmul.f32 0.5, %v2068_v54  ;;  %v2074_v63 = vadd.f32 %v1652_v60, %v1967_v29  ;;  %v753_v0 = vadd.f32 %v752_v57, %v722_v56  ;;  %1736 = vtanh.f32 %v607_v31 }
 0x11e   : > { %v661_v3 = vmul.f32 0.5, %v1723_v61  ;;  %v553_v4 = vpop.f32.mrf.mxu0  ;;  %v724_v8 = vmul.f32 %v692_v59, %v2019_v21  ;;  %v695_v17 = vadd.f32 0.5, %v663_v2 }
 0x11f   : > { %1738 = vtanh.f32 %v605_v62  ;;  %v2077_v55 = vadd.f32 %v1967_v29, %v553_v4  ;;  %v1725_v46 = vpop.eup %1724  ;;  %v754_v9 = vadd.f32 %v753_v0, %v723_v6  ;;  %v610_v10 = vmul.f32 0.5, %v2074_v63 }
 0x120   : > { %v693_v1 = vadd.f32 0.5, %v661_v3  ;;  %v1653_v12 = vpop.f32.mrf.mxu0  ;;  %v1727_v14 = vpop.eup %1726  ;;  %v666_v27 = vmul.f32 0.5, %v1725_v46  ;;  %v727_v42 = vmul.f32 %v695_v17, %v2024_v35 }
 0x121   : > { %v608_v16 = vmul.f32 0.5, %v2077_v55  ;;  %v2083_v52 = vadd.f32 %v1653_v12, %v1967_v29  ;;  %v755_v43 = vadd.f32 %v754_v9, %v724_v8  ;;  %v664_v19 = vmul.f32 0.5, %v1727_v14 }
 0x122   : > { %v725_v18 = vmul.f32 %v693_v1, %v2029_v40  ;;  %v556_v22 = vpop.f32.mrf.mxu0  ;;  %v698_v47 = vadd.f32 0.5, %v666_v27 }
 0x123   : > { %v1729_v26 = vpop.eup %1728  ;;  %1740 = vtanh.f32 %v608_v16  ;;  %v611_v21 = vmul.f32 0.5, %v2083_v52  ;;  %v2088_v28 = vadd.f32 %v1967_v29, %v556_v22  ;;  %v696_v33 = vadd.f32 0.5, %v664_v19 }
 0x124   : > { %v1731_v30 = vpop.eup %1730  ;;  %v756_v32 = vadd.f32 %v755_v43, %v725_v18  ;;  %1742 = vtanh.f32 %v610_v10  ;;  %v1656_v36 = vpop.f32.mrf.mxu0  ;;  %v667_v45 = vmul.f32 0.5, %v1729_v26 }
 0x125   : > { %v665_v39 = vmul.f32 0.5, %v1731_v30  ;;  %v609_v40 = vmul.f32 0.5, %v2088_v28  ;;  %v2093_v41 = vadd.f32 %v1656_v36, %v1967_v29  ;;  %1744 = vtanh.f32 %v611_v21 }
 0x126   : > { %v757_v44 = vadd.f32 %v756_v32, %v726_v49  ;;  %v569_v58 = vpop.f32.mrf.mxu0  ;;  %v728_v51 = vmul.f32 %v696_v33, %v2039_v37  ;;  %v699_v6 = vadd.f32 0.5, %v667_v45  ;;  %v730_v37 = vmul.f32 %v698_v47, %v2034_v53 }
 0x127   : > { %v697_v48 = vadd.f32 0.5, %v665_v39  ;;  %1746 = vtanh.f32 %v609_v40  ;;  %v614_v11 = vmul.f32 0.5, %v2093_v41  ;;  %v1733_v50 = vpop.eup %1732  ;;  %v2099_v56 = vadd.f32 %v1967_v29, %v569_v58 }
 0x128   : > { %v758_v31 = vadd.f32 %v757_v44, %v727_v42  ;;  %v1657_v57 = vpop.f32.mrf.mxu0  ;;  %v731_v12 = vmul.f32 %v699_v6, %v2045_v7 }
 0x129   : > { %v1735_v59 = vpop.eup %1734  ;;  %v729_v35 = vmul.f32 %v697_v48, %v2048_v13  ;;  %v2103_v60 = vadd.f32 %v1657_v57, %v1967_v29  ;;  %v612_v0 = vmul.f32 0.5, %v2099_v56  ;;  %1748 = vtanh.f32 %v614_v11 }
 0x12a   : > { %v759_v61 = vadd.f32 %v758_v31, %v728_v51  ;;  %v668_v62 = vmul.f32 0.5, %v1735_v59  ;;  %v572_v2 = vpop.f32.mrf.mxu0  ;;  %v1737_v3 = vpop.eup %1736  ;;  %v670_v13 = vmul.f32 0.5, %v1733_v50 }
 0x12b   : > { %v615_v4 = vmul.f32 0.5, %v2103_v60  ;;  %v573_v5 = vadd.f32 %v1967_v29, %v572_v2  ;;  %1750 = vtanh.f32 %v612_v0  ;;  %v671_v16 = vmul.f32 0.5, %v1737_v3 }
 0x12c   : > { %v1739_v46 = vpop.eup %1738  ;;  %v760_v8 = vadd.f32 %v759_v61, %v729_v35  ;;  %v700_v9 = vadd.f32 0.5, %v668_v62  ;;  %v702_v17 = vadd.f32 0.5, %v670_v13 }
 0x12d   : > { %v669_v1 = vmul.f32 0.5, %v1739_v46  ;;  %v613_v10 = vmul.f32 0.5, %v573_v5  ;;  %1752 = vtanh.f32 %v615_v4  ;;  %v703_v21 = vadd.f32 0.5, %v671_v16 }
 0x12e   : > { %v761_v14 = vadd.f32 %v760_v8, %v730_v37  ;;  %v732_v18 = vmul.f32 %v700_v9, %v2059_v38  ;;  %v734_v7 = vmul.f32 %v702_v17, %v2054_v24 }
 0x12f   : > { %v701_v43 = vadd.f32 0.5, %v669_v1  ;;  %1754 = vtanh.f32 %v613_v10  ;;  %v735_v40 = vmul.f32 %v703_v21, %v2062_v34 }
 0x130   : > { %v1741_v53 = vpop.eup %1740  ;;  %v762_v19 = vadd.f32 %v761_v14, %v731_v12 }
 0x131   : > { %v1743_v29 = vpop.eup %1742  ;;  %v733_v22 = vmul.f32 %v701_v43, %v2068_v54  ;;  %v672_v26 = vmul.f32 0.5, %v1741_v53 }
 0x132   : > { %v763_v27 = vadd.f32 %v762_v19, %v732_v18  ;;  %v1745_v30 = vpop.eup %1744  ;;  %v674_v33 = vmul.f32 0.5, %v1743_v29  ;;  %v825_v18 = vld [vmem:[%s2235_s3 + $0x148] sm:$0xff] }
 0x133   : > { %v704_v36 = vadd.f32 0.5, %v672_v26  ;;  %v675_v44 = vmul.f32 0.5, %v1745_v30  ;;  %v829_v19 = vld [vmem:[%s2235_s3 + $0x168] sm:$0xff] }
 0x134   : > { %v1747_v49 = vpop.eup %1746  ;;  %v764_v32 = vadd.f32 %v763_v27, %v733_v22  ;;  %v706_v58 = vadd.f32 0.5, %v674_v33  ;;  %v1562_v22 = vcombine.high %v825_v18, %v829_v19  ;;  %v817_v26 = vld [vmem:[%s2235_s3 + $0x108] sm:$0xff]  ;;  %v1561_v21 = vcombine.low %v825_v18, %v829_v19  ;;  %v848_v18 = vld [vmem:[%s2236_s4] sm:$0xff] }
 0x135   : > { %v673_v39 = vmul.f32 0.5, %v1747_v49  ;;  %v736_v54 = vmul.f32 %v704_v36, %v2077_v55  ;;  %v707_v51 = vadd.f32 0.5, %v675_v44  ;;  %v821_v27 = vld [vmem:[%s2235_s3 + $0x128] sm:$0xff]  ;;  %v1546_v49 = vcombine.high %v809_v20, %v813_v23 }
 0x136   : > { %v765_v42 = vadd.f32 %v764_v32, %v734_v7  ;;  %v1749_v45 = vpop.eup %1748  ;;  %v738_v59 = vmul.f32 %v706_v58, %v2074_v63  ;;  %v1554_v30 = vcombine.high %v817_v26, %v821_v27  ;;  %v801_v7 = vld [vmem:[%s2235_s3 + $0x88] sm:$0xff]  ;;  %v1545_v33 = vcombine.low %v809_v20, %v813_v23 }
 0x137   : > { %v705_v38 = vadd.f32 0.5, %v673_v39  ;;  %v678_v34 = vmul.f32 0.5, %v1749_v45  ;;  %v739_v62 = vmul.f32 %v707_v51, %v2083_v52  ;;  %v805_v32 = vld [vmem:[%s2235_s3 + $0xa8] sm:$0xff]  ;;  %v835_v51 = vld [vmem:[%s2235_s3 + $0x198] sm:$0xff] }
 0x138   : > { %v766_v47 = vadd.f32 %v765_v42, %v735_v40  ;;  %v1751_v48 = vpop.eup %1750  ;;  %v1538_v36 = vcombine.high %v801_v7, %v805_v32  ;;  %v793_v39 = vld [vmem:[%s2235_s3 + $0x48] sm:$0xff]  ;;  %v1537_v42 = vcombine.low %v801_v7, %v805_v32 }
 0x139   : > { %v737_v11 = vmul.f32 %v705_v38, %v2088_v28  ;;  %v676_v24 = vmul.f32 0.5, %v1751_v48  ;;  %v710_v3 = vadd.f32 0.5, %v678_v34  ;;  %v797_v40 = vld [vmem:[%s2235_s3 + $0x68] sm:$0xff]  ;;  %v847_v48 = vld [vmem:[%s2235_s3 + $0x1f8] sm:$0xff] }
 0x13a   : > { %v767_v50 = vadd.f32 %v766_v47, %v736_v54  ;;  %v1753_v31 = vpop.eup %1752  ;;  %v1530_v44 = vcombine.high %v793_v39, %v797_v40  ;;  %v785_v38 = vld [vmem:[%s2235_s3 + $0x8] sm:$0xff]  ;;  %v1529_v58 = vcombine.low %v793_v39, %v797_v40  ;;  %v843_v47 = vld [vmem:[%s2235_s3 + $0x1d8] sm:$0xff] }
 0x13b   : > { %v708_v61 = vadd.f32 0.5, %v676_v24  ;;  %v679_v2 = vmul.f32 0.5, %v1753_v31  ;;  %v742_v13 = vmul.f32 %v710_v3, %v2093_v41  ;;  %v789_v45 = vld [vmem:[%s2235_s3 + $0x28] sm:$0xff]  ;;  %v839_v24 = vld [vmem:[%s2235_s3 + $0x1b8] sm:$0xff]  ;;  %v1581_v31 = vcombine.low %v843_v47, %v847_v48 }
 0x13c   : > { %v1755_v57 = vpop.eup %1754  ;;  %v768_v35 = vadd.f32 %v767_v50, %v737_v11  ;;  %v1522_v54 = vcombine.high %v785_v38, %v789_v45  ;;  %v1521_v11 = vcombine.low %v785_v38, %v789_v45  ;;  %v1582_v50 = vcombine.high %v843_v47, %v847_v48 }
 0x13d   : > { %v677_v6 = vmul.f32 0.5, %v1755_v57  ;;  %v740_v37 = vmul.f32 %v708_v61, %v2099_v56  ;;  %v711_v8 = vadd.f32 0.5, %v679_v2  ;;  %v833_v56 = vld [vmem:[%s2235_s3 + $0x188] sm:$0xff]  ;;  %v1574_v57 = vcombine.high %v835_v51, %v839_v24 }
 0x13e   : > { %v769_v0 = vadd.f32 %v768_v35, %v738_v59  ;;  %v827_v59 = vld [vmem:[%s2235_s3 + $0x158] sm:$0xff]  ;;  %v1573_v34 = vcombine.low %v835_v51, %v839_v24  ;;  %v1765_v48 = vmov 1966171168  }
 0x13f   : > { %v709_v55 = vadd.f32 0.5, %v677_v6  ;;  %v743_v63 = vmul.f32 %v711_v8, %v2103_v60  ;;  %v831_v35 = vld [vmem:[%s2235_s3 + $0x178] sm:$0xff] }
 0x140   : > { %v770_v28 = vadd.f32 %v769_v0, %v739_v62  ;;  %v1566_v61 = vcombine.high %v827_v59, %v831_v35  ;;  %v819_v6 = vld [vmem:[%s2235_s3 + $0x118] sm:$0xff]  ;;  %v1565_v0 = vcombine.low %v827_v59, %v831_v35 }
 0x141   : > { %v741_v4 = vmul.f32 %v709_v55, %v573_v5  ;;  %v837_v5 = vld [vmem:[%s2235_s3 + $0x1a8] sm:$0xff]  ;;  %v823_v62 = vld [vmem:[%s2235_s3 + $0x138] sm:$0xff] }
 0x142   : > { %v771_v46 = vadd.f32 %v770_v28, %v740_v37  ;;  %v1570_v60 = vcombine.high %v833_v56, %v837_v5  ;;  %v1569_v29 = vcombine.low %v833_v56, %v837_v5  ;;  %v1558_v2 = vcombine.high %v819_v6, %v823_v62  ;;  %v811_v55 = vld [vmem:[%s2235_s3 + $0xd8] sm:$0xff] }
 0x143   : > { %v1557_v3 = vcombine.low %v819_v6, %v823_v62  ;;  %v803_v28 = vld [vmem:[%s2235_s3 + $0x98] sm:$0xff] }
 0x144   : > { %v772_v9 = vadd.f32 %v771_v46, %v741_v4  ;;  %v807_v4 = vld [vmem:[%s2235_s3 + $0xb8] sm:$0xff] }
 0x145   : > { %v1542_v8 = vcombine.high %v803_v28, %v807_v4 }
 0x146   : > { %v773_v1 = vadd.f32 %v772_v9, %v742_v13  ;;  %v795_v13 = vld [vmem:[%s2235_s3 + $0x58] sm:$0xff] }
 0x147   : > { %v799_v9 = vld [vmem:[%s2235_s3 + $0x78] sm:$0xff] }
 0x148   : > { %v774_v10 = vadd.f32 %v773_v1, %v743_v63  ;;  %v1541_v63 = vcombine.low %v803_v28, %v807_v4  ;;  %v1534_v1 = vcombine.high %v795_v13, %v799_v9 }
 0x14a   : > { %v775_v12 = vrot.slane %v774_v10, 4 }
 0x14c   : > { %v776_v14 = vadd.f32 %v775_v12, %v774_v10  ;;  %v787_v10 = vld [vmem:[%s2235_s3 + $0x18] sm:$0xff] }
 0x14d   : > { %v791_v12 = vld [vmem:[%s2235_s3 + $0x38] sm:$0xff] }
 0x14e   : > { %v777_v52 = vrot.slane %v776_v14, 2 }
 0x150   : > { %v778_v16 = vadd.f32 %v777_v52, %v776_v14  ;;  %v1533_v14 = vcombine.low %v795_v13, %v799_v9  ;;  %v1526_v52 = vcombine.high %v787_v10, %v791_v12 }
 0x152   : > { %v779_v43 = vrot.slane %v778_v16, 1 }
 0x154   : > { %v780_v53 = vadd.f32 %v779_v43, %v778_v16  ;;  %v1525_v16 = vcombine.low %v787_v10, %v791_v12  ;;  %v1170_v43 = vlaneseq }
 0x156   : > { %v782_v41 = vmul.f32 0.00390625, %v780_v53  ;;  %v1171_v53 = vshrl.u32 %v1170_v43, 7 }
 0x158   : > { %v2127_v17 = vpack.c.bf16 %v782_v41, %v782_v41  ;;  %v1172_v56 = vsub.s32 0, %v1171_v53  ;;  %v1188_v5 = vsub.s32 4, %v1171_v53  ;;  %v1176_v41 = vsub.s32 1, %v1171_v53 }
 0x159   : > { %v1196_v24 = vsub.s32 6, %v1171_v53 }
 0x15a   : > { %1243 = vmatmul.mubr.bf16.vlgmr.msra.gmra.mxu1 %v2127_v17  ;;  %1325 = vmatmul.mubr.bf16.vlgmr.msra.gmra.mxu0 %v2127_v17  ;;  %v1173_v19 = vrot.slane %v848_v18, %v1172_v56 }
 0x15b   : > { %1252 = vmatpush1.bf16.msra.mxu1 %v1577_v25  ;;  %1283 = vmatprep.mubr.bf16.mxu1 %v1764_v15  ;;  %v1553_v25 = vcombine.low %v817_v26, %v821_v27 }
 0x15c   : > { %1253 = vmatprep.subr.bf16.mxu1 %v1570_v60  ;;  %v1192_v60 = vsub.s32 5, %v1171_v53 }
 0x15e   : > { %v1193_v26 = vrot.slane %v848_v18, %v1192_v60 }
 0x15f   : > { %1254 = vmatpush1.bf16.msra.mxu1 %v1569_v29  ;;  %v1189_v29 = vrot.slane %v848_v18, %v1188_v5 }
 0x160   : > { %1255 = vmatprep.subr.bf16.mxu1 %v1562_v22  ;;  %v1177_v22 = vrot.slane %v848_v18, %v1176_v41 }
 0x163   : > { %1256 = vmatpush1.bf16.msra.mxu1 %v1561_v21 }
 0x164   : > { %1257 = vmatprep.subr.bf16.mxu1 %v1554_v30 }
 0x167   : > { %1258 = vmatpush1.bf16.msra.mxu1 %v1553_v25 }
 0x168   : > { %1259 = vmatprep.subr.bf16.mxu1 %v1546_v49 }
 0x16b   : > { %1260 = vmatpush1.bf16.msra.mxu1 %v1545_v33 }
 0x16c   : > { %1261 = vmatprep.subr.bf16.mxu1 %v1538_v36 }
 0x16f   : > { %1262 = vmatpush1.bf16.msra.mxu1 %v1537_v42 }
 0x170   : > { %1263 = vmatprep.subr.bf16.mxu1 %v1530_v44 }
 0x173   : > { %1264 = vmatpush1.bf16.msra.mxu1 %v1529_v58  ;;  %v1184_v58 = vsub.s32 3, %v1171_v53 }
 0x174   : > { %1265 = vmatprep.subr.bf16.mxu1 %v1522_v54  ;;  %v1180_v54 = vsub.s32 2, %v1171_v53 }
 0x175   : > { %v1185_v47 = vrot.slane %v848_v18, %v1184_v58 }
 0x177   : > { %1266 = vmatpush1.bf16.msra.mxu1 %v1521_v11  ;;  %v1387_v11 = vunpack.c.l.s4 %v1765_v48 }
 0x178   : > { %1333 = vmatprep.subr.bf16.mxu1 %v1582_v50  ;;  %v1181_v50 = vrot.slane %v848_v18, %v1180_v54 }
 0x17a   : > { %1284 = vmatmul.mubr.bf16.vlgmr.msra.gmra.mxu1 %v2127_v17 }
 0x17b   : > { %1334 = vmatpush1.bf16.msra.mxu1 %v1581_v31  ;;  %1365 = vmatprep.mubr.bf16.mxu1 %v1764_v15  ;;  %v815_v15 = vld [vmem:[%s2235_s3 + $0xf8] sm:$0xff]  ;;  %v1200_v31 = vsub.s32 7, %v1171_v53 }
 0x17c   : > { %1335 = vmatprep.subr.bf16.mxu1 %v1574_v57  ;;  %v1550_v37 = vcombine.high %v811_v55, %v815_v15  ;;  %v1549_v46 = vcombine.low %v811_v55, %v815_v15  ;;  %v1388_v57 = vunpack.c.0.s8 %v1387_v11 }
 0x17e   : > { %v1391_v62 = vsub.s32 %v1388_v57, %v1171_v53 }
 0x17f   : > { %1336 = vmatpush1.bf16.msra.mxu1 %v1573_v34  ;;  %v1197_v34 = vrot.slane %v848_v18, %v1196_v24 }
 0x180   : > { %1337 = vmatprep.subr.bf16.mxu1 %v1566_v61  ;;  %v1201_v61 = vrot.slane %v848_v18, %v1200_v31 }
 0x183   : > { %1338 = vmatpush1.bf16.msra.mxu1 %v1565_v0 }
 0x184   : > { %1339 = vmatprep.subr.bf16.mxu1 %v1558_v2 }
 0x187   : > { %1340 = vmatpush1.bf16.msra.mxu1 %v1557_v3 }
 0x188   : > { %1341 = vmatprep.subr.bf16.mxu1 %v1550_v37 }
 0x18b   : > { %1342 = vmatpush1.bf16.msra.mxu1 %v1549_v46 }
 0x18c   : > { %1343 = vmatprep.subr.bf16.mxu1 %v1542_v8 }
 0x18f   : > { %1344 = vmatpush1.bf16.msra.mxu1 %v1541_v63 }
 0x190   : > { %1345 = vmatprep.subr.bf16.mxu1 %v1534_v1 }
 0x193   : > { %1346 = vmatpush1.bf16.msra.mxu1 %v1533_v14 }
 0x194   : > { %1347 = vmatprep.subr.bf16.mxu1 %v1526_v52 }
 0x197   : > { %1348 = vmatpush1.bf16.msra.mxu1 %v1525_v16 }
 0x19a   : > { %1366 = vmatmul.mubr.bf16.vlgmr.msra.gmra.mxu1 %v2127_v17 }
 0x21a   : > { %v1244_v27 = vpop.f32.mrf.mxu1  ;;  %v1326_v21 = vpop.f32.mrf.mxu0 }
 0x21b   : > { %v1245_v23 = vadd.f32 %v1244_v27, %v1173_v19  ;;  %v1327_v17 = vadd.f32 %v1326_v21, %v1189_v29 }
 0x21c   : > { %v1246_v30 = vpop.f32.mrf.mxu1  ;;  %v1328_v20 = vpop.f32.mrf.mxu0 }
 0x21d   : > { %v1247_v25 = vadd.f32 %v1246_v30, %v1177_v22  ;;  %v1329_v49 = vadd.f32 %v1328_v20, %v1193_v26 }
 0x21e   : > { %v1248_v7 = vpop.f32.mrf.mxu1  ;;  %v1330_v32 = vpop.f32.mrf.mxu0 }
 0x21f   : > { %v1382_v33 = vcombine.low %v1245_v23, %v1247_v25  ;;  %v1384_v36 = vcombine.low %v1327_v17, %v1329_v49 }
 0x220   : > { %v1249_v39 = vpop.f32.mrf.mxu1  ;;  %v1331_v40 = vpop.f32.mrf.mxu0 }
 0x221   : > { %v1392_v37 = vrot.slane %v1382_v33, %v1391_v62  ;;  %v1406_v46 = vrot.slane %v1384_v36, %v1391_v62 }
 0x23a   : > { %v1285_v42 = vpop.f32.mrf.mxu1 }
 0x23b   : > { %v1286_v59 = vadd.f32 %v1285_v42, %v1181_v50 }
 0x23c   : > { %v1287_v44 = vpop.f32.mrf.mxu1 }
 0x23d   : > { %v1288_v51 = vadd.f32 %v1287_v44, %v1185_v47 }
 0x23e   : > { %v1289_v38 = vpop.f32.mrf.mxu1 }
 0x23f   : > { %v1383_v35 = vcombine.low %v1286_v59, %v1288_v51 }
 0x240   : > { %v1290_v45 = vpop.f32.mrf.mxu1 }
 0x241   : > { %v1399_v2 = vrot.slane %v1383_v35, %v1391_v62 }
 0x243   : > { %v1414_v8 = vcombine.low %v1392_v37, %v1399_v2 }
 0x245   : > { %v1422_v63 = vrot.slane %v1414_v8, %v1391_v62 }
 0x25a   : > { %v1367_v6 = vpop.f32.mrf.mxu1 }
 0x25b   : > { %v1368_v55 = vadd.f32 %v1367_v6, %v1197_v34 }
 0x25c   : > { %v1369_v0 = vpop.f32.mrf.mxu1 }
 0x25d   : > { %v1370_v15 = vadd.f32 %v1369_v0, %v1201_v61 }
 0x25e   : > { %v1371_v3 = vpop.f32.mrf.mxu1 }
 0x25f   : > { %v1385_v28 = vcombine.low %v1368_v55, %v1370_v15 }
 0x260   : > { %v1372_v4 = vpop.f32.mrf.mxu1 }
 0x261   : > { %v1413_v13 = vrot.slane %v1385_v28, %v1391_v62 }
 0x263   : > { %v1415_v9 = vcombine.low %v1406_v46, %v1413_v13 }
 0x265   : > { %v1429_v1 = vrot.slane %v1415_v9, %v1391_v62 }
 0x267   : > { %v1430_v10 = vcombine.low %v1422_v63, %v1429_v1 }
 0x269   : > { %1432 = vst [vmem:[%s222_s12] sm:$0xff] %v1430_v10 }
 0x26a PF: > { %s15_s18 = sadd.s32 1, %s1762_s18  }
 0x26b   : > { %p12_p4 = scmp.ge.s32.totalorder %s15_s18, 4  }
 0x26d   :  { %14 = sbr.rel (!%p12_p4) target bundleno = 1 (0x1), region = 70 }

// kernel: efficientnetv2_small_quadrant_forward.2
= control target key start
LH: loop header
LB: loop body
LE: loop exit
PB: predicated region body
PF: predicated region fallthrough
CT: control target
= control target key end

     0   :  { %s4567_s25 = smov 0   ;;  %s6887_s0 = inlined_call_operand.vmem [shape: bf16[2,256,128], index: 0, kind: input, shape index: {}]   ;;  %s6888_s1 = inlined_call_operand.vmem [shape: bf16[128,128], index: 1, kind: input, shape index: {}]   ;;  %s6889_s2 = inlined_call_operand.vmem [shape: f32[1,128], index: 2, kind: input, shape index: {}]   ;;  %s6890_s3 = inlined_call_operand.vmem [shape: bf16[128,128], index: 3, kind: input, shape index: {}]   ;;  %s6891_s4 = inlined_call_operand.vmem [shape: f32[1,128], index: 4, kind: input, shape index: {}]   ;;  %s6892_s5 = inlined_call_operand.vmem [shape: bf16[9,1,128], index: 5, kind: input, shape index: {}]   ;;  %s6893_s6 = inlined_call_operand.vmem [shape: f32[1,128], index: 6, kind: input, shape index: {}]   ;;  %s6894_s7 = inlined_call_operand.vmem [shape: bf16[128,128], index: 7, kind: input, shape index: {}]   ;;  %s6895_s8 = inlined_call_operand.vmem [shape: f32[1,128], index: 8, kind: input, shape index: {}]   ;;  %s6896_s9 = inlined_call_operand.vmem [shape: bf16[128,128], index: 9, kind: input, shape index: {}]   ;;  %s6897_s10 = inlined_call_operand.vmem [shape: f32[1,128], index: 10, kind: input, shape index: {}]   ;;  %s6898_s11 = inlined_call_operand.vmem [shape: bf16[128,128], index: 11, kind: input, shape index: {}]   ;;  %s6899_s12 = inlined_call_operand.vmem [shape: f32[1,128], index: 12, kind: input, shape index: {}]   ;;  %s6900_s13 = inlined_call_operand.vmem [shape: bf16[2,256,128], index: 13, kind: output, shape index: {}]  }
   0x1 LB: > { %s3703_s26 = sadd.s32 4294967295, %s4493_s25   ;;  %p3707_p0 = scmp.ge.s32.totalorder %s4493_s25, 1  ;;  %s4493_s25 = sphi %s4567_s25, %s23_s25  }
   0x2   : > { %p387_p1 = scmp.lt.s32.totalorder %s4493_s25, 3 }
   0x4   : > { %p388_p2 = pnand %p3707_p0, %p387_p1 }
   0x6   : > { %391 = sbr.rel (%p388_p2) target bundleno = 1477 (0x5c5), region = 72 }
   0xb   : > { %v4237_v0 = vld [vmem:[%s6888_s1 + $0x38] sm:$0xff]   ;;  %p431_p3 = scmp.lt.s32.totalorder %s3703_s26, 1  ;;  %v4238_v1 = vld [vmem:[%s6888_s1 + $0x30] sm:$0xff]   ;;  %v4239_v2 = vld [vmem:[%s6888_s1 + $0x28] sm:$0xff]   ;;  %vm4496_vm4 = vmmov 0   ;;  %vm2771_vm5 = vcmask 1040384  }
   0xc   : > { %4027 = vmatprep.subr.bf16.mxu0 %v4237_v0  ;;  %4211 = vmatprep.subr.bf16.mxu1 %v4237_v0  ;;  %v4240_v3 = vld [vmem:[%s6888_s1 + $0x20] sm:$0xff]   ;;  %v4241_v6 = vld [vmem:[%s6888_s1 + $0x18] sm:$0xff]   ;;  %v4242_v7 = vld [vmem:[%s6888_s1 + $0x10] sm:$0xff]   ;;  %vm2773_vm6 = vcmask 1041408   ;;  %vm2775_vm7 = vcmask 1042432   ;;  %vm2777_vm8 = vcmask 1043456  }
   0xd   : > { %s7223_s26 = smov (!%p431_p3, %s3703_s26), 1  ;;  %4028 = vmatpush3.bf16.msra.mxu0 %v4237_v0  ;;  %4219 = vmatpush3.bf16.msra.mxu1 %v4237_v0  ;;  %v4243_v8 = vld [vmem:[%s6888_s1 + $0x8] sm:$0xff]   ;;  %v4244_v9 = vld [vmem:[%s6888_s1] sm:$0xff]   ;;  %v4261_v24 = vld [vmem:[%s6890_s3 + $0x38] sm:$0xff]   ;;  %vm2779_vm9 = vcmask 1044480   ;;  %vm2781_vm10 = vcmask 1045504  }
   0xe   : > { %4029 = vmatprep.subr.bf16.mxu0 %v4238_v1  ;;  %4212 = vmatprep.subr.bf16.mxu1 %v4238_v1  ;;  %s3808_s16 = sshll.u32 %s7223_s26, 7  ;;  %v4262_v25 = vld [vmem:[%s6890_s3 + $0x30] sm:$0xff]   ;;  %v4263_v26 = vld [vmem:[%s6890_s3 + $0x28] sm:$0xff]   ;;  %v4264_v27 = vld [vmem:[%s6890_s3 + $0x20] sm:$0xff]   ;;  %vm2783_vm11 = vcmask 1046528  }
   0xf   : > { %s4592_s19 = scalar_lea.vmem %s6887_s0, %s3808_s16  ;;  %v4265_v28 = vld [vmem:[%s6890_s3 + $0x18] sm:$0xff]   ;;  %v4266_v29 = vld [vmem:[%s6890_s3 + $0x10] sm:$0xff]   ;;  %v4267_v30 = vld [vmem:[%s6890_s3 + $0x8] sm:$0xff]   ;;  %s6808_s18 = scalar_lea.vmem %s6900_s13, %s3808_s16 }
  0x10   : > { %v4245_v4 = vld [vmem:[%s4592_s19] sm:$0xff]   ;;  %v4246_v10 = vld [vmem:[%s4592_s19 + $0x8] sm:$0xff]   ;;  %v4249_v12 = vld [vmem:[%s4592_s19 + $0x10] sm:$0xff]  }
  0x11   : > { %4030 = vmatpush3.bf16.msra.mxu0 %v4238_v1  ;;  %4220 = vmatpush3.bf16.msra.mxu1 %v4238_v1  ;;  %v4247_v5 = vld [vmem:[%s4592_s19 + $0x40] sm:$0xff]   ;;  %v4248_v11 = vld [vmem:[%s4592_s19 + $0x48] sm:$0xff]   ;;  %v4251_v13 = vld [vmem:[%s4592_s19 + $0x50] sm:$0xff]  }
  0x12   : > { %4031 = vmatprep.subr.bf16.mxu0 %v4239_v2  ;;  %4213 = vmatprep.subr.bf16.mxu1 %v4239_v2  ;;  %v4250_v14 = vld [vmem:[%s4592_s19 + $0x18] sm:$0xff]   ;;  %v4253_v16 = vld [vmem:[%s4592_s19 + $0x20] sm:$0xff]   ;;  %v4254_v18 = vld [vmem:[%s4592_s19 + $0x28] sm:$0xff]  }
  0x13   : > { %4043 = vmatprep.mubr.bf16.mxu0 %v4245_v4  ;;  %4059 = vmatprep.mubr.bf16.mxu1 %v4247_v5  ;;  %v4252_v15 = vld [vmem:[%s4592_s19 + $0x58] sm:$0xff]   ;;  %v4255_v17 = vld [vmem:[%s4592_s19 + $0x60] sm:$0xff]   ;;  %v4256_v19 = vld [vmem:[%s4592_s19 + $0x68] sm:$0xff]  }
  0x14   : > { %v4257_v20 = vld [vmem:[%s4592_s19 + $0x30] sm:$0xff]   ;;  %v4258_v22 = vld [vmem:[%s4592_s19 + $0x38] sm:$0xff]   ;;  %v4268_v31 = vld [vmem:[%s6890_s3] sm:$0xff]  }
  0x15   : > { %4032 = vmatpush3.bf16.msra.mxu0 %v4239_v2  ;;  %4221 = vmatpush3.bf16.msra.mxu1 %v4239_v2  ;;  %v4259_v21 = vld [vmem:[%s4592_s19 + $0x70] sm:$0xff]   ;;  %v4260_v23 = vld [vmem:[%s4592_s19 + $0x78] sm:$0xff]   ;;  %v4652_v34 = vld [vmem:[%s6889_s2] ss:$0 sm:$0xff] }
  0x16   : > { %4033 = vmatprep.subr.bf16.mxu0 %v4240_v3  ;;  %4214 = vmatprep.subr.bf16.mxu1 %v4240_v3 }
  0x19   : > { %4034 = vmatpush3.bf16.msra.mxu0 %v4240_v3  ;;  %4222 = vmatpush3.bf16.msra.mxu1 %v4240_v3 }
  0x1a   : > { %4035 = vmatprep.subr.bf16.mxu0 %v4241_v6  ;;  %4215 = vmatprep.subr.bf16.mxu1 %v4241_v6 }
  0x1d   : > { %4036 = vmatpush3.bf16.msra.mxu0 %v4241_v6  ;;  %4223 = vmatpush3.bf16.msra.mxu1 %v4241_v6 }
  0x1e   : > { %4037 = vmatprep.subr.bf16.mxu0 %v4242_v7  ;;  %4216 = vmatprep.subr.bf16.mxu1 %v4242_v7 }
  0x21   : > { %4038 = vmatpush3.bf16.msra.mxu0 %v4242_v7  ;;  %4224 = vmatpush3.bf16.msra.mxu1 %v4242_v7 }
  0x22   : > { %4039 = vmatprep.subr.bf16.mxu0 %v4243_v8  ;;  %4217 = vmatprep.subr.bf16.mxu1 %v4243_v8 }
  0x25   : > { %4040 = vmatpush3.bf16.msra.mxu0 %v4243_v8  ;;  %4225 = vmatpush3.bf16.msra.mxu1 %v4243_v8 }
  0x26   : > { %4041 = vmatprep.subr.bf16.mxu0 %v4244_v9  ;;  %4218 = vmatprep.subr.bf16.mxu1 %v4244_v9 }
  0x29   : > { %4042 = vmatpush3.bf16.msra.mxu0 %v4244_v9  ;;  %4226 = vmatpush3.bf16.msra.mxu1 %v4244_v9 }
  0x2a   : > { %4075 = vmatprep.subr.bf16.mxu1 %v4261_v24 }
  0x2c   : > { %4044 = vmatmul.mubr.bf16.vlgmr.msra.gmra.mxu0 %v4246_v10  ;;  %4060 = vmatmul.mubr.bf16.vlgmr.msra.gmra.mxu1 %v4248_v11 }
  0x2d   : > { %4047 = vmatprep.mubr.bf16.mxu0 %v4249_v12  ;;  %4063 = vmatprep.mubr.bf16.mxu1 %v4251_v13 }
  0x2e   : > { %4076 = vmatpush3.bf16.msra.mxu1 %v4261_v24 }
  0x2f   : > { %4077 = vmatprep.subr.bf16.mxu1 %v4262_v25 }
  0x32   : > { %4078 = vmatpush3.bf16.msra.mxu1 %v4262_v25 }
  0x33   : > { %4079 = vmatprep.subr.bf16.mxu1 %v4263_v26 }
  0x34   : > { %4048 = vmatmul.mubr.bf16.gmra.mxu0 %v4250_v14  ;;  %4064 = vmatmul.mubr.bf16.gmra.mxu1 %v4252_v15 }
  0x35   : > { %4051 = vmatprep.mubr.bf16.mxu0 %v4253_v16  ;;  %4067 = vmatprep.mubr.bf16.mxu1 %v4255_v17 }
  0x36   : > { %4080 = vmatpush3.bf16.msra.mxu1 %v4263_v26 }
  0x37   : > { %4081 = vmatprep.subr.bf16.mxu1 %v4264_v27 }
  0x3a   : > { %4082 = vmatpush3.bf16.msra.mxu1 %v4264_v27 }
  0x3b   : > { %4083 = vmatprep.subr.bf16.mxu1 %v4265_v28 }
  0x3c   : > { %4052 = vmatmul.mubr.bf16.gmra.mxu0 %v4254_v18  ;;  %4068 = vmatmul.mubr.bf16.gmra.mxu1 %v4256_v19 }
  0x3d   : > { %4055 = vmatprep.mubr.bf16.mxu0 %v4257_v20  ;;  %4071 = vmatprep.mubr.bf16.mxu1 %v4259_v21 }
  0x3e   : > { %4084 = vmatpush3.bf16.msra.mxu1 %v4265_v28 }
  0x3f   : > { %4085 = vmatprep.subr.bf16.mxu1 %v4266_v29 }
  0x42   : > { %4086 = vmatpush3.bf16.msra.mxu1 %v4266_v29 }
  0x43   : > { %4087 = vmatprep.subr.bf16.mxu1 %v4267_v30 }
  0x44   : > { %4056 = vmatmul.mubr.bf16.gmra.mxu0 %v4258_v22  ;;  %4072 = vmatmul.mubr.bf16.gmra.mxu1 %v4260_v23 }
  0x46   : > { %4088 = vmatpush3.bf16.msra.mxu1 %v4267_v30 }
  0x47   : > { %4089 = vmatprep.subr.bf16.mxu1 %v4268_v31 }
  0x4a   : > { %4090 = vmatpush3.bf16.msra.mxu1 %v4268_v31 }
  0xec   : > { %v4045_v32 = vpop.f32.mrf.mxu0  ;;  %v4061_v33 = vpop.f32.mrf.mxu1 }
  0xed   : > { %v4657_v39 = vadd.f32 %v4045_v32, %v4652_v34  ;;  %v4710_v14 = vadd.f32 %v4061_v33, %v4652_v34 }
  0xee   : > { %v675_v35 = vpop.f32.mrf.mxu0  ;;  %v739_v36 = vpop.f32.mrf.mxu1 }
  0xef   : > { %v4666_v44 = vadd.f32 %v4652_v34, %v675_v35  ;;  %v804_v46 = vmul.f32 0.5, %v4657_v39  ;;  %v4715_v18 = vadd.f32 %v4652_v34, %v739_v36  ;;  %v820_v27 = vmul.f32 0.5, %v4710_v14 }
  0xf0   : > { %v4046_v37 = vpop.f32.mrf.mxu0  ;;  %v4654_v38 = vpop.f32.mrf.mxu1 }
  0xf1   : > { %v4660_v42 = vadd.f32 %v4046_v37, %v4652_v34  ;;  %v802_v52 = vmul.f32 0.5, %v4666_v44  ;;  %4293 = vtanh.f32 %v804_v46  ;;  %v818_v31 = vmul.f32 0.5, %v4715_v18 }
  0xf2   : > { %v678_v40 = vpop.f32.mrf.mxu0  ;;  %v742_v41 = vpop.f32.mrf.mxu1  ;;  %v4727_v32 = vadd.f32 %v4654_v38, %v4652_v34 }
  0xf3   : > { %v4663_v43 = vadd.f32 %v4652_v34, %v678_v40  ;;  %v805_v50 = vmul.f32 0.5, %v4660_v42  ;;  %v4721_v23 = vadd.f32 %v4652_v34, %v742_v41 }
  0xf4   : > { %v4049_v45 = vpop.f32.mrf.mxu0  ;;  %v4669_v47 = vpop.f32.mrf.mxu1 }
  0xf5   : > { %v803_v48 = vmul.f32 0.5, %v4663_v43  ;;  %v4687_v60 = vadd.f32 %v4049_v45, %v4652_v34  ;;  %v819_v40 = vmul.f32 0.5, %v4721_v23 }
  0xf6   : > { %v691_v49 = vpop.f32.mrf.mxu0  ;;  %v4677_v54 = vpop.f32.mrf.mxu1 }
  0xf7   : > { %v4674_v51 = vadd.f32 %v4652_v34, %v691_v49  ;;  %4295 = vtanh.f32 %v803_v48  ;;  %v808_v3 = vmul.f32 0.5, %v4687_v60 }
  0xf8   : > { %v4050_v53 = vpop.f32.mrf.mxu0  ;;  %4297 = vtanh.f32 %v805_v50  ;;  %v4690_v62 = vpop.f32.mrf.mxu1 }
  0xf9   : > { %v806_v55 = vmul.f32 0.5, %v4674_v51  ;;  %v4681_v57 = vadd.f32 %v4050_v53, %v4652_v34  ;;  %4299 = vtanh.f32 %v802_v52  ;;  %v821_v52 = vmul.f32 0.5, %v4727_v32 }
  0xfa   : > { %v694_v56 = vpop.f32.mrf.mxu0  ;;  %v758_v5 = vpop.f32.mrf.mxu1 }
  0xfb   : > { %v4684_v58 = vadd.f32 %v4652_v34, %v694_v56  ;;  %4301 = vtanh.f32 %v806_v55  ;;  %v809_v0 = vmul.f32 0.5, %v4681_v57  ;;  %v4741_v56 = vadd.f32 %v4652_v34, %v4677_v54 }
  0xfc   : > { %v4053_v59 = vpop.f32.mrf.mxu0  ;;  %v4707_v10 = vpop.f32.mrf.mxu1 }
  0xfd   : > { %v807_v61 = vmul.f32 0.5, %v4684_v58  ;;  %v4702_v8 = vadd.f32 %v4053_v59, %v4652_v34 }
  0xfe   : > { %v707_v63 = vpop.f32.mrf.mxu0  ;;  %v4294_v11 = vpop.eup %4293 }
  0xff   : > { %4303 = vtanh.f32 %v807_v61  ;;  %v4694_v1 = vadd.f32 %v4652_v34, %v707_v63  ;;  %v812_v20 = vmul.f32 0.5, %v4702_v8  ;;  %v4718_v21 = vpop.f32.mrf.mxu1  ;;  %v868_v29 = vmul.f32 0.5, %v4294_v11 }
 0x100   : > { %v4054_v2 = vpop.f32.mrf.mxu0  ;;  %4305 = vtanh.f32 %v809_v0 }
 0x101   : > { %v810_v4 = vmul.f32 0.5, %v4694_v1  ;;  %v4699_v7 = vadd.f32 %v4054_v2, %v4652_v34  ;;  %v4732_v36 = vpop.f32.mrf.mxu1  ;;  %v900_v38 = vadd.f32 0.5, %v868_v29 }
 0x102   : > { %v710_v6 = vpop.f32.mrf.mxu0 }
 0x103   : > { %4307 = vtanh.f32 %v810_v4  ;;  %v4705_v9 = vadd.f32 %v4652_v34, %v710_v6  ;;  %v813_v15 = vmul.f32 0.5, %v4699_v7  ;;  %v774_v63 = vpop.f32.mrf.mxu1 }
 0x104   : > { %4309 = vtanh.f32 %v808_v3  ;;  %v4057_v12 = vpop.f32.mrf.mxu0  ;;  %v4296_v13 = vpop.eup %4295  ;;  %v4749_v3 = vadd.f32 %v4652_v34, %v758_v5 }
 0x105   : > { %v811_v16 = vmul.f32 0.5, %v4705_v9  ;;  %v4298_v17 = vpop.eup %4297  ;;  %v867_v22 = vmul.f32 0.5, %v4296_v13  ;;  %v4730_v35 = vadd.f32 %v4057_v12, %v4652_v34  ;;  %v4758_v13 = vmul.f32 %v900_v38, %v4657_v39 }
 0x106   : > { %v4300_v19 = vpop.eup %4299  ;;  %v723_v24 = vpop.f32.mrf.mxu0  ;;  %v869_v26 = vmul.f32 0.5, %v4298_v17 }
 0x107   : > { %4311 = vtanh.f32 %v811_v16  ;;  %v866_v30 = vmul.f32 0.5, %v4300_v19  ;;  %v899_v37 = vadd.f32 0.5, %v867_v22  ;;  %v4736_v48 = vadd.f32 %v4652_v34, %v723_v24  ;;  %7012 = vst [vmem:[#allocation4_spill] sm:$0xff] %v4758_v13  ;;  %v4770_v19 = vpop.f32.mrf.mxu1 }
 0x108   : > { %v4302_v25 = vpop.eup %4301  ;;  %4313 = vtanh.f32 %v813_v15  ;;  %v4058_v41 = vpop.f32.mrf.mxu0  ;;  %v901_v45 = vadd.f32 0.5, %v869_v26  ;;  %v816_v59 = vmul.f32 0.5, %v4730_v35 }
 0x109   : > { %4315 = vtanh.f32 %v812_v20  ;;  %v870_v46 = vmul.f32 0.5, %v4302_v25  ;;  %v898_v50 = vadd.f32 0.5, %v866_v30  ;;  %v814_v61 = vmul.f32 0.5, %v4736_v48 }
 0x10a   : > { %4317 = vtanh.f32 %v820_v27  ;;  %v4746_v2 = vmul.f32 %v899_v37, %v4663_v43  ;;  %v4752_v4 = vadd.f32 %v4058_v41, %v4652_v34  ;;  %v726_v6 = vpop.f32.mrf.mxu0  ;;  %v4755_v54 = vmul.f32 %v901_v45, %v4660_v42 }
 0x10b   : > { %4319 = vtanh.f32 %v818_v31  ;;  %v902_v11 = vadd.f32 0.5, %v870_v46  ;;  %v4761_v43 = vmul.f32 %v898_v50, %v4666_v44  ;;  %v4768_v42 = vadd.f32 %v4652_v34, %v726_v6 }
 0x10c   : > { %v4304_v28 = vpop.eup %4303  ;;  %7010 = vst [vmem:[#allocation2_spill] sm:$0xff] %v4746_v2  ;;  %4321 = vtanh.f32 %v819_v40  ;;  %7011 = vst [vmem:[#allocation3_spill] sm:$0xff] %v4755_v54  ;;  %v817_v5 = vmul.f32 0.5, %v4752_v4  ;;  %v822_v20 = vmul.f32 0.5, %v4741_v56  ;;  %v963_v22 = vpack.c.bf16 %v4755_v54, %v4758_v13 }
 0x10d   : > { %v871_v33 = vmul.f32 0.5, %v4304_v28  ;;  %v4306_v49 = vpop.eup %4305  ;;  %4323 = vtanh.f32 %v814_v61  ;;  %7013 = vst [vmem:[#allocation5_spill] sm:$0xff] %v4761_v43  ;;  %v962_v39 = vpack.c.bf16 %v4746_v2, %v4761_v43  ;;  %v4778_v24 = vmul.f32 %v902_v11, %v4674_v51 }
 0x10e   : > { %v873_v12 = vmul.f32 0.5, %v4306_v49  ;;  %4325 = vtanh.f32 %v816_v59  ;;  %v815_v25 = vmul.f32 0.5, %v4768_v42  ;;  %v823_v28 = vmul.f32 0.5, %v4749_v3 }
 0x10f   : > { %v903_v55 = vadd.f32 0.5, %v871_v33  ;;  %4327 = vtanh.f32 %v817_v5  ;;  %7015 = vst [vmem:[#allocation7_spill] sm:$0xff] %v4778_v24  ;;  %4091 = vmatprep.mubr.bf16.mxu1 %v962_v39  ;;  %v4784_v31 = vadd.f32 %v4669_v47, %v4652_v34  ;;  %v787_v33 = vpop.f32.mrf.mxu1  ;;  %v4790_v40 = vadd.f32 %v4690_v62, %v4652_v34 }
 0x110   : > { %v4308_v53 = vpop.eup %4307  ;;  %4329 = vtanh.f32 %v821_v52  ;;  %4092 = vmatmul.mubr.bf16.vlgmr.msra.gmra.mxu1 %v963_v22  ;;  %v4797_v47 = vadd.f32 %v4652_v34, %v4718_v21  ;;  %v4806_v62 = vadd.f32 %v4652_v34, %v774_v63  ;;  %v4828_v39 = vadd.f32 %v4652_v34, %v787_v33 }
 0x111   : > { %v4310_v0 = vpop.eup %4309  ;;  %v874_v15 = vmul.f32 0.5, %v4308_v53  ;;  %v4765_v17 = vmul.f32 %v903_v55, %v4684_v58  ;;  %v905_v58 = vadd.f32 0.5, %v873_v12  ;;  %4331 = vtanh.f32 %v815_v25  ;;  %v4074_v55 = vpop.f32.mrf.mxu1 }
 0x112   : > { %v872_v16 = vmul.f32 0.5, %v4310_v0  ;;  %4333 = vtanh.f32 %v822_v20  ;;  %v824_v53 = vmul.f32 0.5, %v4784_v31  ;;  %v825_v59 = vmul.f32 0.5, %v4790_v40 }
 0x113   : > { %7014 = vst [vmem:[#allocation6_spill] sm:$0xff] %v4765_v17  ;;  %v906_v27 = vadd.f32 0.5, %v874_v15  ;;  %v964_v51 = vpack.c.bf16 %v4765_v17, %v4778_v24  ;;  %v4793_v45 = vmul.f32 %v905_v58, %v4681_v57  ;;  %4335 = vtanh.f32 %v823_v28  ;;  %v790_v15 = vpop.f32.mrf.mxu1 }
 0x114   : > { %v4312_v44 = vpop.eup %4311  ;;  %v904_v30 = vadd.f32 0.5, %v872_v16  ;;  %4337 = vtanh.f32 %v824_v53  ;;  %v4821_v12 = vadd.f32 %v4707_v10, %v4652_v34  ;;  %v4825_v20 = vadd.f32 %v4732_v36, %v4652_v34 }
 0x115   : > { %v4314_v26 = vpop.eup %4313  ;;  %v875_v29 = vmul.f32 0.5, %v4312_v44  ;;  %7016 = vst [vmem:[#allocation8_spill] sm:$0xff] %v4793_v45  ;;  %4095 = vmatprep.mubr.bf16.mxu1 %v964_v51  ;;  %v4800_v38 = vmul.f32 %v906_v27, %v4694_v1  ;;  %4339 = vtanh.f32 %v825_v59  ;;  %v830_v51 = vmul.f32 0.5, %v4828_v39 }
 0x116   : > { %v4316_v37 = vpop.eup %4315  ;;  %v877_v46 = vmul.f32 0.5, %v4314_v26  ;;  %v4809_v52 = vmul.f32 %v904_v30, %v4687_v60  ;;  %v827_v60 = vmul.f32 0.5, %v4806_v62  ;;  %v4834_v26 = vadd.f32 %v4652_v34, %v790_v15 }
 0x117   : > { %v907_v41 = vadd.f32 0.5, %v875_v29  ;;  %v4318_v49 = vpop.eup %4317  ;;  %7017 = vst [vmem:[#allocation9_spill] sm:$0xff] %v4800_v38  ;;  %v876_v21 = vmul.f32 0.5, %v4316_v37  ;;  %v828_v28 = vmul.f32 0.5, %v4821_v12 }
 0x118   : > { %v4320_v57 = vpop.eup %4319  ;;  %7019 = vst [vmem:[#allocation11_spill] sm:$0xff] %v4809_v52  ;;  %v909_v0 = vadd.f32 0.5, %v877_v46  ;;  %v965_v63 = vpack.c.bf16 %v4793_v45, %v4809_v52 }
 0x119   : > { %v4803_v50 = vmul.f32 %v907_v41, %v4705_v9  ;;  %v4322_v61 = vpop.eup %4321  ;;  %v826_v9 = vmul.f32 0.5, %v4797_v47  ;;  %v908_v11 = vadd.f32 0.5, %v876_v21  ;;  %v882_v16 = vmul.f32 0.5, %v4320_v57 }
 0x11a   : > { %v4324_v6 = vpop.eup %4323  ;;  %4096 = vmatmul.mubr.bf16.gmra.mxu1 %v965_v63  ;;  %v4831_v22 = vmul.f32 %v909_v0, %v4699_v7  ;;  %v883_v58 = vmul.f32 0.5, %v4322_v61  ;;  %v829_v7 = vmul.f32 0.5, %v4825_v20  ;;  %v884_v21 = vmul.f32 0.5, %v4318_v49 }
 0x11b   : > { %7018 = vst [vmem:[#allocation10_spill] sm:$0xff] %v4803_v50  ;;  %v966_v1 = vpack.c.bf16 %v4803_v50, %v4800_v38  ;;  %v4326_v5 = vpop.eup %4325  ;;  %4341 = vtanh.f32 %v826_v9  ;;  %v878_v10 = vmul.f32 0.5, %v4324_v6  ;;  %v4837_v36 = vmul.f32 %v908_v11, %v4702_v8 }
 0x11c   : > { %v4328_v44 = vpop.eup %4327  ;;  %7020 = vst [vmem:[#allocation12_spill] sm:$0xff] %v4831_v22  ;;  %4343 = vtanh.f32 %v827_v60  ;;  %v880_v29 = vmul.f32 0.5, %v4326_v5  ;;  %v914_v33 = vadd.f32 0.5, %v882_v16  ;;  %v915_v59 = vadd.f32 0.5, %v883_v58 }
 0x11d   : > { %4099 = vmatprep.mubr.bf16.mxu1 %v966_v1  ;;  %v881_v25 = vmul.f32 0.5, %v4328_v44  ;;  %v4330_v27 = vpop.eup %4329  ;;  %7021 = vst [vmem:[#allocation13_spill] sm:$0xff] %v4837_v36  ;;  %v910_v37 = vadd.f32 0.5, %v878_v10  ;;  %v967_v57 = vpack.c.bf16 %v4831_v22, %v4837_v36  ;;  %v831_v8 = vmul.f32 0.5, %v4834_v26 }
 0x11e   : > { %v4332_v30 = vpop.eup %4331  ;;  %v885_v61 = vmul.f32 0.5, %v4330_v27  ;;  %4345 = vtanh.f32 %v828_v28  ;;  %v912_v0 = vadd.f32 0.5, %v880_v29  ;;  %v4846_v63 = vmul.f32 %v914_v33, %v4715_v18 }
 0x11f   : > { %v913_v41 = vadd.f32 0.5, %v881_v25  ;;  %v879_v46 = vmul.f32 0.5, %v4332_v30  ;;  %v4334_v53 = vpop.eup %4333  ;;  %4347 = vtanh.f32 %v829_v7  ;;  %v4850_v6 = vadd.f32 %v4770_v19, %v4652_v34 }
 0x120   : > { %v4336_v1 = vpop.eup %4335  ;;  %7022 = vst [vmem:[#allocation14_spill] sm:$0xff] %v4846_v63  ;;  %v4853_v60 = vadd.f32 %v4074_v55, %v4652_v34  ;;  %v4856_v49 = vmul.f32 %v910_v37, %v4736_v48  ;;  %4349 = vtanh.f32 %v830_v51  ;;  %v4865_v18 = vmul.f32 %v915_v59, %v4721_v23 }
 0x121   : > { %v911_v9 = vadd.f32 0.5, %v879_v46  ;;  %v4859_v11 = vmul.f32 %v913_v41, %v4752_v4  ;;  %v886_v5 = vmul.f32 0.5, %v4334_v53  ;;  %v887_v16 = vmul.f32 0.5, %v4336_v1  ;;  %v4338_v48 = vpop.eup %4337 }
 0x122   : > { %4100 = vmatmul.mubr.bf16.gmra.mxu1 %v967_v57  ;;  %7023 = vst [vmem:[#allocation15_spill] sm:$0xff] %v4856_v49  ;;  %7026 = vst [vmem:[#allocation18_spill] sm:$0xff] %v4865_v18  ;;  %4351 = vtanh.f32 %v831_v8  ;;  %v4868_v19 = vmul.f32 %v912_v0, %v4730_v35  ;;  %v916_v55 = vadd.f32 0.5, %v884_v21  ;;  %v832_v4 = vmul.f32 0.5, %v4850_v6  ;;  %v4340_v44 = vpop.eup %4339 }
 0x123   : > { %7024 = vst [vmem:[#allocation16_spill] sm:$0xff] %v4859_v11  ;;  %v4862_v15 = vmul.f32 %v911_v9, %v4768_v42  ;;  %v917_v42 = vadd.f32 0.5, %v885_v61  ;;  %v833_v10 = vmul.f32 0.5, %v4853_v60  ;;  %v918_v25 = vadd.f32 0.5, %v886_v5 }
 0x124   : > { %7027 = vst [vmem:[#allocation19_spill] sm:$0xff] %v4868_v19  ;;  %v969_v23 = vpack.c.bf16 %v4859_v11, %v4868_v19  ;;  %v919_v27 = vadd.f32 0.5, %v887_v16  ;;  %v970_v35 = vpack.c.bf16 %v4865_v18, %v4846_v63  ;;  %v4879_v29 = vmul.f32 %v916_v55, %v4710_v14 }
 0x125   : > { %7025 = vst [vmem:[#allocation17_spill] sm:$0xff] %v4862_v15  ;;  %v968_v34 = vpack.c.bf16 %v4862_v15, %v4856_v49  ;;  %4353 = vtanh.f32 %v832_v4  ;;  %v4882_v30 = vmul.f32 %v917_v42, %v4727_v32  ;;  %v888_v33 = vmul.f32 0.5, %v4338_v48 }
 0x126   : > { %7028 = vst [vmem:[#allocation20_spill] sm:$0xff] %v4879_v29  ;;  %v889_v7 = vmul.f32 0.5, %v4340_v44  ;;  %4355 = vtanh.f32 %v833_v10  ;;  %v4885_v51 = vmul.f32 %v918_v25, %v4741_v56  ;;  %v4888_v37 = vmul.f32 %v919_v27, %v4749_v3 }
 0x127   : > { %4103 = vmatprep.mubr.bf16.mxu1 %v968_v34  ;;  %7029 = vst [vmem:[#allocation21_spill] sm:$0xff] %v4882_v30  ;;  %v920_v14 = vadd.f32 0.5, %v888_v33  ;;  %v971_v59 = vpack.c.bf16 %v4882_v30, %v4879_v29 }
 0x128   : > { %v4342_v58 = vpop.eup %4341  ;;  %7030 = vst [vmem:[#allocation22_spill] sm:$0xff] %v4885_v51  ;;  %7031 = vst [vmem:[#allocation23_spill] sm:$0xff] %v4888_v37  ;;  %v921_v21 = vadd.f32 0.5, %v889_v7  ;;  %v972_v61 = vpack.c.bf16 %v4888_v37, %v4885_v51 }
 0x129   : > { %v4344_v28 = vpop.eup %4343  ;;  %v890_v41 = vmul.f32 0.5, %v4342_v58  ;;  %v4895_v3 = vmul.f32 %v920_v14, %v4784_v31 }
 0x12a   : > { %4104 = vmatmul.mubr.bf16.gmra.mxu1 %v969_v23  ;;  %v891_v46 = vmul.f32 0.5, %v4344_v28  ;;  %v4898_v0 = vmul.f32 %v921_v21, %v4790_v40  ;;  %v4937_v21 = vld [vmem:[%s6891_s4] ss:$0 sm:$0xff] }
 0x12b   : > { %4107 = vmatprep.mubr.bf16.mxu1 %v970_v35  ;;  %v4346_v57 = vpop.eup %4345  ;;  %v922_v8 = vadd.f32 0.5, %v890_v41  ;;  %7032 = vst [vmem:[#allocation24_spill] sm:$0xff] %v4895_v3  ;;  %7042 = vst [vmem:[#allocation34_spill] sm:$0xff] %v4937_v21 }
 0x12c   : > { %v4348_v53 = vpop.eup %4347  ;;  %v923_v1 = vadd.f32 0.5, %v891_v46  ;;  %7033 = vst [vmem:[#allocation25_spill] sm:$0xff] %v4898_v0  ;;  %v892_v9 = vmul.f32 0.5, %v4346_v57  ;;  %v973_v31 = vpack.c.bf16 %v4898_v0, %v4895_v3 }
 0x12d   : > { %v4350_v32 = vpop.eup %4349  ;;  %v893_v5 = vmul.f32 0.5, %v4348_v53  ;;  %v4901_v16 = vmul.f32 %v922_v8, %v4797_v47 }
 0x12e   : > { %v4904_v34 = vmul.f32 %v923_v1, %v4806_v62  ;;  %v894_v48 = vmul.f32 0.5, %v4350_v32  ;;  %v924_v44 = vadd.f32 0.5, %v892_v9 }
 0x12f   : > { %v4352_v56 = vpop.eup %4351  ;;  %7034 = vst [vmem:[#allocation26_spill] sm:$0xff] %v4901_v16  ;;  %v925_v42 = vadd.f32 0.5, %v893_v5 }
 0x130   : > { %7035 = vst [vmem:[#allocation27_spill] sm:$0xff] %v4904_v34  ;;  %v895_v55 = vmul.f32 0.5, %v4352_v56  ;;  %v926_v23 = vadd.f32 0.5, %v894_v48  ;;  %v974_v58 = vpack.c.bf16 %v4904_v34, %v4901_v16  ;;  %v4911_v47 = vmul.f32 %v924_v44, %v4821_v12 }
 0x131   : > { %v4914_v62 = vmul.f32 %v925_v42, %v4825_v20 }
 0x132   : > { %4108 = vmatmul.mubr.bf16.gmra.mxu1 %v971_v59  ;;  %v4354_v4 = vpop.eup %4353  ;;  %v927_v40 = vadd.f32 0.5, %v895_v55  ;;  %7036 = vst [vmem:[#allocation28_spill] sm:$0xff] %v4911_v47  ;;  %v4917_v35 = vmul.f32 %v926_v23, %v4828_v39 }
 0x133   : > { %4111 = vmatprep.mubr.bf16.mxu1 %v972_v61  ;;  %v4356_v10 = vpop.eup %4355  ;;  %7037 = vst [vmem:[#allocation29_spill] sm:$0xff] %v4914_v62  ;;  %v896_v25 = vmul.f32 0.5, %v4354_v4  ;;  %v975_v41 = vpack.c.bf16 %v4914_v62, %v4911_v47 }
 0x134   : > { %v897_v27 = vmul.f32 0.5, %v4356_v10  ;;  %7038 = vst [vmem:[#allocation30_spill] sm:$0xff] %v4917_v35  ;;  %v4920_v28 = vmul.f32 %v927_v40, %v4834_v26 }
 0x135   : > { %v928_v33 = vadd.f32 0.5, %v896_v25  ;;  %v1475_v25 = vld [vmem:[%s6892_s5 + $0x4] sm:$0x1] }
 0x136   : > { %7039 = vst [vmem:[#allocation31_spill] sm:$0xff] %v4920_v28  ;;  %v929_v7 = vadd.f32 0.5, %v897_v27  ;;  %v976_v12 = vpack.c.bf16 %v4920_v28, %v4917_v35 }
 0x137   : > { %v4927_v20 = vmul.f32 %v928_v33, %v4850_v6 }
 0x138   : > { %v4930_v46 = vmul.f32 %v929_v7, %v4853_v60 }
 0x139   : > { %7040 = vst [vmem:[#allocation32_spill] sm:$0xff] %v4927_v20 }
 0x13a   : > { %4112 = vmatmul.mubr.bf16.gmra.mxu1 %v973_v31  ;;  %7041 = vst [vmem:[#allocation33_spill] sm:$0xff] %v4930_v46  ;;  %v977_v39 = vpack.c.bf16 %v4930_v46, %v4927_v20  ;;  %v1370_v31 = vlaneseq }
 0x13b   : > { %4115 = vmatprep.mubr.bf16.mxu1 %v974_v58  ;;  %v1472_v58 = vld [vmem:[%s6892_s5 + $0x1] sm:$0x1] }
 0x13c   : > { %v4963_v40 = vshrl.u32 %v1370_v31, 7 }
 0x13e   : > { %vm1521_vm0 = vcmp.lt.s32.totalorder %v4963_v40, 1  ;;  %vm1622_vm1 = vcmp.lt.s32.totalorder %v4963_v40, 7  ;;  %vm1403_vm2 = vcmp.gt.s32.totalorder %v4963_v40, 0 }
 0x142   : > { %4116 = vmatmul.mubr.bf16.gmra.mxu1 %v975_v41  ;;  %v1478_v41 = vld [vmem:[%s6892_s5 + $0x7] sm:$0x1] }
 0x143   : > { %4119 = vmatprep.mubr.bf16.mxu1 %v976_v12 }
 0x14a   : > { %4120 = vmatmul.mubr.bf16.gmra.mxu1 %v977_v39 }
 0x1d0   : > { %v4093_v26 = vpop.f32.mrf.mxu1 }
 0x1d1   : > { %v4940_v6 = vadd.f32 %v4093_v26, %v4937_v21  ;;  %v1481_v26 = vunpack.c.l.bf16 %v1472_v58  ;;  %v1474_v58 = vld [vmem:[%s6892_s5 + $0x3] sm:$0x1] }
 0x1d2   : > { %v1083_v57 = vpop.f32.mrf.mxu1  ;;  %v1483_v16 = vunpack.c.l.bf16 %v1474_v58 }
 0x1d3   : > { %v4946_v32 = vadd.f32 %v4937_v21, %v1083_v57  ;;  %v1212_v61 = vmul.f32 0.5, %v4940_v6  ;;  %v1484_v57 = vunpack.c.l.bf16 %v1475_v25  ;;  %v1476_v25 = vld [vmem:[%s6892_s5 + $0x5] sm:$0x1] }
 0x1d4   : > { %v4094_v53 = vpop.f32.mrf.mxu1  ;;  %v1485_v47 = vunpack.c.l.bf16 %v1476_v25 }
 0x1d5   : > { %v4949_v8 = vadd.f32 %v4094_v53, %v4937_v21  ;;  %v1210_v9 = vmul.f32 0.5, %v4946_v32  ;;  %4357 = vtanh.f32 %v1212_v61  ;;  %v4981_v53 = vsub.s32 0, %v4963_v40 }
 0x1d6   : > { %v1086_v14 = vpop.f32.mrf.mxu1  ;;  %v1487_v61 = vunpack.c.l.bf16 %v1478_v41 }
 0x1d7   : > { %v4943_v60 = vadd.f32 %v4937_v21, %v1086_v14  ;;  %v1213_v48 = vmul.f32 0.5, %v4949_v8  ;;  %7043 = vst [vmem:[#allocation35_spill] sm:$0xff] %v4981_v53  ;;  %v4992_v31 = vrot.slane %v1484_v57, %v4981_v53  ;;  %v1479_v57 = vld [vmem:[%s6892_s5 + $0x8] sm:$0x1]  ;;  %v5036_v58 = vrot.slane %v1483_v16, %v4981_v53 }
 0x1d8   : > { %v5013_v20 = vrot.slane %v1487_v61, %v4981_v53  ;;  %v1488_v51 = vunpack.c.l.bf16 %v1479_v57 }
 0x1d9   : > { %v1211_v56 = vmul.f32 0.5, %v4943_v60 }
 0x1da   : > { %v4097_v59 = vpop.f32.mrf.mxu1  ;;  %7044 = vst [vmem:[#allocation36_spill] sm:$0xff] %v5013_v20 }
 0x1db   : > { %4359 = vtanh.f32 %v1211_v56  ;;  %v4960_v42 = vadd.f32 %v4097_v59, %v4937_v21  ;;  %v1471_v56 = vld [vmem:[%s6892_s5] sm:$0x1] }
 0x1dc   : > { %v1099_v1 = vpop.f32.mrf.mxu1  ;;  %4361 = vtanh.f32 %v1210_v9  ;;  %v1480_v28 = vunpack.c.l.bf16 %v1471_v56 }
 0x1dd   : > { %v4955_v5 = vadd.f32 %v4937_v21, %v1099_v1  ;;  %4363 = vtanh.f32 %v1213_v48  ;;  %v1216_v23 = vmul.f32 0.5, %v4960_v42 }
 0x1de   : > { %v4098_v55 = vpop.f32.mrf.mxu1 }
 0x1df   : > { %v1214_v4 = vmul.f32 0.5, %v4955_v5  ;;  %v4978_v12 = vadd.f32 %v4098_v55, %v4937_v21 }
 0x1e0   : > { %v1102_v44 = vpop.f32.mrf.mxu1 }
 0x1e1   : > { %4365 = vtanh.f32 %v1214_v4  ;;  %v4972_v27 = vadd.f32 %v4937_v21, %v1102_v44  ;;  %v1217_v55 = vmul.f32 0.5, %v4978_v12  ;;  %v4989_v44 = vrot.slane %v1481_v26, %v4981_v53  ;;  %v1477_v26 = vld [vmem:[%s6892_s5 + $0x6] sm:$0x1] }
 0x1e2   : > { %v4101_v10 = vpop.f32.mrf.mxu1  ;;  %v4358_v7 = vpop.eup %4357  ;;  %4367 = vtanh.f32 %v1216_v23  ;;  %v1473_v23 = vld [vmem:[%s6892_s5 + $0x2] sm:$0x1]  ;;  %v1486_v37 = vunpack.c.l.bf16 %v1477_v26 }
 0x1e3   : > { %v1276_v1 = vmul.f32 0.5, %v4358_v7  ;;  %v1215_v9 = vmul.f32 0.5, %v4972_v27  ;;  %v5010_v35 = vadd.f32 %v4101_v10, %v4937_v21  ;;  %v1482_v34 = vunpack.c.l.bf16 %v1473_v23 }
 0x1e4   : > { %v1115_v33 = vpop.f32.mrf.mxu1 }
 0x1e5   : > { %v1308_v46 = vadd.f32 0.5, %v1276_v1  ;;  %4369 = vtanh.f32 %v1215_v9  ;;  %v5019_v1 = vrot.slane %v1480_v28, %v4981_v53  ;;  %v1220_v61 = vmul.f32 0.5, %v5010_v35 }
 0x1e6   : > { %v4102_v48 = vpop.f32.mrf.mxu1  ;;  %4371 = vtanh.f32 %v1217_v55  ;;  %v5033_v28 = vrot.slane %v1482_v34, %v4981_v53 }
 0x1e7   : > { %v1340_v9 = vmul.f32 %v1308_v46, %v4940_v6  ;;  %v5029_v55 = vadd.f32 %v4102_v48, %v4937_v21  ;;  %v5048_v48 = vrot.slane %v1486_v37, %v4981_v53  ;;  %4373 = vtanh.f32 %v1220_v61 }
 0x1e8   : > { %v4360_v39 = vpop.eup %4359 }
 0x1e9   : > { %v4362_v14 = vpop.eup %4361  ;;  %v1275_v4 = vmul.f32 0.5, %v4360_v39  ;;  %v1221_v37 = vmul.f32 0.5, %v5029_v55 }
 0x1ea   : > { %v4364_v59 = vpop.eup %4363  ;;  %v1274_v41 = vmul.f32 0.5, %v4362_v14  ;;  %v5016_v14 = vadd.f32 %v4937_v21, %v1115_v33  ;;  %v5025_v33 = vadd.s32 8, %v4963_v40 }
 0x1eb   : > { %v1277_v39 = vmul.f32 0.5, %v4364_v59  ;;  %v1118_v59 = vpop.f32.mrf.mxu1  ;;  %v1307_v62 = vadd.f32 0.5, %v1275_v4 }
 0x1ec   : > { %v1306_v0 = vadd.f32 0.5, %v1274_v41  ;;  %v1218_v4 = vmul.f32 0.5, %v5016_v14  ;;  %v5042_v6 = vadd.f32 %v4937_v21, %v1118_v59  ;;  %v5051_v41 = vrot.slane %v1488_v51, %v4981_v53 }
 0x1ed   : > { %v1309_v10 = vadd.f32 0.5, %v1277_v39  ;;  %v4105_v23 = vpop.f32.mrf.mxu1  ;;  %v5039_v46 = vmul.f32 %v1307_v62, %v4943_v60  ;;  %v1491_v60 = vrot.slane %v1340_v9, 7  ;;  %vm1406_vm3 = vcmp.lt.s32.totalorder %v5025_v33, 15 }
 0x1ee   : > { %v4366_v7 = vpop.eup %4365  ;;  %v5054_v16 = vmul.f32 %v1306_v0, %v4946_v32  ;;  %4375 = vtanh.f32 %v1218_v4  ;;  %v1592_v39 = vrot.slane %v1340_v9, 1  ;;  %v1219_v0 = vmul.f32 0.5, %v5042_v6 }
 0x1ef   : > { %v1278_v56 = vmul.f32 0.5, %v4366_v7  ;;  %v4368_v25 = vpop.eup %4367  ;;  %v5045_v7 = vrot.slane %v1485_v47, %v4981_v53  ;;  %v5057_v62 = vmul.f32 %v1309_v10, %v4949_v8  ;;  %v1131_v47 = vpop.f32.mrf.mxu1  ;;  %v1490_v51 = vrot.slane %v5039_v46, 7 }
 0x1f0   : > { %7045 = vst [vmem:[#allocation37_spill] sm:$0xff] %v5054_v16  ;;  %v1280_v26 = vmul.f32 0.5, %v4368_v25  ;;  %v5065_v32 = vmul.f32 %v4989_v44, %v1340_v9  ;;  %v1591_v8 = vrot.slane %v5039_v46, 1  ;;  %v5072_v59 = vadd.f32 %v4105_v23, %v4937_v21 }
 0x1f1   : > { %v1310_v34 = vadd.f32 0.5, %v1278_v56  ;;  %v5075_v56 = vmul.f32 %v4992_v31, %v1340_v9  ;;  %v5078_v10 = vmul.f32 %v5013_v20, %v1340_v9  ;;  %v6919_v61 = vrot.slane %v5054_v16, 7  ;;  %v4106_v23 = vpop.f32.mrf.mxu1 }
 0x1f2   : > { %7046 = vst [vmem:[#allocation38_spill] sm:$0xff] %v5072_v59  ;;  %v5085_v3 = vmul.f32 %v4989_v44, %v5054_v16  ;;  %4377 = vtanh.f32 %v1221_v37  ;;  %v5090_v18 = vmul.f32 %v4992_v31, %v5054_v16  ;;  %v1312_v4 = vadd.f32 0.5, %v1280_v26 }
 0x1f3   : > { %v5069_v57 = vmul.f32 %v1310_v34, %v4955_v5  ;;  %v1593_v5 = vrot.slane %v5057_v62, 1  ;;  %v4370_v34 = vpop.eup %4369  ;;  %v1552_v9 = vsel %vm1521_vm0, %v6919_v61, %v1490_v51  ;;  %4379 = vtanh.f32 %v1219_v0 }
 0x1f4   : > { %7047 = vst [vmem:[#allocation39_spill] sm:$0xff] %v5085_v3  ;;  %7048 = vst [vmem:[#allocation40_spill] sm:$0xff] %v5090_v18  ;;  %v4372_v25 = vpop.eup %4371  ;;  %v1652_v63 = vsel %vm1622_vm1, %v1591_v8, %v1592_v39  ;;  %v5100_v37 = vmul.f32 0.5, %v5072_v59  ;;  %v5103_v29 = vadd.f32 %v4937_v21, %v1131_v47  ;;  %v7049_v15 = vrot.slane %v5057_v62, 7 }
 0x1f5   : > { %v1734_v26 = vmul.f32 %v4989_v44, %v5057_v62  ;;  %v1551_v0 = vsel %vm1521_vm0, %v1490_v51, %v1491_v60  ;;  %v5114_v61 = vadd.f32 %v4106_v23, %v4937_v21  ;;  %v1651_v30 = vsel %vm1622_vm1, %v1592_v39, %v1593_v5 }
 0x1f6   : > { %v1550_v49 = vsel %vm1521_vm0, %v1491_v60, %v7049_v15  ;;  %v1906_v47 = vmul.f32 %v4992_v31, %v5057_v62  ;;  %v1868_v11 = vmul.f32 %v5036_v58, %v1552_v9  ;;  %v1279_v19 = vmul.f32 0.5, %v4370_v34 }
 0x1f7   : > { %7050 = vst [vmem:[#allocation41_spill] sm:$0xff] %v5114_v61  ;;  %v2078_v15 = vmul.f32 %v5013_v20, %v5057_v62  ;;  %v1660_v50 = vsel %vm1406_vm3, %v1652_v63, 0.0  ;;  %v5126_v60 = vmul.f32 %v1312_v4, %v4960_v42  ;;  %v1281_v51 = vmul.f32 0.5, %v4372_v25  ;;  %v4374_v25 = vpop.eup %4373 }
 0x1f8   : > { %v1698_v23 = vmul.f32 %v5019_v1, %v1550_v49  ;;  %v1560_v39 = vsel %vm1403_vm2, %v1551_v0, 0.0  ;;  %v1904_v38 = vmul.f32 %v4992_v31, %v5039_v46  ;;  %v7051_v34 = vrot.slane %v5069_v57, 1 }
 0x1f9   : > { %v1801_v36 = vmul.f32 %v5033_v28, %v1651_v30  ;;  %v1870_v63 = vmul.f32 %v5036_v58, %v1550_v49  ;;  %v1973_v42 = vmul.f32 %v5045_v7, %v1651_v30  ;;  %v1696_v4 = vmul.f32 %v5019_v1, %v1552_v9 }
 0x1fa   : > { %v1650_v22 = vsel %vm1622_vm1, %v1593_v5, %v7051_v34  ;;  %v2042_v17 = vmul.f32 %v5048_v48, %v1550_v49  ;;  %v1936_v0 = vadd.f32 %v1904_v38, %v1868_v11  ;;  %v1972_v24 = vmul.f32 %v5045_v7, %v1660_v50 }
 0x1fb   : > { %v1311_v45 = vadd.f32 0.5, %v1279_v19  ;;  %v4376_v52 = vpop.eup %4375  ;;  %v2145_v2 = vmul.f32 %v5051_v41, %v1651_v30  ;;  %v1697_v5 = vmul.f32 %v5019_v1, %v1560_v39  ;;  %v1732_v34 = vmul.f32 %v4989_v44, %v5039_v46 }
 0x1fc   : > { %v1662_v43 = vsel %vm1406_vm3, %v1650_v22, 0.0  ;;  %v7052_v9 = vrot.slane %v5054_v16, 1  ;;  %v1869_v38 = vmul.f32 %v5036_v58, %v1560_v39  ;;  %v2041_v11 = vmul.f32 %v5048_v48, %v1560_v39 }
 0x1fd   : > { %v1493_v19 = vrot.slane %v5069_v57, 7  ;;  %v5156_v30 = vadd.f32 %v1734_v26, %v1698_v23  ;;  %v1764_v54 = vadd.f32 %v1732_v34, %v1696_v4  ;;  %v1800_v13 = vmul.f32 %v5033_v28, %v1660_v50  ;;  %v5172_v50 = vld [vmem:[%s6893_s6] ss:$0 sm:$0xff] }
 0x1fe   : > { %v1653_v49 = vsel %vm1622_vm1, %v7052_v9, %v1591_v8  ;;  %v1313_v46 = vadd.f32 0.5, %v1281_v51  ;;  %v1938_v53 = vadd.f32 %v1906_v47, %v1870_v63  ;;  %v2004_v18 = vadd.f32 %v1972_v24, %v1936_v0 }
 0x1ff   : > { %v2146_v22 = vmul.f32 %v5051_v41, %v1662_v43  ;;  %v5161_v3 = vmul.f32 %v1311_v45, %v4972_v27  ;;  %v5163_v8 = vpop.eup %4377  ;;  %v2110_v9 = vadd.f32 %v2078_v15, %v2042_v17  ;;  %v1765_v39 = vadd.f32 %v5065_v32, %v1697_v5 }
 0x200   : > { %v5167_v16 = vmul.f32 %v5033_v28, %v1653_v49  ;;  %v1282_v26 = vmul.f32 0.5, %v4376_v52  ;;  %v5174_v24 = vpop.eup %4379  ;;  %v1937_v47 = vadd.f32 %v5075_v56, %v1869_v38  ;;  %v5178_v45 = vmul.f32 %v5045_v7, %v1653_v49 }
 0x201   : > { %v2109_v17 = vadd.f32 %v5078_v10, %v2041_v11  ;;  %v7055_v27 = vrot.slane %v5057_v62, 7  ;;  %v5185_v15 = vadd.f32 %v1800_v13, %v1764_v54  ;;  %v1495_v51 = vrot.slane %v5126_v60, 7 }
 0x202   : > { %7053 = vst [vmem:[#allocation42_spill] sm:$0xff] %v5167_v16  ;;  %7054 = vst [vmem:[#allocation43_spill] sm:$0xff] %v5178_v45  ;;  %v1596_v52 = vrot.slane %v5126_v60, 1  ;;  %v5190_v23 = vmul.f32 %v1313_v46, %v4978_v12  ;;  %v2215_v56 = vadd.f32 %v5172_v50, %v2004_v18  ;;  %v5195_v63 = vmul.f32 %v4989_v44, %v5126_v60 }
 0x203   : > { %v1549_v32 = vsel %vm1521_vm0, %v7055_v27, %v1493_v19  ;;  %v2178_v10 = vadd.f32 %v2146_v22, %v2110_v9  ;;  %v1494_v62 = vrot.slane %v5161_v3, 7  ;;  %v5198_v4 = vadd.f32 %v1801_v36, %v1765_v39 }
 0x204   : > { %v1562_v54 = vsel %vm1403_vm2, %v1549_v32, 0.0  ;;  %v1595_v13 = vrot.slane %v5161_v3, 1  ;;  %v1314_v0 = vadd.f32 0.5, %v1282_v26  ;;  %v5203_v5 = vadd.f32 %v1973_v42, %v1937_v47 }
 0x205   : > { %v5205_v12 = vadd.f32 %v2145_v2, %v2109_v17  ;;  %v1909_v18 = vmul.f32 %v4992_v31, %v5126_v60  ;;  %v2081_v34 = vmul.f32 %v5013_v20, %v5126_v60  ;;  %v1735_v36 = vmul.f32 %v4989_v44, %v5069_v57 }
 0x206   : > { %v1907_v49 = vmul.f32 %v4992_v31, %v5069_v57  ;;  %v6937_v38 = vrot.slane %v5190_v23, 7  ;;  %v1284_v11 = vmul.f32 0.5, %v4374_v25  ;;  %v1871_v42 = vmul.f32 %v5036_v58, %v1562_v54 }
 0x207   : > { %7056 = vst [vmem:[#allocation44_spill] sm:$0xff] %v5205_v12  ;;  %v5217_v46 = vadd.f32 %v2215_v56, %v2178_v10  ;;  %v1597_v2 = vrot.slane %v5190_v23, 1  ;;  %v1548_v22 = vsel %vm1521_vm0, %v1493_v19, %v1494_v62  ;;  %v1547_v60 = vsel %vm1521_vm0, %v1494_v62, %v1495_v51 }
 0x208   : > { %v1648_v9 = vsel %vm1622_vm1, %v1595_v13, %v1596_v52  ;;  %v7058_v39 = vrot.slane %v5069_v57, 1  ;;  %v5233_v26 = vmul.f32 %v1314_v0, %v5016_v14  ;;  %v1699_v47 = vmul.f32 %v5019_v1, %v1562_v54 }
 0x209   : > { %7057 = vst [vmem:[#allocation45_spill] sm:$0xff] %v5217_v46  ;;  %v1802_v17 = vmul.f32 %v5033_v28, %v1662_v43  ;;  %v1974_v19 = vmul.f32 %v5045_v7, %v1662_v43  ;;  %v2079_v27 = vmul.f32 %v5013_v20, %v5069_v57  ;;  %v2043_v32 = vmul.f32 %v5048_v48, %v1562_v54 }
 0x20a   : > { %v5230_v25 = vsel %vm1622_vm1, %v7058_v39, %v1595_v13  ;;  %v1546_v56 = vsel %vm1521_vm0, %v1495_v51, %v6937_v38  ;;  %v1872_v10 = vmul.f32 %v5036_v58, %v1548_v22  ;;  %v5246_v14 = vadd.f32 0.5, %v1284_v11 }
 0x20b   : > { %v1939_v62 = vadd.f32 %v1907_v49, %v1871_v42  ;;  %v1564_v13 = vsel %vm1403_vm2, %v1547_v60, 0.0  ;;  %v1664_v43 = vsel %vm1406_vm3, %v1648_v9, 0.0  ;;  %v1975_v57 = vmul.f32 %v5045_v7, %v5230_v25 }
 0x20c   : > { %v2503_v54 = vmul.f32 0.5, %v5217_v46  ;;  %v1647_v0 = vsel %vm1622_vm1, %v1596_v52, %v1597_v2  ;;  %v1908_v51 = vmul.f32 %v4992_v31, %v5161_v3  ;;  %v6942_v11 = vrot.slane %v5233_v26, 1 }
 0x20d   : > { %v5260_v49 = vadd.f32 %v1735_v36, %v1699_v47  ;;  %v1834_v42 = vadd.f32 %v1802_v17, %v5156_v30  ;;  %v2006_v60 = vadd.f32 %v1974_v19, %v1938_v53  ;;  %v2044_v9 = vmul.f32 %v5048_v48, %v1548_v22 }
 0x20e   : > { %v5264_v39 = vadd.f32 %v2079_v27, %v2043_v32  ;;  %v1873_v38 = vmul.f32 %v5036_v58, %v1564_v13  ;;  %v1940_v12 = vadd.f32 %v1908_v51, %v1872_v10  ;;  %v1976_v45 = vmul.f32 %v5045_v7, %v1664_v43 }
 0x20f   : > { %v1702_v52 = vmul.f32 %v5019_v1, %v1546_v56  ;;  %v2007_v16 = vadd.f32 %v1975_v57, %v1939_v62  ;;  %v2045_v59 = vmul.f32 %v5048_v48, %v1564_v13  ;;  %v2080_v36 = vmul.f32 %v5013_v20, %v5161_v3 }
 0x210   : > { %4381 = vtanh.f32 %v2503_v54  ;;  %v1738_v53 = vmul.f32 %v4989_v44, %v5190_v23  ;;  %v1805_v30 = vmul.f32 %v5033_v28, %v1647_v0  ;;  %v1646_v47 = vsel %vm1622_vm1, %v1597_v2, %v6942_v11 }
 0x211   : > { %v1874_v17 = vmul.f32 %v5036_v58, %v1546_v56  ;;  %v2112_v19 = vadd.f32 %v2080_v36, %v2044_v9  ;;  %v2148_v27 = vmul.f32 %v5051_v41, %v1664_v43  ;;  %v2217_v32 = vadd.f32 %v5172_v50, %v2006_v60 }
 0x212   : > { %v1977_v10 = vmul.f32 %v5045_v7, %v1647_v0  ;;  %v1941_v62 = vadd.f32 %v1909_v18, %v1873_v38  ;;  %v2008_v57 = vadd.f32 %v1976_v45, %v1940_v12  ;;  %v1283_v54 = vmul.f32 0.5, %v5174_v24 }
 0x213   : > { %v2113_v51 = vadd.f32 %v2081_v34, %v2045_v59  ;;  %v2218_v46 = vadd.f32 %v5172_v50, %v2007_v16  ;;  %v5287_v21 = vsel %vm1406_vm3, %v1646_v47, 0.0  ;;  %v1222_v2 = vmul.f32 0.5, %v5103_v29 }
 0x214   : > { %v2046_v9 = vmul.f32 %v5048_v48, %v1546_v56  ;;  %v2082_v60 = vmul.f32 %v5013_v20, %v5190_v23  ;;  %v2149_v36 = vmul.f32 %v5051_v41, %v1647_v0  ;;  %v1736_v45 = vmul.f32 %v4989_v44, %v5161_v3 }
 0x215   : > { %v1700_v59 = vmul.f32 %v5019_v1, %v1548_v22  ;;  %v1701_v16 = vmul.f32 %v5019_v1, %v1564_v13  ;;  %v2180_v24 = vadd.f32 %v2148_v27, %v2112_v19  ;;  %v2345_v12 = vadd.f32 %v2217_v32, %v5185_v15 }
 0x216   : > { %v2009_v18 = vadd.f32 %v1977_v10, %v1941_v62  ;;  %v2219_v34 = vadd.f32 %v5172_v50, %v2008_v57  ;;  %v2150_v38 = vmul.f32 %v5051_v41, %v5287_v21  ;;  %v1315_v56 = vadd.f32 0.5, %v1283_v54 }
 0x217   : > { %v2181_v47 = vadd.f32 %v2149_v36, %v2113_v51  ;;  %v2346_v0 = vadd.f32 %v2218_v46, %v5198_v4  ;;  %v1497_v11 = vrot.slane %v5233_v26, 7  ;;  %4383 = vtanh.f32 %v1222_v2 }
 0x218   : > { %v1910_v3 = vmul.f32 %v4992_v31, %v5190_v23  ;;  %v2114_v22 = vadd.f32 %v2082_v60, %v2046_v9  ;;  %v1803_v15 = vmul.f32 %v5033_v28, %v5230_v25  ;;  %v1804_v13 = vmul.f32 %v5033_v28, %v1664_v43 }
 0x219   : > { %v1768_v19 = vadd.f32 %v1736_v45, %v1700_v59  ;;  %v1769_v27 = vadd.f32 %v5195_v63, %v1701_v16  ;;  %v5310_v32 = vadd.f32 %v2345_v12, %v2180_v24  ;;  %v1285_v10 = vmul.f32 0.5, %v5163_v8 }
 0x21a   : > { %v2147_v4 = vmul.f32 %v5051_v41, %v5230_v25  ;;  %v2347_v46 = vadd.f32 %v2219_v34, %v1834_v42  ;;  %v2182_v62 = vadd.f32 %v2150_v38, %v2114_v22  ;;  %v5316_v57 = vmul.f32 %v1315_v56, %v5042_v6  ;;  %v1134_v34 = vpop.f32.mrf.mxu1 }
 0x21b   : > { %v2220_v54 = vadd.f32 %v5172_v50, %v2009_v18  ;;  %v5319_v51 = vadd.f32 %v2346_v0, %v2181_v47  ;;  %v5323_v43 = vmul.f32 %v5246_v14, %v5010_v35  ;;  %v7059_v63 = vrot.slane %v5190_v23, 7 }
 0x21c   : > { %v5331_v25 = vadd.f32 %v5172_v50, %v5203_v5  ;;  %v5333_v42 = vadd.f32 %v1738_v53, %v1702_v52  ;;  %v1942_v6 = vadd.f32 %v1910_v3, %v1874_v17  ;;  %v1835_v2 = vadd.f32 %v1803_v15, %v5260_v49 }
 0x21d   : > { %v1545_v8 = vsel %vm1521_vm0, %v7059_v63, %v1497_v11  ;;  %v4382_v9 = vpop.eup %4381  ;;  %v5336_v60 = vadd.f32 %v1804_v13, %v1768_v19  ;;  %v5338_v36 = vadd.f32 %v1805_v30, %v1769_v27  ;;  %v2505_v35 = vmul.f32 0.5, %v5310_v32 }
 0x21e   : > { %7060 = vst [vmem:[#allocation46_spill] sm:$0xff] %v5331_v25  ;;  %v1317_v23 = vadd.f32 0.5, %v1285_v10  ;;  %v5342_v14 = vadd.f32 %v2147_v4, %v5264_v39  ;;  %v1566_v5 = vsel %vm1403_vm2, %v1545_v8, 0.0  ;;  %v5346_v45 = vadd.f32 %v2347_v46, %v2182_v62 }
 0x21f   : > { %v1599_v52 = vrot.slane %v5316_v57, 1  ;;  %v5349_v53 = vadd.f32 %v2220_v54, %v1835_v2  ;;  %v2506_v49 = vmul.f32 0.5, %v5319_v51  ;;  %v1499_v30 = vrot.slane %v5323_v43, 7 }
 0x220   : > { %7061 = vst [vmem:[#allocation47_spill] sm:$0xff] %v5342_v14  ;;  %v1498_v17 = vrot.slane %v5316_v57, 7  ;;  %v2567_v59 = vmul.f32 0.5, %v4382_v9  ;;  %v1600_v16 = vrot.slane %v5323_v43, 1  ;;  %v5357_v39 = vmul.f32 %v4989_v44, %v5323_v43 }
 0x221   : > { %4385 = vtanh.f32 %v5100_v37  ;;  %v5362_v24 = vmul.f32 %v4992_v31, %v5323_v43  ;;  %v1875_v12 = vmul.f32 %v5036_v58, %v1566_v5  ;;  %v5366_v18 = vmul.f32 %v1317_v23, %v5029_v55 }
 0x222   : > { %4387 = vtanh.f32 %v2505_v35  ;;  %v2085_v38 = vmul.f32 %v5013_v20, %v5323_v43  ;;  %v2507_v56 = vmul.f32 0.5, %v5346_v45  ;;  %v7062_v47 = vrot.slane %v5233_v26, 1  ;;  %v5398_v43 = vpop.f32.mrf.mxu1 }
 0x223   : > { %v5378_v0 = vmul.f32 0.5, %v5114_v61  ;;  %4389 = vtanh.f32 %v2506_v49  ;;  %v1911_v55 = vmul.f32 %v4992_v31, %v5233_v26  ;;  %v1978_v3 = vmul.f32 %v5045_v7, %v5287_v21  ;;  %v7064_v49 = vld [vmem:[#allocation45_spill] sm:$0xff] }
 0x224   : > { %v5375_v37 = vsel %vm1622_vm1, %v7062_v47, %v1599_v52  ;;  %v1543_v22 = vsel %vm1521_vm0, %v1498_v17, %v1499_v30  ;;  %v4384_v15 = vpop.eup %4383  ;;  %v2599_v13 = vadd.f32 0.5, %v2567_v59  ;;  %v1739_v19 = vmul.f32 %v4989_v44, %v5233_v26 }
 0x225   : > { %v2047_v27 = vmul.f32 %v5048_v48, %v1566_v5  ;;  %v5391_v10 = vsel %vm1521_vm0, %v1497_v11, %v1498_v17  ;;  %v1943_v4 = vadd.f32 %v1911_v55, %v1875_v12  ;;  %v6943_v46 = vrot.slane %v5366_v18, 7  ;;  %v7063_v11 = vld [vmem:[#allocation34_spill] sm:$0xff] }
 0x226   : > { %v1644_v62 = vsel %vm1622_vm1, %v1599_v52, %v1600_v16  ;;  %v1979_v54 = vmul.f32 %v5045_v7, %v5375_v37  ;;  %4391 = vtanh.f32 %v2507_v56  ;;  %v6944_v63 = vrot.slane %v5366_v18, 1 }
 0x227   : > { %v5403_v8 = vsel %vm1403_vm2, %v1543_v22, 0.0  ;;  %v5406_v2 = vadd.f32 %v7063_v11, %v1134_v34  ;;  %v2010_v9 = vadd.f32 %v1978_v3, %v1942_v6  ;;  %v2083_v35 = vmul.f32 %v5013_v20, %v5233_v26 }
 0x228   : > { %v2048_v23 = vmul.f32 %v5048_v48, %v5391_v10  ;;  %v1286_v52 = vmul.f32 0.5, %v4384_v15  ;;  %v5413_v17 = vmul.f32 %v2599_v13, %v7064_v49  ;;  %v1703_v59 = vmul.f32 %v5019_v1, %v1566_v5  ;;  %v1147_v5 = vpop.f32.mrf.mxu1 }
 0x229   : > { %v1806_v12 = vmul.f32 %v5033_v28, %v5287_v21  ;;  %v5420_v34 = vsel %vm1406_vm3, %v1644_v62, 0.0  ;;  %v1542_v26 = vsel %vm1521_vm0, %v1499_v30, %v6943_v46  ;;  %v2011_v6 = vadd.f32 %v1979_v54, %v1943_v4 }
 0x22a   : > { %7065 = vst [vmem:[#allocation34_spill] sm:$0xff] %v5413_v17  ;;  %v2049_v56 = vmul.f32 %v5048_v48, %v5403_v8  ;;  %v2084_v47 = vmul.f32 %v5013_v20, %v5316_v57  ;;  %v2115_v55 = vadd.f32 %v2083_v35, %v2047_v27  ;;  %v1643_v21 = vsel %vm1622_vm1, %v1600_v16, %v6944_v63 }
 0x22b   : > { %v2151_v3 = vmul.f32 %v5051_v41, %v5375_v37  ;;  %v1223_v22 = vmul.f32 0.5, %v5406_v2  ;;  %v2152_v15 = vmul.f32 %v5051_v41, %v5420_v34  ;;  %v2221_v13 = vadd.f32 %v5172_v50, %v2010_v9 }
 0x22c   : > { %v2116_v30 = vadd.f32 %v2084_v47, %v2048_v23  ;;  %v1318_v4 = vadd.f32 0.5, %v1286_v52  ;;  %v5440_v62 = vadd.f32 %v1739_v19, %v1703_v59  ;;  %v5443_v27 = vadd.f32 %v1806_v12, %v5333_v42  ;;  %v5453_v52 = vpop.f32.mrf.mxu1 }
 0x22d   : > { %v1706_v54 = vmul.f32 %v5019_v1, %v1542_v26  ;;  %v1742_v16 = vmul.f32 %v4989_v44, %v5366_v18  ;;  %v5449_v49 = vmul.f32 %v5033_v28, %v1643_v21  ;;  %v1878_v23 = vmul.f32 %v5036_v58, %v1542_v26 }
 0x22e   : > { %v4386_v35 = vpop.eup %4385  ;;  %v2117_v47 = vadd.f32 %v2085_v38, %v2049_v56  ;;  %v2222_v9 = vadd.f32 %v5172_v50, %v2011_v6  ;;  %v1914_v42 = vmul.f32 %v4992_v31, %v5366_v18  ;;  %v1981_v59 = vmul.f32 %v5045_v7, %v1643_v21 }
 0x22f   : > { %v4388_v19 = vpop.eup %4387  ;;  %v2183_v12 = vadd.f32 %v2151_v3, %v2115_v55  ;;  %4393 = vtanh.f32 %v1223_v22  ;;  %v2153_v46 = vmul.f32 %v5051_v41, %v1643_v21  ;;  %v2184_v63 = vadd.f32 %v2152_v15, %v2116_v30  ;;  %v1150_v30 = vpop.f32.mrf.mxu1 }
 0x230   : > { %v2349_v14 = vadd.f32 %v2221_v13, %v5336_v60  ;;  %v5461_v25 = vmul.f32 %v1318_v4, %v5103_v29  ;;  %v4390_v38 = vpop.eup %4389  ;;  %v5463_v6 = vadd.f32 %v1742_v16, %v1706_v54  ;;  %v1876_v56 = vmul.f32 %v5036_v58, %v5391_v10 }
 0x231   : > { %v1877_v61 = vmul.f32 %v5036_v58, %v5403_v8  ;;  %v5470_v55 = vadd.f32 %v7063_v11, %v1147_v5  ;;  %v2569_v3 = vmul.f32 0.5, %v4388_v19  ;;  %v2185_v21 = vadd.f32 %v2153_v46, %v2117_v47 }
 0x232   : > { %v2350_v22 = vadd.f32 %v2222_v9, %v5338_v36  ;;  %v1288_v60 = vmul.f32 0.5, %v4386_v35  ;;  %v2050_v29 = vmul.f32 %v5048_v48, %v1542_v26  ;;  %v2086_v15 = vmul.f32 %v5013_v20, %v5366_v18 }
 0x233   : > { %v1912_v13 = vmul.f32 %v4992_v31, %v5316_v57  ;;  %v5479_v4 = vadd.f32 %v5349_v53, %v2183_v12  ;;  %v4392_v54 = vpop.eup %4391  ;;  %v2570_v5 = vmul.f32 0.5, %v4390_v38  ;;  %v5481_v16 = vadd.f32 %v1914_v42, %v1878_v23  ;;  %v4113_v42 = vpop.f32.mrf.mxu1 }
 0x234   : > { %v5483_v46 = vadd.f32 %v2349_v14, %v2184_v63  ;;  %v6948_v36 = vrot.slane %v5461_v25, 1  ;;  %v1945_v26 = vadd.f32 %v5362_v24, %v1877_v61  ;;  %v1980_v47 = vmul.f32 %v5045_v7, %v5420_v34 }
 0x235   : > { %v1944_v35 = vadd.f32 %v1912_v13, %v1876_v56  ;;  %v1226_v9 = vmul.f32 0.5, %v5470_v55  ;;  %v2601_v19 = vadd.f32 0.5, %v2569_v3  ;;  %v1740_v53 = vmul.f32 %v4989_v44, %v5316_v57  ;;  %v1163_v13 = vpop.f32.mrf.mxu1 }
 0x236   : > { %7066 = vst [vmem:[#allocation45_spill] sm:$0xff] %v5483_v46  ;;  %v5492_v12 = vadd.f32 %v2350_v22, %v2185_v21  ;;  %v1320_v23 = vadd.f32 0.5, %v1288_v60  ;;  %v2571_v14 = vmul.f32 0.5, %v4392_v54  ;;  %v1704_v63 = vmul.f32 %v5019_v1, %v5391_v10 }
 0x237   : > { %v2508_v38 = vmul.f32 0.5, %v5479_v4  ;;  %4395 = vtanh.f32 %v5378_v0  ;;  %v1705_v61 = vmul.f32 %v5019_v1, %v5403_v8  ;;  %v1807_v24 = vmul.f32 %v5033_v28, %v5375_v37 }
 0x238   : > { %v2509_v57 = vmul.f32 0.5, %v5483_v46  ;;  %v7067_v56 = vrot.slane %v5366_v18, 1  ;;  %v2602_v10 = vadd.f32 0.5, %v2570_v5  ;;  %v2012_v21 = vadd.f32 %v1980_v47, %v1944_v35  ;;  %v7069_v35 = vld [vmem:[#allocation38_spill] sm:$0xff] }
 0x239   : > { %v2013_v22 = vadd.f32 %v1981_v59, %v1945_v26  ;;  %4397 = vtanh.f32 %v1226_v9  ;;  %v5510_v0 = vmul.f32 %v2601_v19, %v5310_v32  ;;  %v2118_v8 = vadd.f32 %v2086_v15, %v2050_v29 }
 0x23a   : > { %v1642_v3 = vsel %vm1622_vm1, %v7067_v56, %v6948_v36  ;;  %v1808_v37 = vmul.f32 %v5033_v28, %v5420_v34  ;;  %v2510_v60 = vmul.f32 0.5, %v5492_v12  ;;  %v2603_v54 = vadd.f32 0.5, %v2571_v14 }
 0x23b   : > { %7068 = vst [vmem:[#allocation48_spill] sm:$0xff] %v5510_v0  ;;  %v1772_v46 = vadd.f32 %v1740_v53, %v1704_v63  ;;  %4399 = vtanh.f32 %v2508_v38  ;;  %v1670_v56 = vsel %vm1406_vm3, %v1642_v3, 0.0  ;;  %v1773_v59 = vadd.f32 %v5357_v39, %v1705_v61  ;;  %v4114_v53 = vpop.f32.mrf.mxu1 }
 0x23c   : > { %v4394_v5 = vpop.eup %4393  ;;  %4401 = vtanh.f32 %v2509_v57  ;;  %v5519_v32 = vmul.f32 %v1320_v23, %v7069_v35  ;;  %v6947_v29 = vrot.slane %v5461_v25, 7  ;;  %v5523_v34 = vmul.f32 %v2602_v10, %v5319_v51 }
 0x23d   : > { %v1839_v15 = vadd.f32 %v1807_v24, %v5440_v62  ;;  %v2223_v26 = vadd.f32 %v5172_v50, %v2012_v21  ;;  %v2224_v47 = vadd.f32 %v5172_v50, %v2013_v22  ;;  %v2677_v9 = vadd.f32 %v5510_v0, %v5413_v17 }
 0x23e   : > { %7070 = vst [vmem:[#allocation38_spill] sm:$0xff] %v5523_v34  ;;  %4403 = vtanh.f32 %v2510_v60  ;;  %v2154_v39 = vmul.f32 %v5051_v41, %v1670_v56  ;;  %v5533_v19 = vadd.f32 %v5398_v43, %v7063_v11  ;;  %v5536_v51 = vmul.f32 %v2603_v54, %v5346_v45 }
 0x23f   : > { %v5538_v23 = vadd.f32 %v1808_v37, %v1772_v46  ;;  %v1287_v62 = vmul.f32 0.5, %v4394_v5  ;;  %v5542_v14 = vadd.f32 %v5453_v52, %v7063_v11  ;;  %v5545_v63 = vadd.f32 %v5449_v49, %v1773_v59 }
 0x240   : > { %7071 = vst [vmem:[#allocation49_spill] sm:$0xff] %v5536_v51  ;;  %v7072_v43 = vrot.slane %v5366_v18, 7  ;;  %v5555_v46 = vadd.f32 %v7063_v11, %v1150_v30  ;;  %v2351_v61 = vadd.f32 %v2223_v26, %v5443_v27  ;;  %v5558_v24 = vadd.f32 %v2224_v47, %v1839_v15  ;;  %v1166_v27 = vpop.f32.mrf.mxu1 }
 0x241   : > { %v5563_v49 = vmul.f32 %v4989_v44, %v5519_v32  ;;  %v5567_v57 = vmul.f32 %v4992_v31, %v5519_v32  ;;  %v5571_v18 = vmul.f32 %v5013_v20, %v5519_v32  ;;  %v2186_v30 = vadd.f32 %v2154_v39, %v2118_v8 }
 0x242   : > { %v1541_v45 = vsel %vm1521_vm0, %v7072_v43, %v6947_v29  ;;  %v1228_v3 = vmul.f32 0.5, %v5533_v19  ;;  %v5575_v10 = vadd.f32 %v2677_v9, %v5536_v51  ;;  %v1319_v22 = vadd.f32 0.5, %v1287_v62 }
 0x243   : > { %v1570_v21 = vsel %vm1403_vm2, %v1541_v45, 0.0  ;;  %v1229_v37 = vmul.f32 0.5, %v5542_v14  ;;  %v1982_v54 = vmul.f32 %v5045_v7, %v1670_v56  ;;  %v1227_v5 = vmul.f32 0.5, %v5555_v46 }
 0x244   : > { %v4396_v60 = vpop.eup %4395  ;;  %v5583_v59 = vadd.f32 %v4113_v42, %v7063_v11  ;;  %v5586_v8 = vadd.f32 %v7063_v11, %v1163_v13  ;;  %v1743_v35 = vmul.f32 %v4989_v44, %v5461_v25  ;;  %v1915_v15 = vmul.f32 %v4992_v31, %v5461_v25  ;;  %v4117_v13 = vpop.f32.mrf.mxu1 }
 0x245   : > { %v2087_v26 = vmul.f32 %v5013_v20, %v5461_v25  ;;  %v5595_v47 = vadd.f32 %v4114_v53, %v7063_v11  ;;  %v1707_v39 = vmul.f32 %v5019_v1, %v1570_v21  ;;  %v1810_v42 = vmul.f32 %v5033_v28, %v1670_v56 }
 0x246   : > { %7073 = vst [vmem:[#allocation50_spill] sm:$0xff] %v5583_v59  ;;  %7074 = vst [vmem:[#allocation51_spill] sm:$0xff] %v5586_v8  ;;  %v4398_v9 = vpop.eup %4397  ;;  %v5599_v62 = vadd.f32 %v2351_v61, %v2186_v30  ;;  %4405 = vtanh.f32 %v1228_v3  ;;  %v1879_v43 = vmul.f32 %v5036_v58, %v1570_v21  ;;  %v1289_v45 = vmul.f32 0.5, %v4396_v60 }
 0x247   : > { %7075 = vst [vmem:[#allocation52_spill] sm:$0xff] %v5595_v47  ;;  %v5603_v52 = vmul.f32 %v1319_v22, %v5406_v2  ;;  %4407 = vtanh.f32 %v1229_v37  ;;  %v2014_v53 = vadd.f32 %v1982_v54, %v5481_v16  ;;  %v1232_v38 = vmul.f32 0.5, %v5583_v59  ;;  %v1179_v54 = vpop.f32.mrf.mxu1 }
 0x248   : > { %v4400_v29 = vpop.eup %4399  ;;  %4409 = vtanh.f32 %v1227_v5  ;;  %v1230_v36 = vmul.f32 0.5, %v5586_v8  ;;  %v2051_v61 = vmul.f32 %v5048_v48, %v1570_v21  ;;  %v1290_v30 = vmul.f32 0.5, %v4398_v9 }
 0x249   : > { %v4402_v56 = vpop.eup %4401  ;;  %v1233_v3 = vmul.f32 0.5, %v5595_v47  ;;  %v5611_v60 = vadd.f32 %v7063_v11, %v1166_v27  ;;  %v5613_v2 = vadd.f32 %v1743_v35, %v1707_v39  ;;  %v5616_v22 = vadd.f32 %v1810_v42, %v5463_v6 }
 0x24a   : > { %v2511_v16 = vmul.f32 0.5, %v5599_v62  ;;  %v5620_v37 = vadd.f32 %v4117_v13, %v7063_v11  ;;  %v2572_v34 = vmul.f32 0.5, %v4400_v29  ;;  %v1947_v21 = vadd.f32 %v1915_v15, %v1879_v43  ;;  %v7079_v43 = vld [vmem:[#allocation41_spill] sm:$0xff] }
 0x24b   : > { %7076 = vst [vmem:[#allocation53_spill] sm:$0xff] %v5611_v60  ;;  %v4404_v5 = vpop.eup %4403  ;;  %v1321_v9 = vadd.f32 0.5, %v1289_v45  ;;  %v1603_v17 = vrot.slane %v5603_v52, 1  ;;  %v2573_v51 = vmul.f32 0.5, %v4402_v56  ;;  %v1502_v27 = vrot.slane %v5603_v52, 7 }
 0x24c   : > { %7077 = vst [vmem:[#allocation54_spill] sm:$0xff] %v5620_v37  ;;  %v2225_v35 = vadd.f32 %v5172_v50, %v2014_v53  ;;  %4411 = vtanh.f32 %v1232_v38  ;;  %v1322_v6 = vadd.f32 0.5, %v1290_v30  ;;  %v1231_v39 = vmul.f32 0.5, %v5611_v60 }
 0x24d   : > { %4413 = vtanh.f32 %v1230_v36  ;;  %v5627_v42 = vadd.f32 %v7063_v11, %v1179_v54  ;;  %v2574_v13 = vmul.f32 0.5, %v4404_v5  ;;  %v2119_v0 = vadd.f32 %v2087_v26, %v2051_v61  ;;  %v4118_v36 = vpop.f32.mrf.mxu1 }
 0x24e   : > { %4415 = vtanh.f32 %v2511_v16  ;;  %v1236_v29 = vmul.f32 0.5, %v5620_v37  ;;  %v2604_v15 = vadd.f32 0.5, %v2572_v34  ;;  %v5631_v45 = vmul.f32 %v1321_v9, %v7079_v43 }
 0x24f   : > { %7078 = vst [vmem:[#allocation55_spill] sm:$0xff] %v5627_v42  ;;  %v7080_v56 = vrot.slane %v5461_v25, 1  ;;  %4417 = vtanh.f32 %v1233_v3  ;;  %v2605_v53 = vadd.f32 0.5, %v2573_v51  ;;  %v7081_v11 = vrot.slane %v5519_v32, 7 }
 0x250   : > { %v7082_v61 = vrot.slane %v5461_v25, 7  ;;  %v5650_v30 = vadd.f32 %v2225_v35, %v5538_v23  ;;  %v7083_v16 = vrot.slane %v5519_v32, 1  ;;  %v5657_v51 = vmul.f32 %v1322_v6, %v5470_v55  ;;  %v5667_v23 = vld [vmem:[%s6891_s4] ss:$0 sm:$0xff] }
 0x251   : > { %v5637_v38 = vsel %vm1622_vm1, %v7080_v56, %v1603_v17  ;;  %v1539_v26 = vsel %vm1521_vm0, %v1502_v27, %v7081_v11  ;;  %4419 = vtanh.f32 %v1231_v39  ;;  %v5660_v54 = vmul.f32 0.5, %v5627_v42  ;;  %7085 = vst [vmem:[#allocation56_spill] sm:$0xff] %v5667_v23 }
 0x252   : > { %v5647_v34 = vsel %vm1521_vm0, %v7082_v61, %v1502_v27  ;;  %v1640_v3 = vsel %vm1622_vm1, %v1603_v17, %v7083_v16  ;;  %v2606_v25 = vadd.f32 0.5, %v2574_v13  ;;  %v1983_v5 = vmul.f32 %v5045_v7, %v5637_v38  ;;  %v7088_v13 = vld [vmem:[#allocation45_spill] sm:$0xff] }
 0x253   : > { %7084 = vst [vmem:[#allocation41_spill] sm:$0xff] %v5660_v54  ;;  %4421 = vtanh.f32 %v1236_v29  ;;  %v5670_v9 = vadd.f32 %v5667_v23, %v4118_v36  ;;  %v4406_v17 = vpop.eup %4405  ;;  %v5673_v55 = vmul.f32 %v2604_v15, %v5479_v4  ;;  %v6964_v27 = vrot.slane %v5631_v45, 7 }
 0x254   : > { %v1572_v35 = vsel %vm1403_vm2, %v1539_v26, 0.0  ;;  %v1880_v6 = vmul.f32 %v5036_v58, %v5647_v34  ;;  %v4408_v39 = vpop.eup %4407  ;;  %v5681_v29 = vmul.f32 %v2605_v53, %v7088_v13  ;;  %v1605_v43 = vrot.slane %v5631_v45, 1 }
 0x255   : > { %7086 = vst [vmem:[#allocation57_spill] sm:$0xff] %v5670_v9  ;;  %7087 = vst [vmem:[#allocation58_spill] sm:$0xff] %v5673_v55  ;;  %v5686_v56 = vsel %vm1406_vm3, %v1640_v3, 0.0  ;;  %v2052_v4 = vmul.f32 %v5048_v48, %v5647_v34  ;;  %v4410_v15 = vpop.eup %4409  ;;  %v1746_v36 = vmul.f32 %v4989_v44, %v5631_v45  ;;  %v5694_v11 = vmul.f32 %v4992_v31, %v5631_v45 }
 0x256   : > { %7089 = vst [vmem:[#allocation45_spill] sm:$0xff] %v5681_v29  ;;  %v1916_v53 = vmul.f32 %v4992_v31, %v5603_v52  ;;  %v2090_v61 = vmul.f32 %v5013_v20, %v5631_v45  ;;  %v2015_v16 = vadd.f32 %v1983_v5, %v1947_v21  ;;  %v2053_v3 = vmul.f32 %v5048_v48, %v1572_v35 }
 0x257   : > { %v2088_v13 = vmul.f32 %v5013_v20, %v5603_v52  ;;  %v7090_v55 = vrot.slane %v5519_v32, 7  ;;  %v1984_v26 = vmul.f32 %v5045_v7, %v5686_v56  ;;  %v2155_v37 = vmul.f32 %v5051_v41, %v5637_v38 }
 0x258   : > { %v1948_v54 = vadd.f32 %v1916_v53, %v1880_v6  ;;  %v7091_v21 = vrot.slane %v5519_v32, 1  ;;  %v2156_v60 = vmul.f32 %v5051_v41, %v5686_v56  ;;  %v1291_v9 = vmul.f32 0.5, %v4410_v15 }
 0x259   : > { %v1538_v42 = vsel %vm1521_vm0, %v7090_v55, %v6964_v27  ;;  %v2120_v23 = vadd.f32 %v2088_v13, %v2052_v4  ;;  %v5720_v47 = vpop.eup %4411  ;;  %v5723_v55 = vmul.f32 %v2606_v25, %v5492_v12  ;;  %v1881_v6 = vmul.f32 %v5036_v58, %v1572_v35 }
 0x25a   : > { %v1639_v5 = vsel %vm1622_vm1, %v7091_v21, %v1605_v43  ;;  %7092 = vst [vmem:[#allocation59_spill] sm:$0xff] %v5720_v47  ;;  %v1292_v53 = vmul.f32 0.5, %v4406_v17  ;;  %v7094_v27 = vrot.slane %v5657_v51, 1  ;;  %v5730_v8 = vpop.eup %4413  ;;  %v5734_v4 = vadd.f32 %v5575_v10, %v5681_v29 }
 0x25b   : > { %7093 = vst [vmem:[#allocation60_spill] sm:$0xff] %v5723_v55  ;;  %7095 = vst [vmem:[#allocation61_spill] sm:$0xff] %v5730_v8  ;;  %v1710_v15 = vmul.f32 %v5019_v1, %v1538_v42  ;;  %v2121_v13 = vadd.f32 %v5571_v18, %v2053_v3  ;;  %v2226_v12 = vadd.f32 %v5172_v50, %v2015_v16  ;;  %v4416_v25 = vpop.eup %4415  ;;  %v1323_v29 = vadd.f32 0.5, %v1291_v9 }
 0x25c   : > { %v1638_v32 = vsel %vm1622_vm1, %v1605_v43, %v7094_v27  ;;  %v1813_v17 = vmul.f32 %v5033_v28, %v1639_v5  ;;  %v2054_v21 = vmul.f32 %v5048_v48, %v1538_v42  ;;  %v2016_v55 = vadd.f32 %v1984_v26, %v1948_v54  ;;  %v5741_v27 = vpop.eup %4417 }
 0x25d   : > { %v2187_v59 = vadd.f32 %v2155_v37, %v2119_v0  ;;  %v2157_v43 = vmul.f32 %v5051_v41, %v1639_v5  ;;  %v2188_v8 = vadd.f32 %v2156_v60, %v2120_v23  ;;  %v5746_v10 = vsel %vm1406_vm3, %v1638_v32, 0.0 }
 0x25e   : > { %v1882_v18 = vmul.f32 %v5036_v58, %v1538_v42  ;;  %v1985_v16 = vmul.f32 %v5045_v7, %v1639_v5  ;;  %v1949_v3 = vadd.f32 %v5567_v57, %v1881_v6  ;;  %v1324_v20 = vadd.f32 0.5, %v1292_v53  ;;  %v5751_v47 = vpop.eup %4419 }
 0x25f   : > { %v2575_v0 = vmul.f32 0.5, %v4416_v25  ;;  %v2189_v37 = vadd.f32 %v2157_v43, %v2121_v13  ;;  %v2354_v54 = vadd.f32 %v2226_v12, %v5545_v63  ;;  %v1293_v26 = vmul.f32 0.5, %v4408_v39 }
 0x260   : > { %v5754_v60 = vpop.eup %4421  ;;  %v5756_v23 = vadd.f32 %v1746_v36, %v1710_v15  ;;  %v2227_v9 = vadd.f32 %v5172_v50, %v2016_v55  ;;  %v5760_v42 = vadd.f32 %v5558_v24, %v2187_v59  ;;  %v2158_v57 = vmul.f32 %v5051_v41, %v5746_v10 }
 0x261   : > { %v2122_v5 = vadd.f32 %v2090_v61, %v2054_v21  ;;  %v1708_v6 = vmul.f32 %v5019_v1, %v5647_v34  ;;  %v5767_v53 = vadd.f32 %v5650_v30, %v2188_v8  ;;  %v5770_v63 = vmul.f32 %v1323_v29, %v5555_v46 }
 0x262   : > { %v1709_v39 = vmul.f32 %v5019_v1, %v1572_v35  ;;  %v1744_v36 = vmul.f32 %v4989_v44, %v5603_v52  ;;  %v1811_v24 = vmul.f32 %v5033_v28, %v5637_v38  ;;  %v2017_v59 = vadd.f32 %v1985_v16, %v1949_v3 }
 0x263   : > { %v2607_v55 = vadd.f32 0.5, %v2575_v0  ;;  %v5777_v61 = vadd.f32 %v2354_v54, %v2189_v37  ;;  %v1356_v34 = vmul.f32 %v1324_v20, %v5533_v19  ;;  %v1325_v32 = vadd.f32 0.5, %v1293_v26 }
 0x264   : > { %v2355_v8 = vadd.f32 %v2227_v9, %v5616_v22  ;;  %v2512_v46 = vmul.f32 0.5, %v5760_v42  ;;  %v1505_v30 = vrot.slane %v5657_v51, 7  ;;  %v2190_v35 = vadd.f32 %v2158_v57, %v2122_v5 }
 0x265   : > { %v1776_v29 = vadd.f32 %v1744_v36, %v1708_v6  ;;  %v1812_v52 = vmul.f32 %v5033_v28, %v5686_v56  ;;  %v2513_v38 = vmul.f32 0.5, %v5767_v53  ;;  %v1506_v15 = vrot.slane %v5770_v63, 7 }
 0x266   : > { %v1777_v13 = vadd.f32 %v5563_v49, %v1709_v39  ;;  %v1843_v20 = vadd.f32 %v1811_v24, %v5613_v2  ;;  %v2228_v19 = vadd.f32 %v5172_v50, %v2017_v59  ;;  %v1607_v22 = vrot.slane %v5770_v63, 1 }
 0x267   : > { %v5792_v12 = vmul.f32 %v2607_v55, %v5599_v62  ;;  %v2514_v25 = vmul.f32 0.5, %v5777_v61  ;;  %v1986_v56 = vmul.f32 %v5045_v7, %v5746_v10  ;;  %v5798_v21 = vmul.f32 %v1325_v32, %v5542_v14 }
 0x268   : > { %4423 = vtanh.f32 %v2512_v46  ;;  %v1608_v43 = vrot.slane %v1356_v34, 1  ;;  %v7097_v49 = vrot.slane %v5631_v45, 7  ;;  %v5804_v16 = vadd.f32 %v2355_v8, %v2190_v35  ;;  %v7099_v8 = vld [vmem:[#allocation36_spill] sm:$0xff] }
 0x269   : > { %7096 = vst [vmem:[#allocation62_spill] sm:$0xff] %v5792_v12  ;;  %v1950_v62 = vadd.f32 %v5694_v11, %v1882_v18  ;;  %v1844_v3 = vadd.f32 %v1812_v52, %v1776_v29  ;;  %4425 = vtanh.f32 %v2513_v38  ;;  %v5809_v0 = vsel %vm1521_vm0, %v1505_v30, %v1506_v15 }
 0x26a   : > { %v1537_v2 = vsel %vm1521_vm0, %v7097_v49, %v1505_v30  ;;  %v5811_v37 = vadd.f32 %v1813_v17, %v1777_v13  ;;  %v5813_v14 = vadd.f32 %v2228_v19, %v1843_v20  ;;  %v1507_v54 = vrot.slane %v1356_v34, 7  ;;  %v7101_v49 = vld [vmem:[#allocation61_spill] sm:$0xff] }
 0x26b   : > { %v1636_v45 = vsel %vm1622_vm1, %v1607_v22, %v1608_v43  ;;  %4427 = vtanh.f32 %v2514_v25  ;;  %v1574_v26 = vsel %vm1403_vm2, %v1537_v2, 0.0  ;;  %v2018_v9 = vadd.f32 %v1986_v56, %v1950_v62 }
 0x26c   : > { %v6972_v11 = vrot.slane %v5798_v21, 7  ;;  %v5822_v18 = vadd.f32 %v5734_v4, %v5792_v12  ;;  %v5825_v17 = vmul.f32 %v4989_v44, %v1356_v34  ;;  %v2515_v57 = vmul.f32 0.5, %v5804_v16  ;;  %v7098_v4 = vld [vmem:[#allocation59_spill] sm:$0xff] }
 0x26d   : > { %v2056_v5 = vmul.f32 %v5048_v48, %v5809_v0  ;;  %v5831_v6 = vmul.f32 %v4992_v31, %v1356_v34  ;;  %v1919_v39 = vmul.f32 %v4992_v31, %v5657_v51  ;;  %v5837_v36 = vsel %vm1406_vm3, %v1636_v45, 0.0 }
 0x26e   : > { %v1296_v24 = vmul.f32 0.5, %v7098_v4  ;;  %v1711_v59 = vmul.f32 %v5019_v1, %v1574_v26  ;;  %v1883_v55 = vmul.f32 %v5036_v58, %v1574_v26  ;;  %v6973_v32 = vrot.slane %v5798_v21, 1 }
 0x26f   : > { %v2092_v46 = vmul.f32 %v7099_v8, %v5770_v63  ;;  %v1814_v30 = vmul.f32 %v5033_v28, %v5746_v10  ;;  %v1534_v35 = vsel %vm1521_vm0, %v1507_v54, %v6972_v11  ;;  %v7100_v29 = vrot.slane %v5657_v51, 1 }
 0x270   : > { %v2229_v38 = vadd.f32 %v5172_v50, %v2018_v9  ;;  %4429 = vtanh.f32 %v2515_v57  ;;  %v1535_v13 = vsel %vm1521_vm0, %v1506_v15, %v1507_v54  ;;  %v2160_v10 = vmul.f32 %v5051_v41, %v5837_v36 }
 0x271   : > { %v5855_v52 = vsel %vm1622_vm1, %v7100_v29, %v1607_v22  ;;  %v2124_v20 = vadd.f32 %v2092_v46, %v2056_v5  ;;  %v2093_v19 = vmul.f32 %v7099_v8, %v1356_v34  ;;  %v1747_v25 = vmul.f32 %v4989_v44, %v5657_v51 }
 0x272   : > { %v2055_v56 = vmul.f32 %v5048_v48, %v1574_v26  ;;  %v1294_v22 = vmul.f32 0.5, %v7101_v49  ;;  %v1951_v2 = vadd.f32 %v1919_v39, %v1883_v55  ;;  %v2091_v50 = vmul.f32 %v7099_v8, %v5657_v51 }
 0x273   : > { %v1635_v15 = vsel %vm1622_vm1, %v1608_v43, %v6973_v32  ;;  %v1987_v62 = vmul.f32 %v5045_v7, %v5855_v52  ;;  %v5875_v34 = vadd.f32 %v1747_v25, %v1711_v59  ;;  %v1714_v54 = vmul.f32 %v5019_v1, %v1534_v35 }
 0x274   : > { %v1576_v45 = vsel %vm1403_vm2, %v1535_v13, 0.0  ;;  %v1328_v26 = vadd.f32 0.5, %v1296_v24  ;;  %v5881_v9 = vadd.f32 %v1814_v30, %v5756_v23  ;;  %v1886_v51 = vmul.f32 %v5036_v58, %v1534_v35 }
 0x275   : > { %v2192_v57 = vadd.f32 %v2160_v10, %v2124_v20  ;;  %v2357_v5 = vadd.f32 %v2229_v38, %v1844_v3  ;;  %v4424_v39 = vpop.eup %4423  ;;  %v2123_v43 = vadd.f32 %v2091_v50, %v2055_v56  ;;  %v1750_v4 = vmul.f32 %v4989_v44, %v5798_v21 }
 0x276   : > { %v5887_v59 = vmul.f32 %v5033_v28, %v1635_v15  ;;  %v1922_v55 = vmul.f32 %v4992_v31, %v5798_v21  ;;  %v4426_v46 = vpop.eup %4425  ;;  %v1989_v24 = vmul.f32 %v5045_v7, %v1635_v15  ;;  %v2019_v23 = vadd.f32 %v1987_v62, %v1951_v2  ;;  %v7103_v62 = vld [vmem:[#allocation50_spill] sm:$0xff] }
 0x277   : > { %v2057_v30 = vmul.f32 %v5048_v48, %v1576_v45  ;;  %v1326_v29 = vadd.f32 0.5, %v1294_v22  ;;  %v5893_v13 = vadd.f32 %v1750_v4, %v1714_v54  ;;  %v2058_v3 = vmul.f32 %v5048_v48, %v1534_v35 }
 0x278   : > { %v2094_v38 = vmul.f32 %v7099_v8, %v5798_v21  ;;  %v2161_v20 = vmul.f32 %v5051_v41, %v1635_v15  ;;  %v4428_v10 = vpop.eup %4427  ;;  %v2576_v25 = vmul.f32 0.5, %v4424_v39  ;;  %v5899_v56 = vadd.f32 %v1922_v55, %v1886_v51  ;;  %v5916_v51 = vld [vmem:[%s6893_s6] ss:$0 sm:$0xff] }
 0x279   : > { %v2159_v49 = vmul.f32 %v5051_v41, %v5855_v52  ;;  %v5903_v2 = vadd.f32 %v2357_v5, %v2192_v57  ;;  %v2577_v50 = vmul.f32 0.5, %v4426_v46  ;;  %v1884_v22 = vmul.f32 %v5036_v58, %v5809_v0  ;;  %v7104_v5 = vld [vmem:[#allocation51_spill] sm:$0xff] }
 0x27a   : > { %7102 = vst [vmem:[#allocation59_spill] sm:$0xff] %v5899_v56  ;;  %v1885_v35 = vmul.f32 %v5036_v58, %v1576_v45  ;;  %v5909_v54 = vmul.f32 %v1328_v26, %v7103_v62  ;;  %v1748_v15 = vmul.f32 %v4989_v44, %v5770_v63  ;;  %v2125_v39 = vadd.f32 %v2093_v19, %v2057_v30 }
 0x27b   : > { %v2230_v57 = vadd.f32 %v5916_v51, %v2019_v23  ;;  %v5920_v4 = vmul.f32 %v1326_v29, %v7104_v5  ;;  %v2578_v55 = vmul.f32 0.5, %v4428_v10  ;;  %v1712_v46 = vmul.f32 %v5019_v1, %v5809_v0 }
 0x27c   : > { %v1920_v26 = vmul.f32 %v4992_v31, %v5770_v63  ;;  %v1297_v62 = vmul.f32 0.5, %v5741_v27  ;;  %v2608_v19 = vadd.f32 0.5, %v2576_v25  ;;  %v1713_v30 = vmul.f32 %v5019_v1, %v1576_v45 }
 0x27d   : > { %v2191_v11 = vadd.f32 %v2159_v49, %v2123_v43  ;;  %v2517_v32 = vmul.f32 0.5, %v5903_v2  ;;  %v4430_v12 = vpop.eup %4429  ;;  %v2609_v23 = vadd.f32 0.5, %v2577_v50  ;;  %v1953_v29 = vadd.f32 %v5831_v6, %v1885_v35 }
 0x27e   : > { %v1952_v56 = vadd.f32 %v1920_v26, %v1884_v22  ;;  %v1988_v10 = vmul.f32 %v5045_v7, %v5837_v36  ;;  %v1815_v0 = vmul.f32 %v5033_v28, %v5855_v52  ;;  %v2193_v63 = vadd.f32 %v2161_v20, %v2125_v39 }
 0x27f   : > { %v2358_v27 = vadd.f32 %v2230_v57, %v5811_v37  ;;  %v6978_v25 = vrot.slane %v5920_v4, 1  ;;  %v2610_v45 = vadd.f32 0.5, %v2578_v55  ;;  %v1780_v43 = vadd.f32 %v1748_v15, %v1712_v46 }
 0x280   : > { %v1816_v49 = vmul.f32 %v5033_v28, %v5837_v36  ;;  %v1329_v50 = vadd.f32 0.5, %v1297_v62  ;;  %v2579_v22 = vmul.f32 0.5, %v4430_v12  ;;  %v1781_v6 = vadd.f32 %v5825_v17, %v1713_v30 }
 0x281   : > { %v5940_v35 = vadd.f32 %v5813_v14, %v2191_v11  ;;  %4431 = vtanh.f32 %v2517_v32  ;;  %v2126_v5 = vadd.f32 %v2094_v38, %v2058_v3  ;;  %v2020_v52 = vadd.f32 %v1988_v10, %v1952_v56  ;;  %v7109_v32 = vld [vmem:[#allocation52_spill] sm:$0xff] }
 0x282   : > { %v2021_v20 = vadd.f32 %v1989_v24, %v1953_v29  ;;  %v6977_v37 = vrot.slane %v5920_v4, 7  ;;  %v5944_v39 = vmul.f32 %v2608_v19, %v5760_v42  ;;  %v5947_v15 = vmul.f32 %v2609_v23, %v5767_v53 }
 0x283   : > { %v5949_v36 = vadd.f32 %v2358_v27, %v2193_v63  ;;  %v7107_v12 = vrot.slane %v5798_v21, 1  ;;  %v5958_v11 = vmul.f32 %v2610_v45, %v5777_v61  ;;  %v1847_v17 = vadd.f32 %v1815_v0, %v5875_v34 }
 0x284   : > { %7105 = vst [vmem:[#allocation36_spill] sm:$0xff] %v5944_v39  ;;  %7106 = vst [vmem:[#allocation61_spill] sm:$0xff] %v5947_v15  ;;  %v5962_v42 = vmul.f32 %v1329_v50, %v7109_v32  ;;  %v1295_v53 = vmul.f32 0.5, %v5751_v47  ;;  %v2611_v24 = vadd.f32 0.5, %v2579_v22  ;;  %v5965_v3 = vadd.f32 %v1816_v49, %v1780_v43  ;;  %v7113_v50 = vld [vmem:[#allocation57_spill] sm:$0xff] }
 0x285   : > { %v1634_v14 = vsel %vm1622_vm1, %v7107_v12, %v6978_v25  ;;  %7108 = vst [vmem:[#allocation50_spill] sm:$0xff] %v5958_v11  ;;  %v5968_v38 = vadd.f32 %v5887_v59, %v1781_v6  ;;  %v2516_v56 = vmul.f32 0.5, %v5940_v35  ;;  %v2231_v57 = vadd.f32 %v5916_v51, %v2020_v52  ;;  %v7121_v39 = vld [vmem:[#allocation41_spill] sm:$0xff] }
 0x286   : > { %v2232_v61 = vadd.f32 %v5916_v51, %v2021_v20  ;;  %v7110_v34 = vrot.slane %v5798_v21, 7  ;;  %v1678_v47 = vsel %vm1406_vm3, %v1634_v14, 0.0  ;;  %v2681_v59 = vadd.f32 %v5822_v18, %v5947_v15  ;;  %v7114_v20 = vld [vmem:[#allocation53_spill] sm:$0xff] }
 0x287   : > { %v2518_v62 = vmul.f32 0.5, %v5949_v36  ;;  %v1300_v19 = vmul.f32 0.5, %v5754_v60  ;;  %v1511_v30 = vrot.slane %v5909_v54, 7  ;;  %v6980_v21 = vrot.slane %v5909_v54, 1 }
 0x288   : > { %v1533_v55 = vsel %vm1521_vm0, %v7110_v34, %v6977_v37  ;;  %v6976_v23 = vrot.slane %v5962_v42, 7  ;;  %v1327_v29 = vadd.f32 0.5, %v1295_v53  ;;  %v5991_v10 = vmul.f32 %v2611_v24, %v5804_v16  ;;  %v1182_v16 = vpop.f32.mrf.mxu1  ;;  %v7115_v53 = vld [vmem:[#allocation56_spill] sm:$0xff] }
 0x289   : > { %4433 = vtanh.f32 %v2516_v56  ;;  %v1578_v18 = vsel %vm1403_vm2, %v1533_v55, 0.0  ;;  %v2162_v0 = vmul.f32 %v5051_v41, %v1678_v47  ;;  %v2359_v63 = vadd.f32 %v2231_v57, %v5881_v9 }
 0x28a   : > { %7112 = vst [vmem:[#allocation51_spill] sm:$0xff] %v5991_v10  ;;  %v5997_v27 = vadd.f32 %v2232_v61, %v1847_v17  ;;  %v6001_v60 = vmul.f32 %v4989_v44, %v5909_v54  ;;  %v6005_v45 = vmul.f32 %v4992_v31, %v5909_v54  ;;  %4435 = vtanh.f32 %v2518_v62  ;;  %v4121_v62 = vpop.f32.mrf.mxu1 }
 0x28b   : > { %v6009_v43 = vmul.f32 %v7099_v8, %v5909_v54  ;;  %v1332_v49 = vadd.f32 0.5, %v1300_v19  ;;  %v1237_v22 = vmul.f32 0.5, %v7113_v50  ;;  %v1715_v9 = vmul.f32 %v5019_v1, %v1578_v18 }
 0x28c   : > { %v1530_v6 = vsel %vm1521_vm0, %v1511_v30, %v6976_v23  ;;  %v6979_v52 = vrot.slane %v5962_v42, 1  ;;  %v6019_v12 = vmul.f32 %v1327_v29, %v7114_v20  ;;  %v6022_v14 = vadd.f32 %v2681_v59, %v5991_v10  ;;  %v7116_v29 = vld [vmem:[#allocation54_spill] sm:$0xff] }
 0x28d   : > { %v1818_v17 = vmul.f32 %v5033_v28, %v1678_v47  ;;  %v2194_v32 = vadd.f32 %v2162_v0, %v2126_v5  ;;  %v6026_v24 = vadd.f32 %v7115_v53, %v1182_v16  ;;  %v1751_v57 = vmul.f32 %v4989_v44, %v5920_v4 }
 0x28e   : > { %v4432_v56 = vpop.eup %4431  ;;  %v1887_v61 = vmul.f32 %v5036_v58, %v1578_v18  ;;  %v1990_v34 = vmul.f32 %v5045_v7, %v1678_v47  ;;  %v2059_v55 = vmul.f32 %v5048_v48, %v1578_v18  ;;  %v1923_v59 = vmul.f32 %v4992_v31, %v5920_v4 }
 0x28f   : > { %v2095_v5 = vmul.f32 %v7099_v8, %v5920_v4  ;;  %v1718_v19 = vmul.f32 %v5019_v1, %v1530_v6  ;;  %v6039_v0 = vmul.f32 %v1332_v49, %v7116_v29  ;;  %v6041_v16 = vadd.f32 %v1751_v57, %v1715_v9  ;;  %v7118_v57 = vld [vmem:[#allocation59_spill] sm:$0xff] }
 0x290   : > { %v1631_v47 = vsel %vm1622_vm1, %v6980_v21, %v6979_v52  ;;  %v1510_v18 = vrot.slane %v6019_v12, 7  ;;  %v1611_v20 = vrot.slane %v6019_v12, 1  ;;  %v2581_v26 = vmul.f32 0.5, %v4432_v56  ;;  %v1195_v21 = vpop.f32.mrf.mxu1 }
 0x291   : > { %v6052_v23 = vadd.f32 %v1818_v17, %v5893_v13  ;;  %v6054_v37 = vadd.f32 %v2359_v63, %v2194_v32  ;;  %v1754_v49 = vmul.f32 %v4989_v44, %v5962_v42  ;;  %v1955_v9 = vadd.f32 %v1923_v59, %v1887_v61  ;;  %v4269_v17 = vld [vmem:[%s6894_s7 + $0x38] sm:$0xff]  }
 0x292   : > { %v6059_v29 = vadd.f32 %v1990_v34, %v7118_v57  ;;  %v6061_v25 = vadd.f32 %v2095_v5, %v2059_v55  ;;  %v1890_v52 = vmul.f32 %v5036_v58, %v1530_v6  ;;  %v6067_v56 = vmul.f32 %v5033_v28, %v1631_v47  ;;  %v4122_v15 = vpop.f32.mrf.mxu1 }
 0x293   : > { %7117 = vst [vmem:[#allocation52_spill] sm:$0xff] %v6054_v37  ;;  %v6064_v11 = vadd.f32 %v1754_v49, %v1718_v19  ;;  %v1926_v13 = vmul.f32 %v4992_v31, %v5962_v42  ;;  %v6072_v63 = vmul.f32 %v5045_v7, %v1631_v47  ;;  %v2062_v32 = vmul.f32 %v5048_v48, %v1530_v6 }
 0x294   : > { %v1531_v61 = vsel %vm1521_vm0, %v1510_v18, %v1511_v30  ;;  %v7119_v34 = vrot.slane %v5920_v4, 1  ;;  %v6087_v59 = vadd.f32 %v7115_v53, %v4121_v62  ;;  %v2613_v5 = vadd.f32 0.5, %v2581_v26 }
 0x295   : > { %v2519_v19 = vmul.f32 0.5, %v6054_v37  ;;  %v2098_v49 = vmul.f32 %v7099_v8, %v5962_v42  ;;  %v6092_v6 = vadd.f32 %v1926_v13, %v1890_v52  ;;  %4437 = vtanh.f32 %v7121_v39  ;;  %v4270_v39 = vld [vmem:[%s6894_s7 + $0x30] sm:$0xff]  }
 0x296   : > { %v6084_v55 = vsel %vm1622_vm1, %v7119_v34, %v1611_v20  ;;  %7120 = vst [vmem:[#allocation57_spill] sm:$0xff] %v6087_v59  ;;  %v4434_v57 = vpop.eup %4433  ;;  %v1235_v30 = vmul.f32 0.5, %v6026_v24  ;;  %v6988_v46 = vmov 0.0   ;;  %v7122_v26 = vrot.slane %v5920_v4, 7  ;;  %v4277_v4 = vld [vmem:[%s6896_s9 + $0x38] sm:$0xff]  }
 0x297   : > { %4123 = vmatprep.subr.bf16.mxu0 %v6988_v46  ;;  %4143 = vmatprep.subr.bf16.mxu1 %v6988_v46  ;;  %v1580_v34 = vsel %vm1403_vm2, %v1531_v61, 0.0  ;;  %v1991_v52 = vmul.f32 %v5045_v7, %v6084_v55  ;;  %4439 = vtanh.f32 %v1237_v22  ;;  %v6114_v13 = vmul.f32 %v5051_v41, %v1631_v47 }
 0x298   : > { %v1532_v62 = vsel %vm1521_vm0, %v7122_v26, %v1510_v18  ;;  %4124 = vmatpush3.bf16.msra.mxu0 %v4269_v17  ;;  %4139 = vmatprep.mubr.msk.bf16.mxu0 %vm4496_vm4, %v6988_v46  ;;  %v4436_v18 = vpop.eup %4435  ;;  %v7123_v61 = vrot.slane %v5909_v54, 1  ;;  %v1240_v17 = vmul.f32 0.5, %v6087_v59  ;;  %v6122_v26 = vadd.f32 %v7115_v53, %v1195_v21  ;;  %v4278_v54 = vld [vmem:[%s6896_s9 + $0x30] sm:$0xff]  }
 0x299   : > { %4125 = vmatprep.subr.bf16.mxu0 %v6988_v46  ;;  %4159 = vmatprep.mubr.msk.bf16.mxu1 %vm4496_vm4, %v6988_v46  ;;  %v2580_v37 = vmul.f32 0.5, %v4434_v57  ;;  %v6127_v10 = vmul.f32 %v2613_v5, %v5903_v2  ;;  %4441 = vtanh.f32 %v2519_v19  ;;  %v6130_v47 = vadd.f32 %v7115_v53, %v4122_v15 }
 0x29a   : > { %v1632_v22 = vsel %vm1622_vm1, %v1611_v20, %v7123_v61  ;;  %7124 = vst [vmem:[#allocation53_spill] sm:$0xff] %v6122_v26  ;;  %4144 = vmatpush3.bf16.msra.mxu1 %v4277_v4  ;;  %v6135_v20 = vadd.f32 %v2098_v49, %v2062_v32  ;;  %v1889_v21 = vmul.f32 %v5036_v58, %v1580_v34  ;;  %4443 = vtanh.f32 %v1235_v30  ;;  %v4271_v32 = vld [vmem:[%s6894_s7 + $0x28] sm:$0xff]  }
 0x29b   : > { %7125 = vst [vmem:[#allocation56_spill] sm:$0xff] %v6127_v10  ;;  %7126 = vst [vmem:[#allocation54_spill] sm:$0xff] %v6130_v47  ;;  %v2060_v61 = vmul.f32 %v5048_v48, %v1532_v62  ;;  %4145 = vmatprep.subr.bf16.mxu1 %v6988_v46  ;;  %v1680_v2 = vsel %vm1406_vm3, %v1632_v22, 0.0  ;;  %v1888_v15 = vmul.f32 %v5036_v58, %v1532_v62  ;;  %v2582_v49 = vmul.f32 0.5, %v4436_v18  ;;  %v4279_v18 = vld [vmem:[%s6896_s9 + $0x28] sm:$0xff]  }
 0x29c   : > { %7127 = vst [vmem:[#allocation59_spill] sm:$0xff] %v6135_v20  ;;  %v2023_v5 = vadd.f32 %v1991_v52, %v1955_v9  ;;  %v2061_v19 = vmul.f32 %v5048_v48, %v1580_v34  ;;  %4126 = vmatpush3.bf16.msra.mxu0 %v4270_v39  ;;  %v2096_v57 = vmul.f32 %v7099_v8, %v6019_v12  ;;  %4445 = vtanh.f32 %v1240_v17 }
 0x29d   : > { %v1238_v30 = vmul.f32 0.5, %v6122_v26  ;;  %4127 = vmatprep.subr.bf16.mxu0 %v6988_v46  ;;  %v2683_v4 = vadd.f32 %v6022_v14, %v6127_v10  ;;  %v1924_v9 = vmul.f32 %v4992_v31, %v6019_v12  ;;  %v2163_v52 = vmul.f32 %v5051_v41, %v6084_v55 }
 0x29e   : > { %v1241_v39 = vmul.f32 0.5, %v6130_v47  ;;  %4146 = vmatpush3.bf16.msra.mxu1 %v4278_v54  ;;  %v1957_v22 = vadd.f32 %v6005_v45, %v1889_v21  ;;  %v2128_v17 = vadd.f32 %v2096_v57, %v2060_v61  ;;  %v2164_v46 = vmul.f32 %v5051_v41, %v1680_v2  ;;  %v4272_v45 = vld [vmem:[%s6894_s7 + $0x20] sm:$0xff]  }
 0x29f   : > { %v2233_v14 = vadd.f32 %v5916_v51, %v6059_v29  ;;  %v7128_v26 = vmov 0.0   ;;  %v1956_v59 = vadd.f32 %v1924_v9, %v1888_v15  ;;  %v1992_v20 = vmul.f32 %v5045_v7, %v1680_v2 }
 0x2a0   : > { %4147 = vmatprep.subr.bf16.mxu1 %v7128_v26  ;;  %v2129_v47 = vadd.f32 %v6009_v43, %v2061_v19  ;;  %v2234_v54 = vadd.f32 %v5916_v51, %v2023_v5  ;;  %4128 = vmatpush3.bf16.msra.mxu0 %v4271_v32  ;;  %v1716_v21 = vmul.f32 %v5019_v1, %v1532_v62  ;;  %4447 = vtanh.f32 %v1238_v30  ;;  %v4280_v5 = vld [vmem:[%s6896_s9 + $0x20] sm:$0xff]  }
 0x2a1   : > { %v1717_v61 = vmul.f32 %v5019_v1, %v1580_v34  ;;  %v1752_v29 = vmul.f32 %v4989_v44, %v6019_v12  ;;  %4129 = vmatprep.subr.bf16.mxu0 %v7128_v26  ;;  %v2612_v15 = vadd.f32 0.5, %v2580_v37  ;;  %v2684_v57 = vrot.slane %v2683_v4, 4 }
 0x2a2   : > { %v2195_v43 = vadd.f32 %v2163_v52, %v6061_v25  ;;  %4449 = vtanh.f32 %v1241_v39  ;;  %4148 = vmatpush3.bf16.msra.mxu1 %v4279_v18  ;;  %v2614_v19 = vadd.f32 0.5, %v2582_v49  ;;  %v1819_v62 = vmul.f32 %v5033_v28, %v6084_v55  ;;  %v4438_v32 = vpop.eup %4437  ;;  %v4273_v49 = vld [vmem:[%s6894_s7 + $0x18] sm:$0xff]  }
 0x2a3   : > { %v2196_v34 = vadd.f32 %v2164_v46, %v2128_v17  ;;  %v2361_v12 = vadd.f32 %v2233_v14, %v5965_v3  ;;  %4149 = vmatprep.subr.bf16.mxu1 %v7128_v26  ;;  %v2024_v37 = vadd.f32 %v1992_v20, %v1956_v59  ;;  %v2025_v30 = vadd.f32 %v6072_v63, %v1957_v22 }
 0x2a4   : > { %v2197_v25 = vadd.f32 %v6114_v13, %v2129_v47  ;;  %v2362_v9 = vadd.f32 %v2234_v54, %v5968_v38  ;;  %4130 = vmatpush3.bf16.msra.mxu0 %v4272_v45  ;;  %v4440_v52 = vpop.eup %4439  ;;  %v1784_v55 = vadd.f32 %v1752_v29, %v1716_v21  ;;  %v1785_v46 = vadd.f32 %v6001_v60, %v1717_v61  ;;  %v1198_v47 = vpop.f32.mrf.mxu1  ;;  %v4281_v60 = vld [vmem:[%s6896_s9 + $0x18] sm:$0xff]   ;;  %v7135_v21 = vld [vmem:[#allocation55_spill] sm:$0xff] }
 0x2a5   : > { %v1820_v3 = vmul.f32 %v5033_v28, %v1680_v2  ;;  %v1298_v39 = vmul.f32 0.5, %v4438_v32  ;;  %4131 = vmatprep.subr.bf16.mxu0 %v7128_v26  ;;  %v6195_v63 = vmul.f32 %v2612_v15, %v5940_v35  ;;  %v6197_v59 = vadd.f32 %v2684_v57, %v2683_v4 }
 0x2a6   : > { %v6200_v38 = vadd.f32 %v5997_v27, %v2195_v43  ;;  %v1301_v13 = vmul.f32 0.5, %v4440_v52  ;;  %4150 = vmatpush3.bf16.msra.mxu1 %v4280_v5  ;;  %v4442_v20 = vpop.eup %4441  ;;  %v6206_v2 = vmul.f32 %v2614_v19, %v5949_v36  ;;  %v1851_v18 = vadd.f32 %v1819_v62, %v6041_v16  ;;  %v4274_v36 = vld [vmem:[%s6894_s7 + $0x10] sm:$0xff]  }
 0x2a7   : > { %7129 = vst [vmem:[#allocation41_spill] sm:$0xff] %v6195_v63  ;;  %7130 = vst [vmem:[#allocation63_spill] sm:$0xff] %v6197_v59  ;;  %v6209_v35 = vadd.f32 %v2361_v12, %v2196_v34  ;;  %v1330_v4 = vadd.f32 0.5, %v1298_v39  ;;  %4151 = vmatprep.subr.bf16.mxu1 %v7128_v26  ;;  %v4444_v27 = vpop.eup %4443  ;;  %v2235_v22 = vadd.f32 %v5916_v51, %v2024_v37  ;;  %v7137_v52 = vrot.slane %v5962_v42, 7 }
 0x2a8   : > { %7131 = vst [vmem:[#allocation64_spill] sm:$0xff] %v6200_v38  ;;  %7132 = vst [vmem:[#allocation65_spill] sm:$0xff] %v6206_v2  ;;  %v2236_v17 = vadd.f32 %v5916_v51, %v2025_v30  ;;  %v6214_v14 = vadd.f32 %v2362_v9, %v2197_v25  ;;  %v1333_v54 = vadd.f32 0.5, %v1301_v13  ;;  %4132 = vmatpush3.bf16.msra.mxu0 %v4273_v49  ;;  %v2520_v19 = vmul.f32 0.5, %v6200_v38  ;;  %v4275_v9 = vld [vmem:[%s6894_s7 + $0x8] sm:$0xff]  }
 0x2a9   : > { %7133 = vst [vmem:[#allocation66_spill] sm:$0xff] %v6209_v35  ;;  %v6219_v45 = vadd.f32 %v1820_v3, %v1784_v55  ;;  %v6222_v16 = vadd.f32 %v6067_v56, %v1785_v46  ;;  %v6225_v61 = vmul.f32 %v1330_v4, %v7135_v21  ;;  %v6228_v29 = vadd.f32 %v7115_v53, %v1198_v47  ;;  %v4446_v15 = vpop.eup %4445  ;;  %v4282_v56 = vld [vmem:[%s6896_s9 + $0x10] sm:$0xff]  }
 0x2aa   : > { %7134 = vst [vmem:[#allocation67_spill] sm:$0xff] %v6214_v14  ;;  %4133 = vmatprep.subr.bf16.mxu0 %v7128_v26  ;;  %v6236_v62 = vmul.f32 %v1333_v54, %v7113_v50  ;;  %4152 = vmatpush3.bf16.msra.mxu1 %v4281_v60  ;;  %v2521_v53 = vmul.f32 0.5, %v6209_v35  ;;  %v1299_v32 = vmul.f32 0.5, %v4444_v27  ;;  %v6246_v37 = vadd.f32 %v2235_v22, %v6052_v23 }
 0x2ab   : > { %v1513_v34 = vrot.slane %v6225_v61, 7  ;;  %v1614_v12 = vrot.slane %v6225_v61, 1  ;;  %4153 = vmatprep.subr.bf16.mxu1 %v7128_v26  ;;  %v6248_v30 = vadd.f32 %v2236_v17, %v1851_v18  ;;  %v2522_v50 = vmul.f32 0.5, %v6214_v14 }
 0x2ac   : > { %v1515_v25 = vrot.slane %v6039_v0, 7  ;;  %4134 = vmatpush3.bf16.msra.mxu0 %v4274_v36  ;;  %v6255_v49 = vmul.f32 0.5, %v4442_v20  ;;  %v1304_v55 = vmul.f32 0.5, %v4446_v15  ;;  %v1239_v46 = vmul.f32 0.5, %v6228_v29  ;;  %v4283_v20 = vld [vmem:[%s6896_s9 + $0x8] sm:$0xff]   ;;  %v4276_v36 = vld [vmem:[%s6894_s7] sm:$0xff]  }
 0x2ad   : > { %v1529_v23 = vsel %vm1521_vm0, %v7137_v52, %v1513_v34  ;;  %4135 = vmatprep.subr.bf16.mxu0 %v7128_v26  ;;  %v4448_v3 = vpop.eup %4447  ;;  %4451 = vtanh.f32 %v2520_v19  ;;  %v1616_v39 = vrot.slane %v6039_v0, 1  ;;  %v7138_v13 = vrot.slane %v5962_v42, 1 }
 0x2ae   : > { %v6993_v60 = vrot.slane %v6236_v62, 7  ;;  %4154 = vmatpush3.bf16.msra.mxu1 %v4282_v56  ;;  %4453 = vtanh.f32 %v2521_v53  ;;  %v6278_v4 = vmul.f32 %v4989_v44, %v6039_v0  ;;  %v6994_v27 = vrot.slane %v6236_v62, 1 }
 0x2af   : > { %v1630_v47 = vsel %vm1622_vm1, %v7138_v13, %v1614_v12  ;;  %v4450_v18 = vpop.eup %4449  ;;  %v1331_v22 = vadd.f32 0.5, %v1299_v32  ;;  %4155 = vmatprep.subr.bf16.mxu1 %v7128_v26  ;;  %4455 = vtanh.f32 %v2522_v50  ;;  %v6284_v42 = vmul.f32 %v4992_v31, %v6039_v0 }
 0x2b0   : > { %v6288_v17 = vmul.f32 %v7099_v8, %v6039_v0  ;;  %v1582_v54 = vsel %vm1403_vm2, %v1529_v23, 0.0  ;;  %4136 = vmatpush3.bf16.msra.mxu0 %v4275_v9  ;;  %v1682_v21 = vsel %vm1406_vm3, %v1630_v47, 0.0  ;;  %v6297_v15 = vadd.f32 0.5, %v1304_v55 }
 0x2b1   : > { %v6299_v19 = vmul.f32 0.5, %v4448_v3  ;;  %4457 = vtanh.f32 %v1239_v46  ;;  %4137 = vmatprep.subr.bf16.mxu0 %v7128_v26  ;;  %v1755_v0 = vmul.f32 %v4989_v44, %v6225_v61  ;;  %v1927_v56 = vmul.f32 %v4992_v31, %v6225_v61 }
 0x2b2   : > { %v1526_v53 = vsel %vm1521_vm0, %v1515_v25, %v6993_v60  ;;  %v6310_v32 = vmul.f32 0.5, %v4450_v18  ;;  %4156 = vmatpush3.bf16.msra.mxu1 %v4283_v20  ;;  %v1719_v50 = vmul.f32 %v5019_v1, %v1582_v54  ;;  %v2099_v9 = vmul.f32 %v7099_v8, %v6225_v61 }
 0x2b3   : > { %v1627_v52 = vsel %vm1622_vm1, %v1616_v39, %v6994_v27  ;;  %v1363_v23 = vmul.f32 %v1331_v22, %v6026_v24  ;;  %4157 = vmatprep.subr.bf16.mxu1 %v7128_v26  ;;  %v1822_v55 = vmul.f32 %v5033_v28, %v1682_v21  ;;  %v1891_v46 = vmul.f32 %v5036_v58, %v1582_v54 }
 0x2b4   : > { %v1994_v3 = vmul.f32 %v5045_v7, %v1682_v21  ;;  %v2063_v13 = vmul.f32 %v5048_v48, %v1582_v54  ;;  %4138 = vmatpush3.bf16.msra.mxu0 %v4276_v36  ;;  %v2166_v47 = vmul.f32 %v5051_v41, %v1682_v21  ;;  %v1722_v20 = vmul.f32 %v5019_v1, %v1526_v53 }
 0x2b5   : > { %v1514_v18 = vrot.slane %v1363_v23, 7  ;;  %v1615_v57 = vrot.slane %v1363_v23, 1  ;;  %v1758_v24 = vmul.f32 %v4989_v44, %v6236_v62  ;;  %v6330_v26 = vmul.f32 %v5033_v28, %v1627_v52 }
 0x2b6   : > { %v1930_v22 = vmul.f32 %v4992_v31, %v6236_v62  ;;  %v2102_v5 = vmul.f32 %v7099_v8, %v6236_v62  ;;  %v6348_v27 = vadd.f32 %v1755_v0, %v1719_v50  ;;  %v1959_v59 = vadd.f32 %v1927_v56, %v1891_v46 }
 0x2b7   : > { %v1527_v54 = vsel %vm1521_vm0, %v1514_v18, %v1515_v25  ;;  %v1528_v36 = vsel %vm1521_vm0, %v1513_v34, %v1514_v18  ;;  %v1628_v21 = vsel %vm1622_vm1, %v1615_v57, %v1616_v39  ;;  %v1629_v60 = vsel %vm1622_vm1, %v1614_v12, %v1615_v57  ;;  %v7139_v18 = vld [vmem:[#allocation59_spill] sm:$0xff] }
 0x2b8   : > { %v2026_v2 = vadd.f32 %v1994_v3, %v6092_v6  ;;  %v1584_v25 = vsel %vm1403_vm2, %v1527_v54, 0.0  ;;  %v6354_v63 = vadd.f32 %v1822_v55, %v6064_v11  ;;  %v2131_v34 = vadd.f32 %v2099_v9, %v2063_v13 }
 0x2b9   : > { %v2198_v14 = vadd.f32 %v2166_v47, %v7139_v18  ;;  %v6357_v39 = vadd.f32 %v1758_v24, %v1722_v20  ;;  %v1894_v61 = vmul.f32 %v5036_v58, %v1526_v53  ;;  %v1684_v57 = vsel %vm1406_vm3, %v1628_v21, 0.0 }
 0x2ba   : > { %v1892_v12 = vmul.f32 %v5036_v58, %v1528_v36  ;;  %v1995_v6 = vmul.f32 %v5045_v7, %v1629_v60  ;;  %v6364_v0 = vpop.eup %4451  ;;  %v1997_v56 = vmul.f32 %v5045_v7, %v1627_v52  ;;  %v1893_v11 = vmul.f32 %v5036_v58, %v1584_v25 }
 0x2bb   : > { %v2064_v50 = vmul.f32 %v5048_v48, %v1528_v36  ;;  %v2100_v9 = vmul.f32 %v7099_v8, %v1363_v23  ;;  %v6370_v55 = vpop.eup %4453  ;;  %v1928_v46 = vmul.f32 %v4992_v31, %v1363_v23  ;;  %v2065_v13 = vmul.f32 %v5048_v48, %v1584_v25 }
 0x2bc   : > { %v2027_v3 = vadd.f32 %v1995_v6, %v1959_v59  ;;  %v2237_v47 = vadd.f32 %v5916_v51, %v2026_v2  ;;  %v6375_v20 = vpop.eup %4455  ;;  %v6378_v24 = vadd.f32 %v6246_v37, %v2198_v14  ;;  %v1996_v54 = vmul.f32 %v5045_v7, %v1684_v57 }
 0x2bd   : > { %7140 = vst [vmem:[#allocation55_spill] sm:$0xff] %v6375_v20  ;;  %v2132_v21 = vadd.f32 %v2100_v9, %v2064_v50  ;;  %v2167_v18 = vmul.f32 %v5051_v41, %v1629_v60  ;;  %v1960_v10 = vadd.f32 %v1928_v46, %v1892_v12  ;;  %v2133_v43 = vadd.f32 %v6288_v17, %v2065_v13 }
 0x2be   : > { %v4458_v35 = vpop.eup %4457  ;;  %v2168_v59 = vmul.f32 %v5051_v41, %v1684_v57  ;;  %v2238_v6 = vadd.f32 %v5916_v51, %v2027_v3  ;;  %v2169_v2 = vmul.f32 %v5051_v41, %v1627_v52  ;;  %v1720_v38 = vmul.f32 %v5019_v1, %v1528_v36 }
 0x2bf   : > { %v1961_v14 = vadd.f32 %v6284_v42, %v1893_v11  ;;  %v2199_v37 = vadd.f32 %v2167_v18, %v2131_v34  ;;  %v2066_v20 = vmul.f32 %v5048_v48, %v1526_v53  ;;  %v1756_v50 = vmul.f32 %v4989_v44, %v1363_v23 }
 0x2c0   : > { %v2200_v9 = vadd.f32 %v2168_v59, %v2132_v21  ;;  %v2365_v12 = vadd.f32 %v2237_v47, %v6219_v45  ;;  %v2523_v17 = vmul.f32 0.5, %v6378_v24  ;;  %v1721_v46 = vmul.f32 %v5019_v1, %v1584_v25 }
 0x2c1   : > { %v2201_v13 = vadd.f32 %v2169_v2, %v2133_v43  ;;  %v2366_v3 = vadd.f32 %v2238_v6, %v6222_v16  ;;  %v1823_v52 = vmul.f32 %v5033_v28, %v1629_v60  ;;  %v1824_v36 = vmul.f32 %v5033_v28, %v1684_v57  ;;  %v7141_v43 = vld [vmem:[#allocation57_spill] sm:$0xff] }
 0x2c2   : > { %v2028_v42 = vadd.f32 %v1996_v54, %v1960_v10  ;;  %v1334_v34 = vadd.f32 0.5, %v6299_v19  ;;  %v1788_v53 = vadd.f32 %v1756_v50, %v1720_v38  ;;  %v2029_v11 = vadd.f32 %v1997_v56, %v1961_v14  ;;  %v7142_v60 = vld [vmem:[#allocation53_spill] sm:$0xff] }
 0x2c3   : > { %v6398_v23 = vadd.f32 %v6248_v30, %v2199_v37  ;;  %v1337_v45 = vadd.f32 0.5, %v6310_v32  ;;  %v6401_v47 = vadd.f32 %v1930_v22, %v1894_v61  ;;  %v6403_v25 = vadd.f32 %v2365_v12, %v2200_v9  ;;  %v7143_v30 = vld [vmem:[#allocation54_spill] sm:$0xff] }
 0x2c4   : > { %v6407_v16 = vmul.f32 %v6297_v15, %v7141_v43  ;;  %v6410_v57 = vmul.f32 %v1334_v34, %v7142_v60  ;;  %v2134_v10 = vadd.f32 %v2102_v5, %v2066_v20  ;;  %v1789_v38 = vadd.f32 %v6278_v4, %v1721_v46 }
 0x2c5   : > { %v6413_v19 = vadd.f32 %v2366_v3, %v2201_v13  ;;  %v6416_v56 = vmul.f32 %v1337_v45, %v7143_v30  ;;  %4459 = vtanh.f32 %v2523_v17  ;;  %v2239_v32 = vadd.f32 %v5916_v51, %v2028_v42  ;;  %v7146_v42 = vld [vmem:[#allocation37_spill] sm:$0xff] }
 0x2c6   : > { %v7005_v22 = vrot.slane %v6410_v57, 7  ;;  %v7004_v61 = vrot.slane %v6410_v57, 1  ;;  %v1855_v15 = vadd.f32 %v1823_v52, %v6348_v27  ;;  %v6422_v54 = vadd.f32 %v1824_v36, %v1788_v53 }
 0x2c7   : > { %v2240_v5 = vadd.f32 %v5916_v51, %v2029_v11  ;;  %v2524_v4 = vmul.f32 0.5, %v6398_v23  ;;  %v2525_v20 = vmul.f32 0.5, %v6403_v25  ;;  %v7144_v21 = vrot.slane %v6236_v62, 1 }
 0x2c8   : > { %v1520_v59 = vrot.slane %v6416_v56, 7  ;;  %v1303_v6 = vmul.f32 0.5, %v4458_v35  ;;  %v6435_v27 = vadd.f32 %v6330_v26, %v1789_v38  ;;  %v2526_v2 = vmul.f32 0.5, %v6413_v19 }
 0x2c9   : > { %v1626_v18 = vsel %vm1622_vm1, %v7144_v21, %v7004_v61  ;;  %v1519_v14 = vrot.slane %v6407_v16, 7  ;;  %v2367_v50 = vadd.f32 %v2239_v32, %v6354_v63  ;;  %v7006_v9 = vrot.slane %v6407_v16, 1 }
 0x2ca   : > { %v1686_v37 = vsel %vm1406_vm3, %v1626_v18, 0.0  ;;  %v7145_v12 = vrot.slane %v6236_v62, 7  ;;  %v1621_v26 = vrot.slane %v6416_v56, 1  ;;  %4461 = vtanh.f32 %v2524_v4 }
 0x2cb   : > { %v6452_v17 = vmul.f32 %v4992_v31, %v6407_v16  ;;  %v6456_v46 = vmul.f32 %v7099_v8, %v6407_v16  ;;  %v2170_v63 = vmul.f32 %v5051_v41, %v1686_v37  ;;  %v6459_v13 = vadd.f32 %v2240_v5, %v1855_v15 }
 0x2cc   : > { %v1525_v35 = vsel %vm1521_vm0, %v7145_v12, %v7005_v22  ;;  %4463 = vtanh.f32 %v2525_v20  ;;  %v1522_v62 = vsel %vm1521_vm0, %v1519_v14, %v1520_v59  ;;  %v1335_v3 = vadd.f32 0.5, %v1303_v6  ;;  %v7149_v6 = vld [vmem:[#allocation39_spill] sm:$0xff]  ;;  %v7150_v12 = vld [vmem:[#allocation40_spill] sm:$0xff] }
 0x2cd   : > { %4465 = vtanh.f32 %v2526_v2  ;;  %v1586_v52 = vsel %vm1403_vm2, %v1525_v35, 0.0  ;;  %v2202_v36 = vadd.f32 %v2170_v63, %v2134_v10  ;;  %v7147_v34 = vrot.slane %v7146_v42, 7 }
 0x2ce   : > { %v1759_v11 = vmul.f32 %v4989_v44, %v6410_v57  ;;  %v1931_v45 = vmul.f32 %v4992_v31, %v6410_v57  ;;  %v7148_v60 = vrot.slane %v7146_v42, 1  ;;  %v1898_v32 = vmul.f32 %v5036_v58, %v1522_v62 }
 0x2cf   : > { %v1553_v53 = vsel %vm1521_vm0, %v1520_v59, %v7147_v34  ;;  %v1934_v15 = vmul.f32 %v4992_v31, %v6416_v56  ;;  %v1723_v5 = vmul.f32 %v5019_v1, %v1586_v52  ;;  %v1895_v4 = vmul.f32 %v5036_v58, %v1586_v52 }
 0x2d0   : > { %v1558_v43 = vsel %vm1403_vm2, %v1553_v53, 0.0  ;;  %v1654_v38 = vsel %vm1622_vm1, %v1621_v26, %v7148_v60  ;;  %v1998_v20 = vmul.f32 %v5045_v7, %v1686_v37  ;;  %v2067_v18 = vmul.f32 %v5048_v48, %v1586_v52 }
 0x2d1   : > { %v1695_v10 = vmul.f32 %v5019_v1, %v1558_v43  ;;  %v1867_v30 = vmul.f32 %v5036_v58, %v1558_v43  ;;  %v1690_v21 = vsel %vm1406_vm3, %v1654_v38, 0.0  ;;  %v6490_v59 = vadd.f32 %v2367_v50, %v2202_v36  ;;  %v7151_v50 = vld [vmem:[#allocation42_spill] sm:$0xff]  ;;  %v7152_v38 = vld [vmem:[#allocation43_spill] sm:$0xff] }
 0x2d2   : > { %v6495_v63 = vmul.f32 %v5033_v28, %v1686_v37  ;;  %v2103_v42 = vmul.f32 %v7099_v8, %v6410_v57  ;;  %v1623_v34 = vsel %vm1622_vm1, %v7006_v9, %v1621_v26  ;;  %v1367_v53 = vmul.f32 %v1335_v3, %v6228_v29  ;;  %v6504_v52 = vpop.eup %4459  ;;  %v7153_v29 = vld [vmem:[#allocation46_spill] sm:$0xff] }
 0x2d3   : > { %v1763_v2 = vadd.f32 %v7149_v6, %v1695_v10  ;;  %v1935_v35 = vadd.f32 %v7150_v12, %v1867_v30  ;;  %v1966_v43 = vadd.f32 %v1934_v15, %v1898_v32  ;;  %v2002_v60 = vmul.f32 %v5045_v7, %v1690_v21 }
 0x2d4   : > { %v1791_v10 = vadd.f32 %v1759_v11, %v1723_v5  ;;  %v1963_v30 = vadd.f32 %v1931_v45, %v1895_v4  ;;  %v2030_v6 = vadd.f32 %v1998_v20, %v6401_v47  ;;  %v1518_v12 = vrot.slane %v1367_v53, 7  ;;  %v7155_v4 = vld [vmem:[#allocation44_spill] sm:$0xff] }
 0x2d5   : > { %v1831_v36 = vadd.f32 %v7151_v50, %v1763_v2  ;;  %v2003_v37 = vadd.f32 %v7152_v38, %v1935_v35  ;;  %v2135_v61 = vadd.f32 %v2103_v42, %v2067_v18  ;;  %v2527_v22 = vmul.f32 0.5, %v6490_v59  ;;  %v7156_v18 = vld [vmem:[#allocation47_spill] sm:$0xff] }
 0x2d6   : > { %v2001_v9 = vmul.f32 %v5045_v7, %v1623_v34  ;;  %v2070_v32 = vmul.f32 %v5048_v48, %v1522_v62  ;;  %v1523_v15 = vsel %vm1521_vm0, %v1518_v12, %v1519_v14  ;;  %v7154_v11 = vrot.slane %v6410_v57, 7 }
 0x2d7   : > { %v2214_v26 = vadd.f32 %v5916_v51, %v2003_v37  ;;  %v2344_v3 = vadd.f32 %v7153_v29, %v1831_v36  ;;  %v2034_v45 = vadd.f32 %v2002_v60, %v1966_v43  ;;  %v2106_v5 = vmul.f32 %v7099_v8, %v6416_v56  ;;  %v6529_v35 = vpop.eup %4461 }
 0x2d8   : > { %v1524_v47 = vsel %vm1521_vm0, %v7154_v11, %v1518_v12  ;;  %v2173_v62 = vmul.f32 %v5051_v41, %v1623_v34  ;;  %v2174_v14 = vmul.f32 %v5051_v41, %v1690_v21  ;;  %v1619_v42 = vrot.slane %v1367_v53, 1 }
 0x2d9   : > { %v6524_v20 = vadd.f32 %v2214_v26, %v7155_v4  ;;  %v6527_v2 = vadd.f32 %v2344_v3, %v7156_v18  ;;  %v1724_v50 = vmul.f32 %v5019_v1, %v1524_v47  ;;  %v6534_v36 = vpop.eup %4463  ;;  %4467 = vtanh.f32 %v2527_v22 }
 0x2da   : > { %v1588_v60 = vsel %vm1403_vm2, %v1523_v15, 0.0  ;;  %v6540_v38 = vpop.eup %4465  ;;  %v2138_v37 = vadd.f32 %v2106_v5, %v2070_v32  ;;  %v7157_v34 = vrot.slane %v6407_v16, 1  ;;  %v7158_v1 = vrot.slane %v6410_v57, 1 }
 0x2db   : > { %v2502_v56 = vmul.f32 0.5, %v6524_v20  ;;  %v2504_v43 = vmul.f32 0.5, %v6527_v2  ;;  %v1760_v12 = vmul.f32 %v4989_v44, %v1367_v53  ;;  %v2245_v26 = vadd.f32 %v5916_v51, %v2034_v45 }
 0x2dc   : > { %v1624_v21 = vsel %vm1622_vm1, %v1619_v42, %v7157_v34  ;;  %v1625_v22 = vsel %vm1622_vm1, %v7158_v1, %v1619_v42  ;;  %v1896_v3 = vmul.f32 %v5036_v58, %v1524_v47  ;;  %v1897_v15 = vmul.f32 %v5036_v58, %v1588_v60 }
 0x2dd   : > { %4469 = vtanh.f32 %v2502_v56  ;;  %v1688_v29 = vsel %vm1406_vm3, %v1624_v21, 0.0  ;;  %v1792_v16 = vadd.f32 %v1760_v12, %v1724_v50  ;;  %v1827_v57 = vmul.f32 %v5033_v28, %v1625_v22 }
 0x2de   : > { %4471 = vtanh.f32 %v2504_v43  ;;  %v1828_v32 = vmul.f32 %v5033_v28, %v1688_v29  ;;  %v1932_v11 = vmul.f32 %v4992_v31, %v1367_v53  ;;  %v1999_v44 = vmul.f32 %v5045_v7, %v1625_v22 }
 0x2df   : > { %v2000_v45 = vmul.f32 %v5045_v7, %v1688_v29  ;;  %v1965_v33 = vadd.f32 %v6452_v17, %v1897_v15  ;;  %v2068_v4 = vmul.f32 %v5048_v48, %v1524_v47  ;;  %v2069_v18 = vmul.f32 %v5048_v48, %v1588_v60 }
 0x2e0   : > { %v1860_v5 = vadd.f32 %v1828_v32, %v1792_v16  ;;  %v1964_v42 = vadd.f32 %v1932_v11, %v1896_v3  ;;  %v2031_v50 = vadd.f32 %v1999_v44, %v1963_v30  ;;  %v2104_v56 = vmul.f32 %v7099_v8, %v1367_v53  ;;  %v7161_v16 = vld [vmem:[#allocation55_spill] sm:$0xff] }
 0x2e1   : > { %v2171_v58 = vmul.f32 %v5051_v41, %v1625_v22  ;;  %v2033_v28 = vadd.f32 %v2001_v9, %v1965_v33  ;;  %v2137_v31 = vadd.f32 %v6456_v46, %v2069_v18  ;;  %v2172_v43 = vmul.f32 %v5051_v41, %v1688_v29 }
 0x2e2   : > { %v2241_v7 = vadd.f32 %v5916_v51, %v2030_v6  ;;  %v1859_v34 = vadd.f32 %v1827_v57, %v1791_v10  ;;  %v2032_v21 = vadd.f32 %v2000_v45, %v1964_v42  ;;  %v2136_v17 = vadd.f32 %v2104_v56, %v2068_v4 }
 0x2e3   : > { %v2203_v1 = vadd.f32 %v2171_v58, %v2135_v61  ;;  %v2205_v47 = vadd.f32 %v2173_v62, %v2137_v31  ;;  %v2242_v48 = vadd.f32 %v5916_v51, %v2031_v50  ;;  %v2244_v30 = vadd.f32 %v5916_v51, %v2033_v28 }
 0x2e4   : > { %v2369_v8 = vadd.f32 %v2241_v7, %v6422_v54  ;;  %v1858_v9 = vadd.f32 %v6495_v63, %v6357_v39  ;;  %v2204_v53 = vadd.f32 %v2172_v43, %v2136_v17  ;;  %v2243_v46 = vadd.f32 %v5916_v51, %v2032_v21  ;;  %v7162_v43 = vld [vmem:[#allocation62_spill] sm:$0xff] }
 0x2e5   : > { %v6575_v41 = vadd.f32 %v2245_v26, %v1860_v5  ;;  %v2615_v10 = vadd.f32 0.5, %v6255_v49  ;;  %v2370_v6 = vadd.f32 %v2242_v48, %v6435_v27  ;;  %v6579_v61 = vadd.f32 %v2244_v30, %v1859_v34  ;;  %v7159_v26 = vld [vmem:[#allocation51_spill] sm:$0xff]  ;;  %v7160_v27 = vld [vmem:[#allocation49_spill] sm:$0xff]  ;;  %v7163_v7 = vld [vmem:[#allocation34_spill] sm:$0xff] }
 0x2e6   : > { %v6582_v62 = vadd.f32 %v6459_v13, %v2203_v1  ;;  %v2206_v60 = vadd.f32 %v2174_v14, %v2138_v37  ;;  %v2371_v22 = vadd.f32 %v2243_v46, %v1858_v9  ;;  %v6584_v54 = vadd.f32 %v2369_v8, %v2204_v53  ;;  %v4468_v63 = vpop.eup %4467  ;;  %v7164_v34 = vld [vmem:[#allocation64_spill] sm:$0xff]  ;;  %v7165_v1 = vld [vmem:[#allocation45_spill] sm:$0xff]  ;;  %v7168_v30 = vld [vmem:[#allocation66_spill] sm:$0xff] }
 0x2e7   : > { %v2533_v39 = vmul.f32 0.5, %v6575_v41  ;;  %v2584_v51 = vmul.f32 0.5, %v6364_v0  ;;  %v6588_v12 = vadd.f32 %v2370_v6, %v2205_v47  ;;  %v2734_v29 = vmax.f32 %v7160_v27, %v7159_v26  ;;  %v7166_v47 = vld [vmem:[#allocation56_spill] sm:$0xff]  ;;  %v7171_v6 = vld [vmem:[#allocation61_spill] sm:$0xff] }
 0x2e8   : > { %v2528_v49 = vmul.f32 0.5, %v6582_v62  ;;  %v2585_v3 = vmul.f32 0.5, %v6370_v55  ;;  %v6594_v13 = vadd.f32 %v2371_v22, %v2206_v60  ;;  %v2529_v14 = vmul.f32 0.5, %v6584_v54  ;;  %v7170_v46 = vld [vmem:[#allocation48_spill] sm:$0xff] }
 0x2e9   : > { %4473 = vtanh.f32 %v2533_v39  ;;  %v2586_v32 = vmul.f32 0.5, %v7161_v16  ;;  %v2530_v15 = vmul.f32 0.5, %v6588_v12  ;;  %v2532_v0 = vmul.f32 0.5, %v6579_v61  ;;  %v7173_v39 = vld [vmem:[#allocation67_spill] sm:$0xff]  ;;  %v7177_v16 = vld [vmem:[#allocation52_spill] sm:$0xff] }
 0x2ea   : > { %v4470_v37 = vpop.eup %4469  ;;  %4475 = vtanh.f32 %v2528_v49  ;;  %v2587_v11 = vmul.f32 0.5, %v6504_v52  ;;  %v2531_v45 = vmul.f32 0.5, %v6594_v13  ;;  %v2616_v55 = vadd.f32 0.5, %v2584_v51  ;;  %v7174_v49 = vld [vmem:[#allocation36_spill] sm:$0xff] }
 0x2eb   : > { %v4472_v57 = vpop.eup %4471  ;;  %v2566_v44 = vmul.f32 0.5, %v4470_v37  ;;  %4477 = vtanh.f32 %v2529_v14  ;;  %v2588_v5 = vmul.f32 0.5, %v6529_v35  ;;  %v2617_v4 = vadd.f32 0.5, %v2585_v3  ;;  %v7175_v3 = vld [vmem:[#allocation41_spill] sm:$0xff]  ;;  %v7176_v14 = vld [vmem:[#allocation58_spill] sm:$0xff] }
 0x2ec   : > { %v2568_v33 = vmul.f32 0.5, %v4472_v57  ;;  %4479 = vtanh.f32 %v2530_v15  ;;  %v2589_v18 = vmul.f32 0.5, %v6534_v36  ;;  %v2618_v50 = vadd.f32 0.5, %v2586_v32  ;;  %v7178_v57 = vld [vmem:[#allocation65_spill] sm:$0xff] }
 0x2ed   : > { %v2598_v42 = vadd.f32 0.5, %v2566_v44  ;;  %4481 = vtanh.f32 %v2531_v45  ;;  %v2590_v56 = vmul.f32 0.5, %v6540_v38  ;;  %v2619_v52 = vadd.f32 0.5, %v2587_v11  ;;  %v7179_v45 = vld [vmem:[#allocation38_spill] sm:$0xff] }
 0x2ee   : > { %v2600_v58 = vadd.f32 0.5, %v2568_v33  ;;  %4483 = vtanh.f32 %v2532_v0  ;;  %v2591_v28 = vmul.f32 0.5, %v4468_v63  ;;  %v2732_v35 = vmax.f32 %v7163_v7, %v7162_v43 }
 0x2ef   : > { %v6606_v31 = vmul.f32 %v2598_v42, %v6524_v20  ;;  %v6611_v21 = vmul.f32 %v2616_v55, %v7164_v34  ;;  %v2620_v17 = vadd.f32 0.5, %v2588_v5  ;;  %v7167_v38 = vmax.f32 %v7165_v1, %v7166_v47  ;;  %v7169_v20 = vld [vmem:[#allocation60_spill] sm:$0xff] }
 0x2f0   : > { %v6614_v36 = vmul.f32 %v2600_v58, %v6527_v2  ;;  %v6620_v8 = vmul.f32 %v2617_v4, %v7168_v30  ;;  %v2621_v9 = vadd.f32 0.5, %v2589_v18  ;;  %v7172_v60 = vmax.f32 %v7170_v46, %v7171_v6  ;;  %v7180_v4 = vld [vmem:[#allocation50_spill] sm:$0xff] }
 0x2f1   : > { %v2737_v48 = vmax.f32 %v2734_v29, %v7167_v38  ;;  %v2719_v53 = vmax.f32 %v6606_v31, %v7169_v20  ;;  %v6628_v63 = vmul.f32 %v2618_v50, %v7173_v39  ;;  %v2622_v2 = vadd.f32 0.5, %v2590_v56  ;;  %v7181_v50 = vld [vmem:[#allocation63_spill] sm:$0xff] }
 0x2f2   : > { %v2736_v22 = vmax.f32 %v2732_v35, %v7172_v60  ;;  %v2662_v51 = vadd.f32 %v6614_v36, %v6606_v31  ;;  %v2720_v29 = vmax.f32 %v6614_v36, %v7174_v49  ;;  %v2722_v37 = vmax.f32 %v7176_v14, %v7175_v3 }
 0x2f3   : > { %v6637_v32 = vmul.f32 %v2615_v10, %v7177_v16  ;;  %v6640_v15 = vmul.f32 %v2619_v52, %v6378_v24  ;;  %v2623_v0 = vadd.f32 0.5, %v2591_v28  ;;  %v2691_v11 = vadd.f32 %v6611_v21, %v7178_v57 }
 0x2f4   : > { %v6645_v44 = vmul.f32 %v2620_v17, %v6398_v23  ;;  %v2663_v55 = vadd.f32 %v2662_v51, %v7179_v45  ;;  %v6648_v5 = vmax.f32 %v2736_v22, %v2737_v48  ;;  %v6653_v10 = vmul.f32 %v2621_v9, %v6403_v25 }
 0x2f5   : > { %v2705_v33 = vadd.f32 %v6620_v8, %v6637_v32  ;;  %v2721_v24 = vmax.f32 %v7179_v45, %v7180_v4  ;;  %v2723_v18 = vmax.f32 %v2719_v53, %v2720_v29  ;;  %v7182_v56 = vrot.slane %v7181_v50, 2 }
 0x2f6   : > { %v4474_v42 = vpop.eup %4473  ;;  %v6663_v58 = vmul.f32 %v2622_v2, %v6413_v19  ;;  %v2692_v52 = vadd.f32 %v2691_v11, %v6628_v63  ;;  %v2664_v28 = vadd.f32 %v2663_v55, %v7176_v14  ;;  %v6669_v34 = vmul.f32 %v2623_v0, %v6490_v59 }
 0x2f7   : > { %v6660_v23 = vadd.f32 %v7182_v56, %v7181_v50  ;;  %v4476_v35 = vpop.eup %4475  ;;  %v2706_v25 = vadd.f32 %v2705_v33, %v6640_v15  ;;  %v2597_v17 = vmul.f32 0.5, %v4474_v42  ;;  %v2724_v38 = vmax.f32 %v2721_v24, %v2722_v37 }
 0x2f8   : > { %v4478_v48 = vpop.eup %4477  ;;  %v2693_v30 = vadd.f32 %v2692_v52, %v6645_v44  ;;  %v2665_v9 = vadd.f32 %v2664_v28, %v7169_v20  ;;  %v2592_v53 = vmul.f32 0.5, %v4476_v35  ;;  %v2739_v19 = vrot.slane %v6648_v5, 4 }
 0x2f9   : > { %v4480_v60 = vpop.eup %4479  ;;  %v2707_v22 = vadd.f32 %v2706_v25, %v6653_v10  ;;  %v2593_v39 = vmul.f32 0.5, %v4478_v48  ;;  %v2629_v2 = vadd.f32 0.5, %v2597_v17  ;;  %v2725_v51 = vmax.f32 %v2723_v18, %v2724_v38 }
 0x2fa   : > { %v4482_v29 = vpop.eup %4481  ;;  %v2666_v59 = vadd.f32 %v2665_v9, %v7174_v49  ;;  %v2594_v16 = vmul.f32 0.5, %v4480_v60  ;;  %v2624_v0 = vadd.f32 0.5, %v2592_v53  ;;  %v2694_v37 = vadd.f32 %v2693_v30, %v6663_v58 }
 0x2fb   : > { %v4484_v11 = vpop.eup %4483  ;;  %v2595_v55 = vmul.f32 0.5, %v4482_v29  ;;  %v2625_v33 = vadd.f32 0.5, %v2593_v39  ;;  %v2708_v24 = vadd.f32 %v2707_v22, %v6669_v34  ;;  %v2745_v42 = vmax.f32 %v7178_v57, %v6663_v58 }
 0x2fc   : > { %v2596_v50 = vmul.f32 0.5, %v4484_v11  ;;  %v2626_v56 = vadd.f32 0.5, %v2594_v16  ;;  %v6681_v52 = vmul.f32 %v2624_v0, %v6582_v62  ;;  %v2667_v18 = vadd.f32 %v2666_v59, %v7180_v4 }
 0x2fd   : > { %v2627_v28 = vadd.f32 0.5, %v2595_v55  ;;  %v6685_v35 = vmul.f32 %v2625_v33, %v6584_v54  ;;  %v6688_v25 = vmul.f32 %v2629_v2, %v6575_v41  ;;  %v2726_v17 = vrot.slane %v2725_v51, 4 }
 0x2fe   : > { %v2628_v38 = vadd.f32 0.5, %v2596_v50  ;;  %v6691_v48 = vmul.f32 %v2626_v56, %v6588_v12  ;;  %v2695_v30 = vadd.f32 %v2694_v37, %v6681_v52  ;;  %v2668_v9 = vadd.f32 %v2667_v18, %v7175_v3 }
 0x2ff   : > { %7183 = vst [vmem:[#allocation59_spill] sm:$0xff] %v6688_v25  ;;  %v6696_v62 = vmul.f32 %v2627_v28, %v6594_v13  ;;  %v2709_v53 = vadd.f32 %v2708_v24, %v6685_v35  ;;  %v2746_v54 = vmax.f32 %v6611_v21, %v6681_v52  ;;  %v2758_v41 = vmax.f32 %v6637_v32, %v6669_v34 }
 0x300   : > { %v6704_v60 = vmul.f32 %v2628_v38, %v6579_v61  ;;  %v2696_v12 = vadd.f32 %v2695_v30, %v6691_v48  ;;  %v2669_v22 = vrot.slane %v2668_v9, 4  ;;  %v2747_v39 = vmax.f32 %v6628_v63, %v6691_v48 }
 0x301   : > { %7184 = vst [vmem:[#allocation57_spill] sm:$0xff] %v6696_v62  ;;  %v2710_v13 = vadd.f32 %v2709_v53, %v6696_v62  ;;  %v2727_v2 = vmax.f32 %v2725_v51, %v2726_v17  ;;  %v2759_v29 = vmax.f32 %v6620_v8, %v6685_v35  ;;  %v2761_v59 = vmax.f32 %v6653_v10, %v6688_v25 }
 0x302   : > { %7185 = vst [vmem:[#allocation53_spill] sm:$0xff] %v6704_v60  ;;  %v2697_v16 = vadd.f32 %v2696_v12, %v6704_v60  ;;  %v2670_v0 = vadd.f32 %v2669_v22, %v2668_v9  ;;  %v2748_v61 = vmax.f32 %v6645_v44, %v6704_v60  ;;  %v2760_v37 = vmax.f32 %v6640_v15, %v6696_v62 }
 0x303   : > { %v2711_v11 = vadd.f32 %v2710_v13, %v6688_v25  ;;  %v2740_v55 = vmax.f32 %v6648_v5, %v2739_v19  ;;  %v2749_v51 = vmax.f32 %v2745_v42, %v2746_v54  ;;  %v2762_v33 = vmax.f32 %v2758_v41, %v2759_v29 }
 0x304   : > { %v2698_v24 = vrot.slane %v2697_v16, 4  ;;  %v2671_v50 = vrot.slane %v2670_v0, 2  ;;  %v2750_v56 = vmax.f32 %v2747_v39, %v2748_v61  ;;  %v2763_v18 = vmax.f32 %v2760_v37, %v2761_v59 }
 0x305   : > { %v2712_v28 = vrot.slane %v2711_v11, 4  ;;  %v2688_v17 = vrot.slane %v6660_v23, 1  ;;  %v2728_v38 = vrot.slane %v2727_v2, 2  ;;  %v2741_v60 = vrot.slane %v2740_v55, 2 }
 0x306   : > { %v2672_v30 = vadd.f32 %v2671_v50, %v2670_v0  ;;  %v2699_v9 = vadd.f32 %v2698_v24, %v2697_v16  ;;  %v2751_v53 = vmax.f32 %v2749_v51, %v2750_v56  ;;  %v2764_v12 = vmax.f32 %v2762_v33, %v2763_v18 }
 0x307   : > { %v2713_v22 = vadd.f32 %v2712_v28, %v2711_v11  ;;  %v2689_v19 = vadd.f32 %v2688_v17, %v6660_v23  ;;  %v2729_v54 = vmax.f32 %v2727_v2, %v2728_v38  ;;  %v2742_v37 = vmax.f32 %v2740_v55, %v2741_v60 }
 0x308   : > { %v2673_v62 = vrot.slane %v2672_v30, 1  ;;  %v2700_v13 = vrot.slane %v2699_v9, 2  ;;  %v2752_v25 = vrot.slane %v2751_v53, 4  ;;  %v2765_v5 = vrot.slane %v2764_v12, 4 }
 0x309   : > { %v2714_v42 = vrot.slane %v2713_v22, 2  ;;  %v2690_v33 = vmul.f32 0.015625, %v2689_v19  ;;  %v2730_v56 = vrot.slane %v2729_v54, 1  ;;  %v2743_v17 = vrot.slane %v2742_v37, 1 }
 0x30a   : > { %v2674_v41 = vadd.f32 %v2673_v62, %v2672_v30  ;;  %v2701_v39 = vadd.f32 %v2700_v13, %v2699_v9  ;;  %v2753_v29 = vmax.f32 %v2751_v53, %v2752_v25  ;;  %v2766_v59 = vmax.f32 %v2764_v12, %v2765_v5 }
 0x30b   : > { %v2715_v61 = vadd.f32 %v2714_v42, %v2713_v22  ;;  %v2731_v55 = vmax.f32 %v2729_v54, %v2730_v56  ;;  %v2744_v9 = vmax.f32 %v2742_v37, %v2743_v17  ;;  %v4285_v54 = vld [vmem:[%s6898_s11 + $0x38] sm:$0xff]  }
 0x30c   : > { %v2676_v16 = vmul.f32 0.015625, %v2674_v41  ;;  %v2702_v0 = vrot.slane %v2701_v39, 1  ;;  %v2754_v51 = vrot.slane %v2753_v29, 2  ;;  %v2767_v11 = vrot.slane %v2766_v59, 2  ;;  %4163 = vmatprep.subr.bf16.mxu0 %v4285_v54  ;;  %v4289_v17 = vld [vmem:[%s6898_s11 + $0x18] sm:$0xff]  }
 0x30d   : > { %v2716_v24 = vrot.slane %v2715_v61, 1 }
 0x30e   : > { %v2703_v50 = vadd.f32 %v2702_v0, %v2701_v39  ;;  %v2755_v18 = vmax.f32 %v2753_v29, %v2754_v51  ;;  %v2768_v28 = vmax.f32 %v2766_v59, %v2767_v11  ;;  %v2772_v2 = vsel %vm2771_vm5, %v2676_v16, %v2690_v33  ;;  %v4284_v39 = vld [vmem:[%s6896_s9] sm:$0xff]   ;;  %v4286_v29 = vld [vmem:[%s6898_s11 + $0x30] sm:$0xff]   ;;  %v4287_v59 = vld [vmem:[%s6898_s11 + $0x28] sm:$0xff]  }
 0x30f   : > { %v2717_v23 = vadd.f32 %v2716_v24, %v2715_v61  ;;  %4158 = vmatpush3.bf16.msra.mxu1 %v4284_v39  ;;  %v3747_v61 = vld [vmem:[%s6895_s8] ss:$0 sm:$0xff]  ;;  %v7186_v39 = vld [vmem:[#allocation35_spill] sm:$0xff] }
 0x310   : > { %v2704_v62 = vmul.f32 0.015625, %v2703_v50  ;;  %v2756_v25 = vrot.slane %v2755_v18, 1  ;;  %v2769_v60 = vrot.slane %v2768_v28, 1 }
 0x311   : > { %v2718_v38 = vmul.f32 0.015625, %v2717_v23  ;;  %v4288_v23 = vld [vmem:[%s6898_s11 + $0x20] sm:$0xff]  }
 0x312   : > { %v2774_v30 = vsel %vm2773_vm6, %v2772_v2, %v2704_v62  ;;  %v2757_v12 = vmax.f32 %v2755_v18, %v2756_v25  ;;  %v2770_v13 = vmax.f32 %v2768_v28, %v2769_v60  ;;  %v4290_v2 = vld [vmem:[%s6898_s11 + $0x10] sm:$0xff]   ;;  %v4291_v62 = vld [vmem:[%s6898_s11 + $0x8] sm:$0xff]   ;;  %v4292_v25 = vld [vmem:[%s6898_s11] sm:$0xff]  }
 0x313   : > { %v2776_v53 = vsel %vm2775_vm7, %v2774_v30, %v2718_v38  ;;  %v3756_v38 = vld [vmem:[%s6897_s10] ss:$0 sm:$0xff] }
 0x314   : > { %v2778_v22 = vsel %vm2777_vm8, %v2776_v53, %v2731_v55 }
 0x315   : > { %v2780_v5 = vsel %vm2779_vm9, %v2778_v22, %v2744_v9 }
 0x316   : > { %v2782_v19 = vsel %vm2781_vm10, %v2780_v5, %v2757_v12 }
 0x317   : > { %v2784_v42 = vsel %vm2783_vm11, %v2782_v19, %v2770_v13 }
 0x318   : > { %v2785_v41 = vpack.c.bf16 %v2784_v42, %v2784_v42  ;;  %v3066_v42 = vsub.s32 1, %v4963_v40 }
 0x31a   : > { %4140 = vmatmul.mubr.bf16.vlgmr.msra.gmra.mxu0 %v2785_v41 }
 0x31b   : > { %4164 = vmatpush3.bf16.msra.mxu0 %v4285_v54 }
 0x31c   : > { %4165 = vmatprep.subr.bf16.mxu0 %v4286_v29 }
 0x31f   : > { %4166 = vmatpush3.bf16.msra.mxu0 %v4286_v29 }
 0x320   : > { %4167 = vmatprep.subr.bf16.mxu0 %v4287_v59 }
 0x323   : > { %4168 = vmatpush3.bf16.msra.mxu0 %v4287_v59 }
 0x324   : > { %4169 = vmatprep.subr.bf16.mxu0 %v4288_v23 }
 0x327   : > { %4170 = vmatpush3.bf16.msra.mxu0 %v4288_v23 }
 0x328   : > { %4171 = vmatprep.subr.bf16.mxu0 %v4289_v17 }
 0x32b   : > { %4172 = vmatpush3.bf16.msra.mxu0 %v4289_v17 }
 0x32c   : > { %4173 = vmatprep.subr.bf16.mxu0 %v4290_v2 }
 0x32f   : > { %4174 = vmatpush3.bf16.msra.mxu0 %v4290_v2 }
 0x330   : > { %4175 = vmatprep.subr.bf16.mxu0 %v4291_v62 }
 0x333   : > { %4176 = vmatpush3.bf16.msra.mxu0 %v4291_v62 }
 0x334   : > { %4177 = vmatprep.subr.bf16.mxu0 %v4292_v25 }
 0x337   : > { %4178 = vmatpush3.bf16.msra.mxu0 %v4292_v25 }
 0x3da   : > { %v2891_v37 = vpop.f32.mrf.mxu0 }
 0x3db   : > { %v2892_v16 = vadd.f32 %v3747_v61, %v2891_v37 }
 0x3dc   : > { %v4141_v0 = vpop.f32.mrf.mxu0 }
 0x3dd   : > { %v2897_v51 = vadd.f32 3.0, %v2892_v16 }
 0x3de   : > { %v2894_v11 = vpop.f32.mrf.mxu0 }
 0x3df   : > { %v2898_v33 = vmax.f32 %v2897_v51, 0.0 }
 0x3e0   : > { %v4142_v24 = vpop.f32.mrf.mxu0 }
 0x3e1   : > { %v2899_v50 = vmin.f32 %v2898_v33, 6.0 }
 0x3e3   : > { %v2900_v56 = vmul.f32 %v2899_v50, %v2892_v16 }
 0x3e5   : > { %v2901_v18 = vmul.f32 0.16666667, %v2900_v56 }
 0x3e7   : > { %v2902_v28 = vpack.c.bf16 %v2901_v18, %v2901_v18  ;;  %v3072_v18 = vsub.s32 2, %v4963_v40 }
 0x3e9   : > { %4160 = vmatmul.mubr.bf16.vlgmr.msra.gmra.mxu1 %v2902_v28  ;;  %v3076_v28 = vsub.s32 3, %v4963_v40 }
 0x4a9   : > { %v3008_v60 = vpop.f32.mrf.mxu1 }
 0x4aa   : > { %v3009_v55 = vadd.f32 %v3756_v38, %v3008_v60 }
 0x4ab   : > { %v4161_v30 = vpop.f32.mrf.mxu1 }
 0x4ac   : > { %v3015_v9 = vrot.slane %v3009_v55, 4 }
 0x4ad   : > { %v3011_v53 = vpop.f32.mrf.mxu1 }
 0x4ae   : > { %v3017_v12 = vadd.f32 %v3015_v9, %v3009_v55  ;;  %v7187_v53 = vld [vmem:[#allocation57_spill] sm:$0xff] }
 0x4af   : > { %v4162_v22 = vpop.f32.mrf.mxu1 }
 0x4b0   : > { %v3018_v13 = vadd.f32 3.0, %v3017_v12 }
 0x4b2   : > { %v3019_v5 = vmax.f32 %v3018_v13, 0.0 }
 0x4b4   : > { %v3020_v19 = vmin.f32 %v3019_v5, 6.0 }
 0x4b6   : > { %v3021_v41 = vmul.f32 0.16666667, %v3020_v19 }
 0x4b8   : > { %v3063_v54 = vrot.slane %v3021_v41, %v7186_v39  ;;  %v3067_v29 = vrot.slane %v3021_v41, %v3066_v42  ;;  %v3077_v17 = vrot.slane %v3021_v41, %v3076_v28 }
 0x4ba   : > { %v3176_v59 = vmul.f32 %v3063_v54, %v6606_v31  ;;  %v3177_v61 = vmul.f32 %v3067_v29, %v7163_v7  ;;  %v3178_v37 = vmul.f32 %v3063_v54, %v6614_v36  ;;  %v3179_v16 = vmul.f32 %v3067_v29, %v7170_v46 }
 0x4bb   : > { %v3180_v0 = vmul.f32 %v3063_v54, %v7179_v45  ;;  %v3181_v51 = vmul.f32 %v3067_v29, %v7160_v27  ;;  %v3182_v50 = vmul.f32 %v3063_v54, %v7176_v14  ;;  %v3183_v31 = vmul.f32 %v3067_v29, %v7165_v1 }
 0x4bc   : > { %v3208_v11 = vpack.c.bf16 %v3177_v61, %v3176_v59  ;;  %v3209_v33 = vpack.c.bf16 %v3179_v16, %v3178_v37  ;;  %v3184_v7 = vmul.f32 %v3063_v54, %v7169_v20  ;;  %v3185_v36 = vmul.f32 %v3067_v29, %v7162_v43  ;;  %v7191_v61 = vld [vmem:[#allocation3_spill] sm:$0xff] }
 0x4bd   : > { %v3210_v24 = vpack.c.bf16 %v3181_v51, %v3180_v0  ;;  %v3211_v56 = vpack.c.bf16 %v3183_v31, %v3182_v50  ;;  %v3186_v27 = vmul.f32 %v3063_v54, %v7174_v49  ;;  %v3187_v45 = vmul.f32 %v3067_v29, %v7171_v6  ;;  %v7192_v51 = vld [vmem:[#allocation5_spill] sm:$0xff] }
 0x4be   : > { %4179 = vmatprep.mubr.bf16.mxu0 %v3208_v11  ;;  %v3212_v46 = vpack.c.bf16 %v3185_v36, %v3184_v7  ;;  %v3188_v14 = vmul.f32 %v3063_v54, %v7180_v4  ;;  %v3189_v1 = vmul.f32 %v3067_v29, %v7159_v26  ;;  %v3073_v20 = vrot.slane %v3021_v41, %v3072_v18  ;;  %v7194_v18 = vld [vmem:[#allocation11_spill] sm:$0xff] }
 0x4bf   : > { %4180 = vmatmul.mubr.bf16.vlgmr.msra.gmra.mxu0 %v3209_v33  ;;  %v3213_v23 = vpack.c.bf16 %v3187_v45, %v3186_v27  ;;  %v3190_v2 = vmul.f32 %v3063_v54, %v7175_v3  ;;  %v3191_v49 = vmul.f32 %v3067_v29, %v7166_v47  ;;  %v3193_v62 = vmul.f32 %v3077_v17, %v6637_v32  ;;  %v7190_v29 = vld [vmem:[#allocation4_spill] sm:$0xff] }
 0x4c0   : > { %4183 = vmatprep.mubr.bf16.mxu0 %v3210_v24  ;;  %v3214_v43 = vpack.c.bf16 %v3189_v1, %v3188_v14  ;;  %v3192_v6 = vmul.f32 %v3073_v20, %v7178_v57  ;;  %v3194_v26 = vmul.f32 %v3073_v20, %v6611_v21  ;;  %v3195_v4 = vmul.f32 %v3077_v17, %v6620_v8  ;;  %v7193_v24 = vld [vmem:[#allocation2_spill] sm:$0xff]  ;;  %v7195_v14 = vld [vmem:[#allocation8_spill] sm:$0xff] }
 0x4c1   : > { %v3215_v25 = vpack.c.bf16 %v3191_v49, %v3190_v2  ;;  %v3196_v38 = vmul.f32 %v3073_v20, %v6628_v63  ;;  %v3197_v60 = vmul.f32 %v3077_v17, %v6640_v15  ;;  %v3198_v47 = vmul.f32 %v3073_v20, %v6645_v44  ;;  %v7197_v49 = vld [vmem:[#allocation6_spill] sm:$0xff] }
 0x4c2   : > { %v3216_v40 = vpack.c.bf16 %v3193_v62, %v3192_v6  ;;  %v3217_v55 = vpack.c.bf16 %v3195_v4, %v3194_v26  ;;  %v3199_v32 = vmul.f32 %v3077_v17, %v6653_v10  ;;  %v3200_v57 = vmul.f32 %v3073_v20, %v6663_v58  ;;  %v7188_v10 = vld [vmem:[#allocation53_spill] sm:$0xff] }
 0x4c3   : > { %v3218_v3 = vpack.c.bf16 %v3197_v60, %v3196_v38  ;;  %v3201_v30 = vmul.f32 %v3077_v17, %v6669_v34  ;;  %v3202_v8 = vmul.f32 %v3073_v20, %v6681_v52  ;;  %v3203_v63 = vmul.f32 %v3077_v17, %v6685_v35  ;;  %v7189_v34 = vld [vmem:[#allocation59_spill] sm:$0xff]  ;;  %v6795_v52 = vld [vmem:[%s6899_s12] ss:$0 sm:$0xff] }
 0x4c4   : > { %v3219_v9 = vpack.c.bf16 %v3199_v32, %v3198_v47  ;;  %v3204_v15 = vmul.f32 %v3073_v20, %v6691_v48  ;;  %v3205_v12 = vmul.f32 %v3077_v17, %v7187_v53  ;;  %v3206_v58 = vmul.f32 %v3073_v20, %v7188_v10  ;;  %v7199_v47 = vld [vmem:[#allocation12_spill] sm:$0xff] }
 0x4c5   : > { %v3220_v21 = vpack.c.bf16 %v3201_v30, %v3200_v57  ;;  %v3221_v22 = vpack.c.bf16 %v3203_v63, %v3202_v8  ;;  %v3207_v13 = vmul.f32 %v3077_v17, %v7189_v34  ;;  %v7196_v17 = vld [vmem:[#allocation7_spill] sm:$0xff]  ;;  %v7201_v63 = vld [vmem:[#allocation10_spill] sm:$0xff] }
 0x4c6   : > { %v3222_v44 = vpack.c.bf16 %v3205_v12, %v3204_v15 }
 0x4c7   : > { %4184 = vmatmul.mubr.bf16.gmra.mxu0 %v3211_v56  ;;  %v3223_v5 = vpack.c.bf16 %v3207_v13, %v3206_v58  ;;  %v7202_v13 = vld [vmem:[#allocation19_spill] sm:$0xff] }
 0x4c8   : > { %4187 = vmatprep.mubr.bf16.mxu0 %v3212_v46 }
 0x4cf   : > { %4188 = vmatmul.mubr.bf16.gmra.mxu0 %v3213_v23 }
 0x4d0   : > { %4191 = vmatprep.mubr.bf16.mxu0 %v3214_v43 }
 0x4d7   : > { %4192 = vmatmul.mubr.bf16.gmra.mxu0 %v3215_v25 }
 0x4d8   : > { %4195 = vmatprep.mubr.bf16.mxu0 %v3216_v40 }
 0x4df   : > { %4196 = vmatmul.mubr.bf16.gmra.mxu0 %v3217_v55  ;;  %v7198_v55 = vld [vmem:[#allocation13_spill] sm:$0xff] }
 0x4e0   : > { %4199 = vmatprep.mubr.bf16.mxu0 %v3218_v3 }
 0x4e7   : > { %4200 = vmatmul.mubr.bf16.gmra.mxu0 %v3219_v9  ;;  %v7200_v9 = vld [vmem:[#allocation9_spill] sm:$0xff] }
 0x4e8   : > { %4203 = vmatprep.mubr.bf16.mxu0 %v3220_v21 }
 0x4ef   : > { %4204 = vmatmul.mubr.bf16.gmra.mxu0 %v3221_v22 }
 0x4f0   : > { %4207 = vmatprep.mubr.bf16.mxu0 %v3222_v44 }
 0x4f7   : > { %4208 = vmatmul.mubr.bf16.gmra.mxu0 %v3223_v5 }
 0x57f   : > { %v4181_v19 = vpop.f32.mrf.mxu0 }
 0x580   : > { %v3338_v48 = vadd.f32 %v4181_v19, %v6795_v52  ;;  %v7203_v19 = vld [vmem:[#allocation16_spill] sm:$0xff] }
 0x581   : > { %v3329_v35 = vpop.f32.mrf.mxu0 }
 0x582   : > { %v3330_v41 = vadd.f32 %v6795_v52, %v3329_v35  ;;  %v3458_v59 = vadd.f32 %v3338_v48, %v7190_v29  ;;  %v7205_v29 = vld [vmem:[#allocation17_spill] sm:$0xff] }
 0x583   : > { %v4182_v42 = vpop.f32.mrf.mxu0 }
 0x584   : > { %v3341_v39 = vadd.f32 %v4182_v42, %v6795_v52  ;;  %v3456_v11 = vadd.f32 %v3330_v41, %v7192_v51  ;;  %v7204_v41 = vld [vmem:[#allocation15_spill] sm:$0xff] }
 0x585   : > { %v3332_v54 = vpop.f32.mrf.mxu0 }
 0x586   : > { %v3459_v37 = vadd.f32 %v3341_v39, %v7191_v61  ;;  %v3333_v16 = vadd.f32 %v6795_v52, %v3332_v54 }
 0x587   : > { %v4185_v0 = vpop.f32.mrf.mxu0 }
 0x588   : > { %v3850_v33 = vpack.c.bf16 %v3459_v37, %v3458_v59  ;;  %v3457_v50 = vadd.f32 %v3333_v16, %v7193_v24  ;;  %v3354_v36 = vadd.f32 %v4185_v0, %v6795_v52  ;;  %v7206_v24 = vld [vmem:[#allocation20_spill] sm:$0xff] }
 0x589   : > { %v3345_v31 = vpop.f32.mrf.mxu0 }
 0x58a   : > { %3922 = vst [vmem:[%s6808_s18 + $0x8] sm:$0xff] %v3850_v33   ;;  %v3845_v7 = vpack.c.bf16 %v3457_v50, %v3456_v11  ;;  %v3346_v46 = vadd.f32 %v6795_v52, %v3345_v31  ;;  %v3462_v28 = vadd.f32 %v3354_v36, %v7194_v18  ;;  %v7207_v31 = vld [vmem:[#allocation21_spill] sm:$0xff]  ;;  %v7209_v18 = vld [vmem:[#allocation18_spill] sm:$0xff] }
 0x58b   : > { %v4186_v56 = vpop.f32.mrf.mxu0 }
 0x58c   : > { %3846 = vst [vmem:[%s6808_s18] sm:$0xff] %v3845_v7   ;;  %v3357_v27 = vadd.f32 %v4186_v56, %v6795_v52  ;;  %v3460_v43 = vadd.f32 %v3346_v46, %v7196_v17  ;;  %v7208_v46 = vld [vmem:[#allocation14_spill] sm:$0xff] }
 0x58d   : > { %v3348_v45 = vpop.f32.mrf.mxu0 }
 0x58e   : > { %v3463_v1 = vadd.f32 %v3357_v27, %v7195_v14  ;;  %v3349_v23 = vadd.f32 %v6795_v52, %v3348_v45 }
 0x58f   : > { %v4189_v20 = vpop.f32.mrf.mxu0 }
 0x590   : > { %v3860_v2 = vpack.c.bf16 %v3463_v1, %v3462_v28  ;;  %v3461_v6 = vadd.f32 %v3349_v23, %v7197_v49  ;;  %v3370_v40 = vadd.f32 %v4189_v20, %v6795_v52  ;;  %v7210_v49 = vld [vmem:[#allocation24_spill] sm:$0xff] }
 0x591   : > { %v3361_v62 = vpop.f32.mrf.mxu0 }
 0x592   : > { %3924 = vst [vmem:[%s6808_s18 + $0x18] sm:$0xff] %v3860_v2   ;;  %v3855_v25 = vpack.c.bf16 %v3461_v6, %v3460_v43  ;;  %v3362_v4 = vadd.f32 %v6795_v52, %v3361_v62  ;;  %v3466_v3 = vadd.f32 %v3370_v40, %v7198_v55  ;;  %v7211_v62 = vld [vmem:[#allocation25_spill] sm:$0xff]  ;;  %v7213_v55 = vld [vmem:[#allocation23_spill] sm:$0xff] }
 0x593   : > { %v4190_v26 = vpop.f32.mrf.mxu0 }
 0x594   : > { %3923 = vst [vmem:[%s6808_s18 + $0x10] sm:$0xff] %v3855_v25   ;;  %v3373_v38 = vadd.f32 %v4190_v26, %v6795_v52  ;;  %v3464_v21 = vadd.f32 %v3362_v4, %v7200_v9  ;;  %v7212_v4 = vld [vmem:[#allocation22_spill] sm:$0xff] }
 0x595   : > { %v3364_v60 = vpop.f32.mrf.mxu0 }
 0x596   : > { %v3467_v32 = vadd.f32 %v3373_v38, %v7199_v47  ;;  %v3365_v57 = vadd.f32 %v6795_v52, %v3364_v60 }
 0x597   : > { %v4193_v30 = vpop.f32.mrf.mxu0 }
 0x598   : > { %v3870_v8 = vpack.c.bf16 %v3467_v32, %v3466_v3  ;;  %v3465_v15 = vadd.f32 %v3365_v57, %v7201_v63  ;;  %v3386_v22 = vadd.f32 %v4193_v30, %v6795_v52  ;;  %v7214_v63 = vld [vmem:[#allocation28_spill] sm:$0xff] }
 0x599   : > { %v3377_v53 = vpop.f32.mrf.mxu0 }
 0x59a   : > { %3926 = vst [vmem:[%s6808_s18 + $0x28] sm:$0xff] %v3870_v8   ;;  %v3865_v12 = vpack.c.bf16 %v3465_v15, %v3464_v21  ;;  %v3378_v10 = vadd.f32 %v6795_v52, %v3377_v53  ;;  %v3470_v5 = vadd.f32 %v3386_v22, %v7202_v13  ;;  %v7215_v53 = vld [vmem:[#allocation29_spill] sm:$0xff]  ;;  %v7217_v13 = vld [vmem:[#allocation27_spill] sm:$0xff] }
 0x59b   : > { %v4194_v44 = vpop.f32.mrf.mxu0 }
 0x59c   : > { %3925 = vst [vmem:[%s6808_s18 + $0x20] sm:$0xff] %v3865_v12   ;;  %v3389_v58 = vadd.f32 %v4194_v44, %v6795_v52  ;;  %v3468_v39 = vadd.f32 %v3378_v10, %v7204_v41  ;;  %v7216_v10 = vld [vmem:[#allocation26_spill] sm:$0xff] }
 0x59d   : > { %v3380_v34 = vpop.f32.mrf.mxu0 }
 0x59e   : > { %v3471_v35 = vadd.f32 %v3389_v58, %v7203_v19  ;;  %v3381_v48 = vadd.f32 %v6795_v52, %v3380_v34 }
 0x59f   : > { %v4197_v42 = vpop.f32.mrf.mxu0 }
 0x5a0   : > { %v3880_v54 = vpack.c.bf16 %v3471_v35, %v3470_v5  ;;  %v3469_v59 = vadd.f32 %v3381_v48, %v7205_v29  ;;  %v3402_v16 = vadd.f32 %v4197_v42, %v6795_v52  ;;  %v7218_v29 = vld [vmem:[#allocation32_spill] sm:$0xff] }
 0x5a1   : > { %v3393_v61 = vpop.f32.mrf.mxu0 }
 0x5a2   : > { %3928 = vst [vmem:[%s6808_s18 + $0x38] sm:$0xff] %v3880_v54   ;;  %v3875_v37 = vpack.c.bf16 %v3469_v59, %v3468_v39  ;;  %v3394_v51 = vadd.f32 %v6795_v52, %v3393_v61  ;;  %v3474_v50 = vadd.f32 %v3402_v16, %v7206_v24  ;;  %v7219_v61 = vld [vmem:[#allocation33_spill] sm:$0xff] }
 0x5a3   : > { %v4198_v0 = vpop.f32.mrf.mxu0 }
 0x5a4   : > { %3927 = vst [vmem:[%s6808_s18 + $0x30] sm:$0xff] %v3875_v37   ;;  %v3405_v11 = vadd.f32 %v4198_v0, %v6795_v52  ;;  %v3472_v27 = vadd.f32 %v3394_v51, %v7208_v46  ;;  %v7220_v0 = vld [vmem:[#allocation30_spill] sm:$0xff] }
 0x5a5   : > { %v3396_v33 = vpop.f32.mrf.mxu0 }
 0x5a6   : > { %v3475_v7 = vadd.f32 %v3405_v11, %v7207_v31  ;;  %v3397_v36 = vadd.f32 %v6795_v52, %v3396_v33  ;;  %v7221_v33 = vld [vmem:[#allocation31_spill] sm:$0xff] }
 0x5a7   : > { %v4201_v56 = vpop.f32.mrf.mxu0 }
 0x5a8   : > { %v3890_v45 = vpack.c.bf16 %v3475_v7, %v3474_v50  ;;  %v3473_v28 = vadd.f32 %v3397_v36, %v7209_v18  ;;  %v3418_v23 = vadd.f32 %v4201_v56, %v6795_v52 }
 0x5a9   : > { %v3409_v14 = vpop.f32.mrf.mxu0 }
 0x5aa   : > { %3930 = vst [vmem:[%s6808_s18 + $0x48] sm:$0xff] %v3890_v45   ;;  %v3885_v1 = vpack.c.bf16 %v3473_v28, %v3472_v27  ;;  %v3410_v17 = vadd.f32 %v6795_v52, %v3409_v14  ;;  %v3478_v6 = vadd.f32 %v3418_v23, %v7210_v49 }
 0x5ab   : > { %v4202_v20 = vpop.f32.mrf.mxu0 }
 0x5ac   : > { %3929 = vst [vmem:[%s6808_s18 + $0x40] sm:$0xff] %v3885_v1   ;;  %v3421_v43 = vadd.f32 %v4202_v20, %v6795_v52  ;;  %v3476_v38 = vadd.f32 %v3410_v17, %v7212_v4 }
 0x5ad   : > { %v3412_v2 = vpop.f32.mrf.mxu0 }
 0x5ae   : > { %v3479_v25 = vadd.f32 %v3421_v43, %v7211_v62  ;;  %v3413_v40 = vadd.f32 %v6795_v52, %v3412_v2 }
 0x5af   : > { %v4205_v26 = vpop.f32.mrf.mxu0 }
 0x5b0   : > { %v3900_v60 = vpack.c.bf16 %v3479_v25, %v3478_v6  ;;  %v3477_v3 = vadd.f32 %v3413_v40, %v7213_v55  ;;  %v3434_v57 = vadd.f32 %v4205_v26, %v6795_v52 }
 0x5b1   : > { %v3425_v47 = vpop.f32.mrf.mxu0 }
 0x5b2   : > { %3932 = vst [vmem:[%s6808_s18 + $0x58] sm:$0xff] %v3900_v60   ;;  %v3895_v32 = vpack.c.bf16 %v3477_v3, %v3476_v38  ;;  %v3426_v9 = vadd.f32 %v6795_v52, %v3425_v47  ;;  %v3482_v15 = vadd.f32 %v3434_v57, %v7214_v63 }
 0x5b3   : > { %v4206_v30 = vpop.f32.mrf.mxu0 }
 0x5b4   : > { %3931 = vst [vmem:[%s6808_s18 + $0x50] sm:$0xff] %v3895_v32   ;;  %v3437_v21 = vadd.f32 %v4206_v30, %v6795_v52  ;;  %v3480_v58 = vadd.f32 %v3426_v9, %v7216_v10 }
 0x5b5   : > { %v3428_v8 = vpop.f32.mrf.mxu0 }
 0x5b6   : > { %v3483_v12 = vadd.f32 %v3437_v21, %v7215_v53  ;;  %v3429_v22 = vadd.f32 %v6795_v52, %v3428_v8 }
 0x5b7   : > { %v4209_v44 = vpop.f32.mrf.mxu0 }
 0x5b8   : > { %v3910_v34 = vpack.c.bf16 %v3483_v12, %v3482_v15  ;;  %v3481_v5 = vadd.f32 %v3429_v22, %v7217_v13  ;;  %v3450_v48 = vadd.f32 %v4209_v44, %v6795_v52 }
 0x5b9   : > { %v3441_v19 = vpop.f32.mrf.mxu0 }
 0x5ba   : > { %3934 = vst [vmem:[%s6808_s18 + $0x68] sm:$0xff] %v3910_v34   ;;  %v3905_v35 = vpack.c.bf16 %v3481_v5, %v3480_v58  ;;  %v3442_v41 = vadd.f32 %v6795_v52, %v3441_v19  ;;  %v3486_v59 = vadd.f32 %v3450_v48, %v7218_v29 }
 0x5bb   : > { %v4210_v42 = vpop.f32.mrf.mxu0 }
 0x5bc   : > { %3933 = vst [vmem:[%s6808_s18 + $0x60] sm:$0xff] %v3905_v35   ;;  %v3453_v39 = vadd.f32 %v4210_v42, %v6795_v52  ;;  %v3484_v51 = vadd.f32 %v3442_v41, %v7220_v0 }
 0x5bd   : > { %v3444_v54 = vpop.f32.mrf.mxu0 }
 0x5be   : > { %v3487_v37 = vadd.f32 %v3453_v39, %v7219_v61  ;;  %v3445_v16 = vadd.f32 %v6795_v52, %v3444_v54 }
 0x5c0   : > { %v3920_v11 = vpack.c.bf16 %v3487_v37, %v3486_v59  ;;  %v3485_v24 = vadd.f32 %v3445_v16, %v7221_v33 }
 0x5c2   : > { %3936 = vst [vmem:[%s6808_s18 + $0x78] sm:$0xff] %v3920_v11   ;;  %v3915_v50 = vpack.c.bf16 %v3485_v24, %v3484_v51 }
 0x5c4   : > { %3935 = vst [vmem:[%s6808_s18 + $0x70] sm:$0xff] %v3915_v50  }
 0x5c5 PF: > { %s23_s25 = sadd.s32 1, %s4493_s25  }
 0x5c6   : > { %p20_p4 = scmp.ge.s32.totalorder %s23_s25, 4  }
 0x5c8   :  { %22 = sbr.rel (!%p20_p4) target bundleno = 1 (0x1), region = 102 }

</bundles_post_ra>
